<compile_context>
chip_gen: v5e
topology: v5e:2x2
jax: 0.10.0
libtpu: 0.0.40
codegen_flags: <defaults>
</compile_context>

<pallas_src>
import functools
import math

import jax
import jax.numpy as jnp
from jax.experimental import pallas as pl
from jax.experimental.pallas import tpu as pltpu

NHEAD = 8
FFN_DIM = 2048      # PyTorch TransformerEncoderLayer default dim_feedforward
DEC_OUT = 256       # decoder Linear out_features
PRED_PAD = 128      # lane-dense padding for prediction-head hidden widths (100/10/1)

_VMEM_SPEC = pl.BlockSpec(memory_space=pltpu.MemorySpace.VMEM)


def _const_spec(arr):
    """Full-array block, same block for every grid step."""
    nd = arr.ndim
    return pl.BlockSpec(arr.shape, lambda *_: (0,) * nd)


# ----------------------------------------------------------------------------
# Kernel 1: fused transformer encoder layer (per batch element)
# ----------------------------------------------------------------------------
def _layernorm(x, g, b, eps):
    mu = jnp.mean(x, axis=-1, keepdims=True)
    xc = x - mu
    var = jnp.mean(xc * xc, axis=-1, keepdims=True)
    return xc * jax.lax.rsqrt(var + eps) * g + b


def _encoder_kernel(x_ref, pe_ref, cmask_ref, hmask_ref, selT_ref, sel_ref,
                    wq_ref, bq_ref, wk_ref, bk_ref, wv_ref, bv_ref,
                    wo_ref, bo_ref, ln1g_ref, ln1b_ref,
                    w1_ref, b1_ref, w2_ref, b2_ref, ln2g_ref, ln2b_ref,
                    o_ref, *, nhead, eps):
    # PositionalEncoding fused in: x = src + pe
    x = x_ref[0] + pe_ref[...]                       # (S, E)
    e = x.shape[-1]
    scale = 1.0 / math.sqrt(e // nhead)

    # QKV projections (weights pre-transposed to (E, E))
    q = jnp.dot(x, wq_ref[...], preferred_element_type=jnp.float32) + bq_ref[...]
    k = jnp.dot(x, wk_ref[...], preferred_element_type=jnp.float32) + bk_ref[...]
    v = jnp.dot(x, wv_ref[...], preferred_element_type=jnp.float32) + bv_ref[...]

    # All heads at once: row c = h*S + i of the expanded tensors is (head h, query i).
    hm = hmask_ref[...]                              # (H*S, E) 0/1 head-feature mask
    q_exp = jnp.dot(selT_ref[...], q,
                    preferred_element_type=jnp.float32) * hm      # (H*S, E)
    # scores[c, j] = sum_{e in head(c)} q[i,e] k[j,e]   (rhs-transposed matmul)
    scores = jax.lax.dot_general(
        q_exp, k, (((1,), (1,)), ((), ())),
        preferred_element_type=jnp.float32) * scale               # (H*S, S)
    scores = scores + cmask_ref[...]                 # causal mask replicated per head

    smax = jnp.max(scores, axis=-1, keepdims=True)
    p_un = jnp.exp(scores - smax)
    p = p_un / jnp.sum(p_un, axis=-1, keepdims=True)

    ctx = jnp.dot(p, v, preferred_element_type=jnp.float32) * hm  # (H*S, E)
    attn = jnp.dot(sel_ref[...], ctx,
                   preferred_element_type=jnp.float32)            # (S, E) concat heads
    attn = jnp.dot(attn, wo_ref[...],
                   preferred_element_type=jnp.float32) + bo_ref[...]

    h1 = _layernorm(x + attn, ln1g_ref[...], ln1b_ref[...], eps)
    ff = jnp.maximum(jnp.dot(h1, w1_ref[...],
                             preferred_element_type=jnp.float32) + b1_ref[...], 0.0)
    ff = jnp.dot(ff, w2_ref[...], preferred_element_type=jnp.float32) + b2_ref[...]
    o_ref[0] = _layernorm(h1 + ff, ln2g_ref[...], ln2b_ref[...], eps)


# ----------------------------------------------------------------------------
# Kernel 2: decoder Linear + prediction head (BN folded, 128-lane padded internals)
# ----------------------------------------------------------------------------
def _head_kernel(x_ref, wd_ref, bd_ref, w1_ref, b1_ref, w2_ref, b2_ref,
                 w3_ref, b3_ref, w4_ref, b4_ref, enc_ref, pred_ref):
    enc = jnp.dot(x_ref[...], wd_ref[...],
                  preferred_element_type=jnp.float32) + bd_ref[...]   # (B, 256)
    enc_ref[...] = enc
    z = jnp.maximum(jnp.dot(enc, w1_ref[...],
                            preferred_element_type=jnp.float32) + b1_ref[...], 0.0)
    z = jnp.maximum(jnp.dot(z, w2_ref[...],
                            preferred_element_type=jnp.float32) + b2_ref[...], 0.0)
    z = jnp.maximum(jnp.dot(z, w3_ref[...],
                            preferred_element_type=jnp.float32) + b3_ref[...], 0.0)
    pred_ref[...] = jnp.dot(z, w4_ref[...],
                            preferred_element_type=jnp.float32) + b4_ref[...]


# ----------------------------------------------------------------------------
# Kernel 3: fused discriminator (per batch element)
# ----------------------------------------------------------------------------
def _maxpool_cols(x):
    """MaxPool1d(kernel=2, stride=2) along the lane axis via 0/1 selection matmuls."""
    _, l = x.shape
    lp = l // 2
    src = jax.lax.broadcasted_iota(jnp.int32, (l, lp), 0)
    dst = jax.lax.broadcasted_iota(jnp.int32, (l, lp), 1)
    even = (src == 2 * dst).astype(jnp.float32)
    odd = (src == 2 * dst + 1).astype(jnp.float32)
    return jnp.maximum(
        jnp.dot(x, even, preferred_element_type=jnp.float32),
        jnp.dot(x, odd, preferred_element_type=jnp.float32))


def _conv_stage(x, wt, shift):
    """Conv1d(k=3) + folded-BN shift + ReLU.  x: (Cin, L), wt: (3, Cout, Cin)."""
    lout = x.shape[-1] - 2
    acc = jnp.dot(wt[0], x[:, 0:lout], preferred_element_type=jnp.float32)
    acc = acc + jnp.dot(wt[1], x[:, 1:1 + lout], preferred_element_type=jnp.float32)
    acc = acc + jnp.dot(wt[2], x[:, 2:2 + lout], preferred_element_type=jnp.float32)
    return jnp.maximum(acc + shift, 0.0)


def _disc_kernel(x_ref, w1_ref, t1_ref, w2_ref, t2_ref, w3_ref, t3_ref,
                 w4_ref, t4_ref, wfc_ref, bfc_ref, o_ref):
    x = x_ref[0]                                     # (1, 256)

    # stage 1 (Cin=1): VPU broadcast-multiply-add, no K=1 MXU dots
    w1 = w1_ref[...]                                 # (8, 3), BN scale folded in
    l1 = x.shape[-1] - 2
    acc = (w1[:, 0:1] * x[:, 0:l1]
           + w1[:, 1:2] * x[:, 1:1 + l1]
           + w1[:, 2:3] * x[:, 2:2 + l1])            # (8, 254)
    h = jnp.maximum(acc + t1_ref[...], 0.0)
    h = _maxpool_cols(h)                             # (8, 127)

    h = _maxpool_cols(_conv_stage(h, w2_ref[...], t2_ref[...]))   # (16, 62)
    h = _maxpool_cols(_conv_stage(h, w3_ref[...], t3_ref[...]))   # (32, 30)
    h = _maxpool_cols(_conv_stage(h, w4_ref[...], t4_ref[...]))   # (64, 14)

    # fc(896 -> 1) + sigmoid, fc weight pre-reshaped to (64, 14)
    logit = jnp.sum(jnp.sum(h * wfc_ref[...], axis=1, keepdims=True),
                    axis=0, keepdims=True) + bfc_ref[...]          # (1, 1)
    o_ref[0] = 1.0 / (1.0 + jnp.exp(-logit))


# ----------------------------------------------------------------------------
# Parameter setup (PyTorch-layout init, then one-time kernel-layout prep)
# ----------------------------------------------------------------------------
def fold_linear_bn(w, b, g, beta, rm, rv, eps=1e-5):
    s = g / jnp.sqrt(rv + eps)
    return w * s[:, None], (b - rm) * s + beta


def fold_conv_bn(bias, g, beta, rm, rv, eps=1e-5):
    s = g / jnp.sqrt(rv + eps)
    return s, (bias - rm) * s + beta


def init_params(key, seq_len, feature_size):
    e = feature_size
    keys = iter(jax.random.split(key, 64))

    def u(shape, lo=-0.1, hi=0.1):
        return jax.random.uniform(next(keys), shape, jnp.float32, lo, hi)

    p = {}
    p["in_proj_w"] = u((3 * e, e)); p["in_proj_b"] = u((3 * e,))
    p["out_proj_w"] = u((e, e)); p["out_proj_b"] = u((e,))
    p["ln1_g"] = u((e,), 0.9, 1.1); p["ln1_b"] = u((e,))
    p["ffn_w1"] = u((FFN_DIM, e)); p["ffn_b1"] = u((FFN_DIM,))
    p["ffn_w2"] = u((e, FFN_DIM)); p["ffn_b2"] = u((e,))
    p["ln2_g"] = u((e,), 0.9, 1.1); p["ln2_b"] = u((e,))
    p["dec_w"] = u((DEC_OUT, e * seq_len))
    p["dec_b"] = jnp.zeros((DEC_OUT,), jnp.float32)

    def lin_bn(nin, nout):
        w = u((nout, nin)); b = u((nout,))
        g = u((nout,), 0.5, 1.5); beta = u((nout,))
        rm = u((nout,)); rv = u((nout,), 0.5, 1.5)
        return fold_linear_bn(w, b, g, beta, rm, rv)

    p["pred1"] = lin_bn(256, 100)
    p["pred2"] = lin_bn(100, 100)
    p["pred3"] = lin_bn(100, 10)
    p["pred4_w"] = u((1, 10)); p["pred4_b"] = u((1,))

    disc = []
    for cin, cout in [(1, 8), (8, 16), (16, 32), (32, 64)]:
        w = u((cout, cin, 3)); b = u((cout,))
        g = u((cout,), 0.5, 1.5); beta = u((cout,))
        rm = u((cout,)); rv = u((cout,), 0.5, 1.5)
        s, t = fold_conv_bn(b, g, beta, rm, rv)
        disc.append((w, s, t))
    p["disc"] = disc
    p["fc_w"] = u((1, 896)); p["fc_b"] = u((1,))
    return p


def prepare_params(p, seq_len, feature_size):
    """One-time layout prep: transpose weights, (1,N) biases, pad pred head, fold BN."""
    e = feature_size
    kp = {}
    wq, wk, wv = jnp.split(p["in_proj_w"], 3, axis=0)
    bq, bk, bv = jnp.split(p["in_proj_b"], 3)
    kp["wq"], kp["wk"], kp["wv"] = wq.T, wk.T, wv.T
    kp["bq"], kp["bk"], kp["bv"] = (x.reshape(1, e) for x in (bq, bk, bv))
    kp["wo"] = p["out_proj_w"].T; kp["bo"] = p["out_proj_b"].reshape(1, e)
    kp["ln1_g"] = p["ln1_g"].reshape(1, e); kp["ln1_b"] = p["ln1_b"].reshape(1, e)
    kp["ffn_w1"] = p["ffn_w1"].T; kp["ffn_b1"] = p["ffn_b1"].reshape(1, FFN_DIM)
    kp["ffn_w2"] = p["ffn_w2"].T; kp["ffn_b2"] = p["ffn_b2"].reshape(1, e)
    kp["ln2_g"] = p["ln2_g"].reshape(1, e); kp["ln2_b"] = p["ln2_b"].reshape(1, e)
    kp["wd"] = p["dec_w"].T; kp["bd"] = p["dec_b"].reshape(1, DEC_OUT)

    def pad_lin(w, b, nin_pad, nout_pad):
        nout, nin = w.shape
        wp = jnp.zeros((nin_pad, nout_pad), jnp.float32).at[:nin, :nout].set(w.T)
        bp = jnp.zeros((1, nout_pad), jnp.float32).at[0, :nout].set(b)
        return wp, bp

    kp["w1p"], kp["b1p"] = pad_lin(*p["pred1"], e * seq_len, PRED_PAD)
    kp["w2p"], kp["b2p"] = pad_lin(*p["pred2"], PRED_PAD, PRED_PAD)
    kp["w3p"], kp["b3p"] = pad_lin(*p["pred3"], PRED_PAD, PRED_PAD)
    kp["w4p"], kp["b4p"] = pad_lin(p["pred4_w"], p["pred4_b"], PRED_PAD, PRED_PAD)

    # discriminator: fold BN scale into conv weights; keep shift per-channel
    folded = [(w * s[:, None, None], t.reshape(-1, 1)) for (w, s, t) in p["disc"]]
    kp["dw1"] = folded[0][0][:, 0, :]                 # (8, 3)  (Cin = 1 squeezed)
    kp["dt1"] = folded[0][1]                          # (8, 1)
    for i, (wf, t) in enumerate(folded[1:], start=2):
        kp[f"dw{i}"] = jnp.transpose(wf, (2, 0, 1))   # (3, Cout, Cin)
        kp[f"dt{i}"] = t
    kp["wfc"] = p["fc_w"].reshape(64, 14)
    kp["bfc"] = p["fc_b"].reshape(1, 1)
    return kp


# ----------------------------------------------------------------------------
# Forward pass (matches TransAm.forward, eval-mode semantics)
# ----------------------------------------------------------------------------
def transam_forward(kp, src, alpha):
    del alpha  # ReverseLayerF: identity in forward (alpha only scales gradients)
    s_len, bsz, e = src.shape
    nh = NHEAD
    dh = e // nh
    hs = nh * s_len

    # ---- constants (folded by jit): PE table, causal mask, head/selection masks
    pos = jnp.arange(s_len, dtype=jnp.float32)[:, None]
    div = jnp.exp(jnp.arange(0, e, 2, dtype=jnp.float32) * (-math.log(10000.0) / e))
    pe = jnp.zeros((s_len, e), jnp.float32)
    pe = pe.at[:, 0::2].set(jnp.sin(pos * div))
    pe = pe.at[:, 1::2].set(jnp.cos(pos * div))

    causal = jnp.where(jnp.tril(jnp.ones((s_len, s_len), bool)),
                       0.0, -jnp.inf).astype(jnp.float32)
    cmask = jnp.tile(causal, (nh, 1))                                   # (H*S, S)
    hmask = (jnp.arange(hs)[:, None] // s_len
             == jnp.arange(e)[None, :] // dh).astype(jnp.float32)       # (H*S, E)
    selT = (jnp.arange(hs)[:, None] % s_len
            == jnp.arange(s_len)[None, :]).astype(jnp.float32)          # (H*S, S)
    sel = selT.T                                                        # (S, H*S)

    # layout plumbing outside the kernel: (S,B,E) -> (B,S,E)
    x_bse = jnp.transpose(src, (1, 0, 2))

    enc_ops = [x_bse, pe, cmask, hmask, selT, sel,
               kp["wq"], kp["bq"], kp["wk"], kp["bk"], kp["wv"], kp["bv"],
               kp["wo"], kp["bo"], kp["ln1_g"], kp["ln1_b"],
               kp["ffn_w1"], kp["ffn_b1"], kp["ffn_w2"], kp["ffn_b2"],
               kp["ln2_g"], kp["ln2_b"]]
    h2 = pl.pallas_call(
        functools.partial(_encoder_kernel, nhead=nh, eps=1e-5),
        grid=(bsz,),
        in_specs=[pl.BlockSpec((1, s_len, e), lambda b: (b, 0, 0))]
                 + [_const_spec(a) for a in enc_ops[1:]],
        out_specs=pl.BlockSpec((1, s_len, e), lambda b: (b, 0, 0)),
        out_shape=jax.ShapeDtypeStruct((bsz, s_len, e), jnp.float32),
        compiler_params=pltpu.CompilerParams(dimension_semantics=("parallel",)),
    )(*enc_ops)

    # encode input: permute(1,0,2).reshape(B,-1); B is already leading -> free reshape
    enc_in = h2.reshape(bsz, s_len * e)

    encode, pred_pad = pl.pallas_call(
        _head_kernel,
        out_shape=(jax.ShapeDtypeStruct((bsz, DEC_OUT), jnp.float32),
                   jax.ShapeDtypeStruct((bsz, PRED_PAD), jnp.float32)),
        in_specs=[_VMEM_SPEC] * 11,
        out_specs=(_VMEM_SPEC, _VMEM_SPEC),
    )(enc_in, kp["wd"], kp["bd"], kp["w1p"], kp["b1p"], kp["w2p"], kp["b2p"],
      kp["w3p"], kp["b3p"], kp["w4p"], kp["b4p"])
    pred_output = pred_pad[:, :1]                                       # (B, 1)

    # discriminator on gradient-reversed encode (identity in forward)
    d_in = encode.reshape(bsz, 1, DEC_OUT)
    disc_ops = [d_in, kp["dw1"], kp["dt1"], kp["dw2"], kp["dt2"],
                kp["dw3"], kp["dt3"], kp["dw4"], kp["dt4"], kp["wfc"], kp["bfc"]]
    dis = pl.pallas_call(
        _disc_kernel,
        grid=(bsz,),
        in_specs=[pl.BlockSpec((1, 1, DEC_OUT), lambda b: (b, 0, 0))]
                 + [_const_spec(a) for a in disc_ops[1:]],
        out_specs=pl.BlockSpec((1, 1, 1), lambda b: (b, 0, 0)),
        out_shape=jax.ShapeDtypeStruct((bsz, 1, 1), jnp.float32),
        compiler_params=pltpu.CompilerParams(dimension_semantics=("parallel",)),
    )(*disc_ops)
    dis_output = dis.reshape(bsz)

    return pred_output, dis_output, encode


# ----------------------------------------------------------------------------
if __name__ == "__main__":
    SEQ_LEN, FEATURE, BATCH = 16, 16, 2   # feature_size must be divisible by nhead=8
    key = jax.random.PRNGKey(0)
    k_param, k_src = jax.random.split(key)
    raw_params = init_params(k_param, SEQ_LEN, FEATURE)
    params = prepare_params(raw_params, SEQ_LEN, FEATURE)
    src = jax.random.normal(k_src, (SEQ_LEN, BATCH, FEATURE), jnp.float32)
    alpha = 0.5

    fwd = jax.jit(functools.partial(transam_forward, params))
    pred_output, dis_output, encode = fwd(src, alpha)
    jax.block_until_ready((pred_output, dis_output, encode))

    assert pred_output.shape == (BATCH, 1)
    assert dis_output.shape == (BATCH,)
    assert encode.shape == (BATCH, DEC_OUT)
    assert jnp.all(jnp.isfinite(pred_output))
    assert jnp.all(jnp.isfinite(dis_output))
    assert jnp.all(jnp.isfinite(encode))
    print("KERNEL_OK")
</pallas_src>

<mosaic_0001>
module attributes {stable_mosaic.version = 11 : i64} {
  func.func @_head_kernel(%arg0: memref<2x256xf32, #tpu.memory_space<vmem>>, %arg1: memref<256x256xf32, #tpu.memory_space<vmem>>, %arg2: memref<1x256xf32, #tpu.memory_space<vmem>>, %arg3: memref<256x128xf32, #tpu.memory_space<vmem>>, %arg4: memref<1x128xf32, #tpu.memory_space<vmem>>, %arg5: memref<128x128xf32, #tpu.memory_space<vmem>>, %arg6: memref<1x128xf32, #tpu.memory_space<vmem>>, %arg7: memref<128x128xf32, #tpu.memory_space<vmem>>, %arg8: memref<1x128xf32, #tpu.memory_space<vmem>>, %arg9: memref<128x128xf32, #tpu.memory_space<vmem>>, %arg10: memref<1x128xf32, #tpu.memory_space<vmem>>, %arg11: memref<2x256xf32, #tpu.memory_space<vmem>>, %arg12: memref<2x128xf32, #tpu.memory_space<vmem>>) attributes {dimension_semantics = [], scalar_prefetch = 0 : i64, scratch_operands = 0 : i64, tpu.core_type = #tpu.core_type<tc>} {
    %c0 = arith.constant 0 : index
    %c0_0 = arith.constant 0 : index
    %0 = vector.load %arg0[%c0, %c0_0] : memref<2x256xf32, #tpu.memory_space<vmem>>, vector<2x256xf32>
    %c0_1 = arith.constant 0 : index
    %c0_2 = arith.constant 0 : index
    %1 = vector.load %arg1[%c0_1, %c0_2] : memref<256x256xf32, #tpu.memory_space<vmem>>, vector<256x256xf32>
    %cst = arith.constant dense<0.000000e+00> : vector<2x256xf32>
    %2 = tpu.matmul %0, %1, %cst {dimension_numbers = #tpu.dot_dimension_numbers<[1], [0], [0], [1], [0, 0, 1, 1], [], []>} : vector<2x256xf32>, vector<256x256xf32>, vector<2x256xf32> -> vector<2x256xf32>
    %c0_3 = arith.constant 0 : index
    %c0_4 = arith.constant 0 : index
    %3 = vector.load %arg2[%c0_3, %c0_4] : memref<1x256xf32, #tpu.memory_space<vmem>>, vector<1x256xf32>
    %4 = vector.broadcast %3 : vector<1x256xf32> to vector<2x256xf32>
    %5 = arith.addf %2, %4 : vector<2x256xf32>
    %c0_5 = arith.constant 0 : index
    %c0_6 = arith.constant 0 : index
    %6 = vector.load %arg11[%c0_5, %c0_6] : memref<2x256xf32, #tpu.memory_space<vmem>>, vector<2x256xf32>
    tpu.vector_store %arg11[%c0_5, %c0_6], %5 {strides = array<i32>} : memref<2x256xf32, #tpu.memory_space<vmem>>, vector<2x256xf32>,
    %c0_7 = arith.constant 0 : index
    %c0_8 = arith.constant 0 : index
    %7 = vector.load %arg3[%c0_7, %c0_8] : memref<256x128xf32, #tpu.memory_space<vmem>>, vector<256x128xf32>
    %cst_9 = arith.constant dense<0.000000e+00> : vector<2x128xf32>
    %8 = tpu.matmul %5, %7, %cst_9 {dimension_numbers = #tpu.dot_dimension_numbers<[1], [0], [0], [1], [0, 0, 1, 1], [], []>} : vector<2x256xf32>, vector<256x128xf32>, vector<2x128xf32> -> vector<2x128xf32>
    %c0_10 = arith.constant 0 : index
    %c0_11 = arith.constant 0 : index
    %9 = vector.load %arg4[%c0_10, %c0_11] : memref<1x128xf32, #tpu.memory_space<vmem>>, vector<1x128xf32>
    %10 = vector.broadcast %9 : vector<1x128xf32> to vector<2x128xf32>
    %11 = arith.addf %8, %10 : vector<2x128xf32>
    %cst_12 = arith.constant 0.000000e+00 : f32
    %12 = vector.broadcast %cst_12 : f32 to vector<2x128xf32>
    %13 = arith.maximumf %11, %12 : vector<2x128xf32>
    %c0_13 = arith.constant 0 : index
    %c0_14 = arith.constant 0 : index
    %14 = vector.load %arg5[%c0_13, %c0_14] : memref<128x128xf32, #tpu.memory_space<vmem>>, vector<128x128xf32>
    %cst_15 = arith.constant dense<0.000000e+00> : vector<2x128xf32>
    %15 = tpu.matmul %13, %14, %cst_15 {dimension_numbers = #tpu.dot_dimension_numbers<[1], [0], [0], [1], [0, 0, 1, 1], [], []>} : vector<2x128xf32>, vector<128x128xf32>, vector<2x128xf32> -> vector<2x128xf32>
    %c0_16 = arith.constant 0 : index
    %c0_17 = arith.constant 0 : index
    %16 = vector.load %arg6[%c0_16, %c0_17] : memref<1x128xf32, #tpu.memory_space<vmem>>, vector<1x128xf32>
    %17 = vector.broadcast %16 : vector<1x128xf32> to vector<2x128xf32>
    %18 = arith.addf %15, %17 : vector<2x128xf32>
    %cst_18 = arith.constant 0.000000e+00 : f32
    %19 = vector.broadcast %cst_18 : f32 to vector<2x128xf32>
    %20 = arith.maximumf %18, %19 : vector<2x128xf32>
    %c0_19 = arith.constant 0 : index
    %c0_20 = arith.constant 0 : index
    %21 = vector.load %arg7[%c0_19, %c0_20] : memref<128x128xf32, #tpu.memory_space<vmem>>, vector<128x128xf32>
    %cst_21 = arith.constant dense<0.000000e+00> : vector<2x128xf32>
    %22 = tpu.matmul %20, %21, %cst_21 {dimension_numbers = #tpu.dot_dimension_numbers<[1], [0], [0], [1], [0, 0, 1, 1], [], []>} : vector<2x128xf32>, vector<128x128xf32>, vector<2x128xf32> -> vector<2x128xf32>
    %c0_22 = arith.constant 0 : index
    %c0_23 = arith.constant 0 : index
    %23 = vector.load %arg8[%c0_22, %c0_23] : memref<1x128xf32, #tpu.memory_space<vmem>>, vector<1x128xf32>
    %24 = vector.broadcast %23 : vector<1x128xf32> to vector<2x128xf32>
    %25 = arith.addf %22, %24 : vector<2x128xf32>
    %cst_24 = arith.constant 0.000000e+00 : f32
    %26 = vector.broadcast %cst_24 : f32 to vector<2x128xf32>
    %27 = arith.maximumf %25, %26 : vector<2x128xf32>
    %c0_25 = arith.constant 0 : index
    %c0_26 = arith.constant 0 : index
    %28 = vector.load %arg9[%c0_25, %c0_26] : memref<128x128xf32, #tpu.memory_space<vmem>>, vector<128x128xf32>
    %cst_27 = arith.constant dense<0.000000e+00> : vector<2x128xf32>
    %29 = tpu.matmul %27, %28, %cst_27 {dimension_numbers = #tpu.dot_dimension_numbers<[1], [0], [0], [1], [0, 0, 1, 1], [], []>} : vector<2x128xf32>, vector<128x128xf32>, vector<2x128xf32> -> vector<2x128xf32>
    %c0_28 = arith.constant 0 : index
    %c0_29 = arith.constant 0 : index
    %30 = vector.load %arg10[%c0_28, %c0_29] : memref<1x128xf32, #tpu.memory_space<vmem>>, vector<1x128xf32>
    %31 = vector.broadcast %30 : vector<1x128xf32> to vector<2x128xf32>
    %32 = arith.addf %29, %31 : vector<2x128xf32>
    %c0_30 = arith.constant 0 : index
    %c0_31 = arith.constant 0 : index
    %33 = vector.load %arg12[%c0_30, %c0_31] : memref<2x128xf32, #tpu.memory_space<vmem>>, vector<2x128xf32>
    tpu.vector_store %arg12[%c0_30, %c0_31], %32 {strides = array<i32>} : memref<2x128xf32, #tpu.memory_space<vmem>>, vector<2x128xf32>,
    return
  }
}

module attributes {stable_mosaic.version = 11 : i64} {
  func.func @_encoder_kernel(%arg0: i32, %arg1: memref<1x16x16xf32, #tpu.memory_space<vmem>>, %arg2: memref<16x16xf32, #tpu.memory_space<vmem>>, %arg3: memref<128x16xf32, #tpu.memory_space<vmem>>, %arg4: memref<128x16xf32, #tpu.memory_space<vmem>>, %arg5: memref<128x16xf32, #tpu.memory_space<vmem>>, %arg6: memref<16x128xf32, #tpu.memory_space<vmem>>, %arg7: memref<16x16xf32, #tpu.memory_space<vmem>>, %arg8: memref<1x16xf32, #tpu.memory_space<vmem>>, %arg9: memref<16x16xf32, #tpu.memory_space<vmem>>, %arg10: memref<1x16xf32, #tpu.memory_space<vmem>>, %arg11: memref<16x16xf32, #tpu.memory_space<vmem>>, %arg12: memref<1x16xf32, #tpu.memory_space<vmem>>, %arg13: memref<16x16xf32, #tpu.memory_space<vmem>>, %arg14: memref<1x16xf32, #tpu.memory_space<vmem>>, %arg15: memref<1x16xf32, #tpu.memory_space<vmem>>, %arg16: memref<1x16xf32, #tpu.memory_space<vmem>>, %arg17: memref<16x2048xf32, #tpu.memory_space<vmem>>, %arg18: memref<1x2048xf32, #tpu.memory_space<vmem>>, %arg19: memref<2048x16xf32, #tpu.memory_space<vmem>>, %arg20: memref<1x16xf32, #tpu.memory_space<vmem>>, %arg21: memref<1x16xf32, #tpu.memory_space<vmem>>, %arg22: memref<1x16xf32, #tpu.memory_space<vmem>>, %arg23: memref<1x16x16xf32, #tpu.memory_space<vmem>>) attributes {dimension_semantics = [#tpu.dimension_semantics<parallel>], iteration_bounds = array<i64: 2>, scalar_prefetch = 0 : i64, scratch_operands = 0 : i64, tpu.core_type = #tpu.core_type<tc>, window_params = [{transform_indices = @transform_0, window_bounds = array<i64: 1, 16, 16>}, {pipeline_mode = #tpu.pipeline_mode<synchronous>, transform_indices = @transform_1, window_bounds = array<i64: 16, 16>}, {pipeline_mode = #tpu.pipeline_mode<synchronous>, transform_indices = @transform_2, window_bounds = array<i64: 128, 16>}, {pipeline_mode = #tpu.pipeline_mode<synchronous>, transform_indices = @transform_3, window_bounds = array<i64: 128, 16>}, {pipeline_mode = #tpu.pipeline_mode<synchronous>, transform_indices = @transform_4, window_bounds = array<i64: 128, 16>}, {pipeline_mode = #tpu.pipeline_mode<synchronous>, transform_indices = @transform_5, window_bounds = array<i64: 16, 128>}, {pipeline_mode = #tpu.pipeline_mode<synchronous>, transform_indices = @transform_6, window_bounds = array<i64: 16, 16>}, {pipeline_mode = #tpu.pipeline_mode<synchronous>, transform_indices = @transform_7, window_bounds = array<i64: 1, 16>}, {pipeline_mode = #tpu.pipeline_mode<synchronous>, transform_indices = @transform_8, window_bounds = array<i64: 16, 16>}, {pipeline_mode = #tpu.pipeline_mode<synchronous>, transform_indices = @transform_9, window_bounds = array<i64: 1, 16>}, {pipeline_mode = #tpu.pipeline_mode<synchronous>, transform_indices = @transform_10, window_bounds = array<i64: 16, 16>}, {pipeline_mode = #tpu.pipeline_mode<synchronous>, transform_indices = @transform_11, window_bounds = array<i64: 1, 16>}, {pipeline_mode = #tpu.pipeline_mode<synchronous>, transform_indices = @transform_12, window_bounds = array<i64: 16, 16>}, {pipeline_mode = #tpu.pipeline_mode<synchronous>, transform_indices = @transform_13, window_bounds = array<i64: 1, 16>}, {pipeline_mode = #tpu.pipeline_mode<synchronous>, transform_indices = @transform_14, window_bounds = array<i64: 1, 16>}, {pipeline_mode = #tpu.pipeline_mode<synchronous>, transform_indices = @transform_15, window_bounds = array<i64: 1, 16>}, {pipeline_mode = #tpu.pipeline_mode<synchronous>, transform_indices = @transform_16, window_bounds = array<i64: 16, 2048>}, {pipeline_mode = #tpu.pipeline_mode<synchronous>, transform_indices = @transform_17, window_bounds = array<i64: 1, 2048>}, {pipeline_mode = #tpu.pipeline_mode<synchronous>, transform_indices = @transform_18, window_bounds = array<i64: 2048, 16>}, {pipeline_mode = #tpu.pipeline_mode<synchronous>, transform_indices = @transform_19, window_bounds = array<i64: 1, 16>}, {pipeline_mode = #tpu.pipeline_mode<synchronous>, transform_indices = @transform_20, window_bounds = array<i64: 1, 16>}, {pipeline_mode = #tpu.pipeline_mode<synchronous>, transform_indices = @transform_21, window_bounds = array<i64: 1, 16>}, {transform_indices = @transform_22, window_bounds = array<i64: 1, 16, 16>}]} {
    %c0 = arith.constant 0 : index
    %c0_0 = arith.constant 0 : index
    %c0_1 = arith.constant 0 : index
    %0 = vector.load %arg1[%c0, %c0_0, %c0_1] : memref<1x16x16xf32, #tpu.memory_space<vmem>>, vector<1x16x16xf32>
    %1 = vector.shape_cast %0 : vector<1x16x16xf32> to vector<16x16xf32>
    %c0_2 = arith.constant 0 : index
    %c0_3 = arith.constant 0 : index
    %2 = vector.load %arg2[%c0_2, %c0_3] : memref<16x16xf32, #tpu.memory_space<vmem>>, vector<16x16xf32>
    %3 = arith.addf %1, %2 : vector<16x16xf32>
    %c0_4 = arith.constant 0 : index
    %c0_5 = arith.constant 0 : index
    %4 = vector.load %arg7[%c0_4, %c0_5] : memref<16x16xf32, #tpu.memory_space<vmem>>, vector<16x16xf32>
    %cst = arith.constant dense<0.000000e+00> : vector<16x16xf32>
    %5 = tpu.matmul %3, %4, %cst {dimension_numbers = #tpu.dot_dimension_numbers<[1], [0], [0], [1], [0, 0, 1, 1], [], []>} : vector<16x16xf32>, vector<16x16xf32>, vector<16x16xf32> -> vector<16x16xf32>
    %c0_6 = arith.constant 0 : index
    %c0_7 = arith.constant 0 : index
    %6 = vector.load %arg8[%c0_6, %c0_7] : memref<1x16xf32, #tpu.memory_space<vmem>>, vector<1x16xf32>
    %7 = vector.broadcast %6 : vector<1x16xf32> to vector<16x16xf32>
    %8 = arith.addf %5, %7 : vector<16x16xf32>
    %c0_8 = arith.constant 0 : index
    %c0_9 = arith.constant 0 : index
    %9 = vector.load %arg9[%c0_8, %c0_9] : memref<16x16xf32, #tpu.memory_space<vmem>>, vector<16x16xf32>
    %cst_10 = arith.constant dense<0.000000e+00> : vector<16x16xf32>
    %10 = tpu.matmul %3, %9, %cst_10 {dimension_numbers = #tpu.dot_dimension_numbers<[1], [0], [0], [1], [0, 0, 1, 1], [], []>} : vector<16x16xf32>, vector<16x16xf32>, vector<16x16xf32> -> vector<16x16xf32>
    %c0_11 = arith.constant 0 : index
    %c0_12 = arith.constant 0 : index
    %11 = vector.load %arg10[%c0_11, %c0_12] : memref<1x16xf32, #tpu.memory_space<vmem>>, vector<1x16xf32>
    %12 = vector.broadcast %11 : vector<1x16xf32> to vector<16x16xf32>
    %13 = arith.addf %10, %12 : vector<16x16xf32>
    %c0_13 = arith.constant 0 : index
    %c0_14 = arith.constant 0 : index
    %14 = vector.load %arg11[%c0_13, %c0_14] : memref<16x16xf32, #tpu.memory_space<vmem>>, vector<16x16xf32>
    %cst_15 = arith.constant dense<0.000000e+00> : vector<16x16xf32>
    %15 = tpu.matmul %3, %14, %cst_15 {dimension_numbers = #tpu.dot_dimension_numbers<[1], [0], [0], [1], [0, 0, 1, 1], [], []>} : vector<16x16xf32>, vector<16x16xf32>, vector<16x16xf32> -> vector<16x16xf32>
    %c0_16 = arith.constant 0 : index
    %c0_17 = arith.constant 0 : index
    %16 = vector.load %arg12[%c0_16, %c0_17] : memref<1x16xf32, #tpu.memory_space<vmem>>, vector<1x16xf32>
    %17 = vector.broadcast %16 : vector<1x16xf32> to vector<16x16xf32>
    %18 = arith.addf %15, %17 : vector<16x16xf32>
    %c0_18 = arith.constant 0 : index
    %c0_19 = arith.constant 0 : index
    %19 = vector.load %arg4[%c0_18, %c0_19] : memref<128x16xf32, #tpu.memory_space<vmem>>, vector<128x16xf32>
    %c0_20 = arith.constant 0 : index
    %c0_21 = arith.constant 0 : index
    %20 = vector.load %arg5[%c0_20, %c0_21] : memref<128x16xf32, #tpu.memory_space<vmem>>, vector<128x16xf32>
    %cst_22 = arith.constant dense<0.000000e+00> : vector<128x16xf32>
    %21 = tpu.matmul %20, %8, %cst_22 {dimension_numbers = #tpu.dot_dimension_numbers<[1], [0], [0], [1], [0, 0, 1, 1], [], []>} : vector<128x16xf32>, vector<16x16xf32>, vector<128x16xf32> -> vector<128x16xf32>
    %22 = arith.mulf %21, %19 : vector<128x16xf32>
    %cst_23 = arith.constant dense<0.000000e+00> : vector<128x16xf32>
    %23 = tpu.matmul %22, %13, %cst_23 {dimension_numbers = #tpu.dot_dimension_numbers<[1], [1], [0], [0], [0, 0, 1, 0], [], []>} : vector<128x16xf32>, vector<16x16xf32>, vector<128x16xf32> -> vector<128x16xf32>
    %cst_24 = arith.constant 0.707106769 : f32
    %24 = vector.broadcast %cst_24 : f32 to vector<128x16xf32>
    %25 = arith.mulf %23, %24 : vector<128x16xf32>
    %c0_25 = arith.constant 0 : index
    %c0_26 = arith.constant 0 : index
    %26 = vector.load %arg3[%c0_25, %c0_26] : memref<128x16xf32, #tpu.memory_space<vmem>>, vector<128x16xf32>
    %27 = arith.addf %25, %26 : vector<128x16xf32>
    %cst_27 = arith.constant dense<0xFF800000> : vector<128xf32>
    %28 = vector.multi_reduction <maximumf>, %27, %cst_27 [1] : vector<128x16xf32> to vector<128xf32>
    %29 = vector.shape_cast %28 : vector<128xf32> to vector<128x1xf32>
    %30 = vector.broadcast %29 : vector<128x1xf32> to vector<128x16xf32>
    %31 = arith.subf %27, %30 : vector<128x16xf32>
    %32 = math.exp %31 : vector<128x16xf32>
    %cst_28 = arith.constant dense<0.000000e+00> : vector<128xf32>
    %33 = vector.multi_reduction <add>, %32, %cst_28 [1] : vector<128x16xf32> to vector<128xf32>
    %34 = vector.shape_cast %33 : vector<128xf32> to vector<128x1xf32>
    %35 = vector.broadcast %34 : vector<128x1xf32> to vector<128x16xf32>
    %36 = arith.divf %32, %35 : vector<128x16xf32>
    %cst_29 = arith.constant dense<0.000000e+00> : vector<128x16xf32>
    %37 = tpu.matmul %36, %18, %cst_29 {dimension_numbers = #tpu.dot_dimension_numbers<[1], [0], [0], [1], [0, 0, 1, 1], [], []>} : vector<128x16xf32>, vector<16x16xf32>, vector<128x16xf32> -> vector<128x16xf32>
    %38 = arith.mulf %37, %19 : vector<128x16xf32>
    %c0_30 = arith.constant 0 : index
    %c0_31 = arith.constant 0 : index
    %39 = vector.load %arg6[%c0_30, %c0_31] : memref<16x128xf32, #tpu.memory_space<vmem>>, vector<16x128xf32>
    %cst_32 = arith.constant dense<0.000000e+00> : vector<16x16xf32>
    %40 = tpu.matmul %39, %38, %cst_32 {dimension_numbers = #tpu.dot_dimension_numbers<[1], [0], [0], [1], [0, 0, 1, 1], [], []>} : vector<16x128xf32>, vector<128x16xf32>, vector<16x16xf32> -> vector<16x16xf32>
    %c0_33 = arith.constant 0 : index
    %c0_34 = arith.constant 0 : index
    %41 = vector.load %arg13[%c0_33, %c0_34] : memref<16x16xf32, #tpu.memory_space<vmem>>, vector<16x16xf32>
    %cst_35 = arith.constant dense<0.000000e+00> : vector<16x16xf32>
    %42 = tpu.matmul %40, %41, %cst_35 {dimension_numbers = #tpu.dot_dimension_numbers<[1], [0], [0], [1], [0, 0, 1, 1], [], []>} : vector<16x16xf32>, vector<16x16xf32>, vector<16x16xf32> -> vector<16x16xf32>
    %c0_36 = arith.constant 0 : index
    %c0_37 = arith.constant 0 : index
    %43 = vector.load %arg14[%c0_36, %c0_37] : memref<1x16xf32, #tpu.memory_space<vmem>>, vector<1x16xf32>
    %44 = vector.broadcast %43 : vector<1x16xf32> to vector<16x16xf32>
    %45 = arith.addf %42, %44 : vector<16x16xf32>
    %46 = arith.addf %3, %45 : vector<16x16xf32>
    %c0_38 = arith.constant 0 : index
    %c0_39 = arith.constant 0 : index
    %47 = vector.load %arg15[%c0_38, %c0_39] : memref<1x16xf32, #tpu.memory_space<vmem>>, vector<1x16xf32>
    %c0_40 = arith.constant 0 : index
    %c0_41 = arith.constant 0 : index
    %48 = vector.load %arg16[%c0_40, %c0_41] : memref<1x16xf32, #tpu.memory_space<vmem>>, vector<1x16xf32>
    %cst_42 = arith.constant dense<0.000000e+00> : vector<16xf32>
    %49 = vector.multi_reduction <add>, %46, %cst_42 [1] : vector<16x16xf32> to vector<16xf32>
    %50 = vector.shape_cast %49 : vector<16xf32> to vector<16x1xf32>
    %cst_43 = arith.constant 1.600000e+01 : f32
    %51 = vector.broadcast %cst_43 : f32 to vector<16x1xf32>
    %52 = arith.divf %50, %51 : vector<16x1xf32>
    %53 = vector.broadcast %52 : vector<16x1xf32> to vector<16x16xf32>
    %54 = arith.subf %46, %53 : vector<16x16xf32>
    %55 = arith.mulf %54, %54 : vector<16x16xf32>
    %cst_44 = arith.constant dense<0.000000e+00> : vector<16xf32>
    %56 = vector.multi_reduction <add>, %55, %cst_44 [1] : vector<16x16xf32> to vector<16xf32>
    %57 = vector.shape_cast %56 : vector<16xf32> to vector<16x1xf32>
    %cst_45 = arith.constant 1.600000e+01 : f32
    %58 = vector.broadcast %cst_45 : f32 to vector<16x1xf32>
    %59 = arith.divf %57, %58 : vector<16x1xf32>
    %cst_46 = arith.constant 9.99999974E-6 : f32
    %60 = vector.broadcast %cst_46 : f32 to vector<16x1xf32>
    %61 = arith.addf %59, %60 : vector<16x1xf32>
    %62 = math.rsqrt %61 : vector<16x1xf32>
    %63 = vector.broadcast %62 : vector<16x1xf32> to vector<16x16xf32>
    %64 = arith.mulf %54, %63 : vector<16x16xf32>
    %65 = vector.broadcast %47 : vector<1x16xf32> to vector<16x16xf32>
    %66 = arith.mulf %64, %65 : vector<16x16xf32>
    %67 = vector.broadcast %48 : vector<1x16xf32> to vector<16x16xf32>
    %68 = arith.addf %66, %67 : vector<16x16xf32>
    %c0_47 = arith.constant 0 : index
    %c0_48 = arith.constant 0 : index
    %69 = vector.load %arg17[%c0_47, %c0_48] : memref<16x2048xf32, #tpu.memory_space<vmem>>, vector<16x2048xf32>
    %cst_49 = arith.constant dense<0.000000e+00> : vector<16x2048xf32>
    %70 = tpu.matmul %68, %69, %cst_49 {dimension_numbers = #tpu.dot_dimension_numbers<[1], [0], [0], [1], [0, 0, 1, 1], [], []>} : vector<16x16xf32>, vector<16x2048xf32>, vector<16x2048xf32> -> vector<16x2048xf32>
    %c0_50 = arith.constant 0 : index
    %c0_51 = arith.constant 0 : index
    %71 = vector.load %arg18[%c0_50, %c0_51] : memref<1x2048xf32, #tpu.memory_space<vmem>>, vector<1x2048xf32>
    %72 = vector.broadcast %71 : vector<1x2048xf32> to vector<16x2048xf32>
    %73 = arith.addf %70, %72 : vector<16x2048xf32>
    %cst_52 = arith.constant 0.000000e+00 : f32
    %74 = vector.broadcast %cst_52 : f32 to vector<16x2048xf32>
    %75 = arith.maximumf %73, %74 : vector<16x2048xf32>
    %c0_53 = arith.constant 0 : index
    %c0_54 = arith.constant 0 : index
    %76 = vector.load %arg19[%c0_53, %c0_54] : memref<2048x16xf32, #tpu.memory_space<vmem>>, vector<2048x16xf32>
    %cst_55 = arith.constant dense<0.000000e+00> : vector<16x16xf32>
    %77 = tpu.matmul %75, %76, %cst_55 {dimension_numbers = #tpu.dot_dimension_numbers<[1], [0], [0], [1], [0, 0, 1, 1], [], []>} : vector<16x2048xf32>, vector<2048x16xf32>, vector<16x16xf32> -> vector<16x16xf32>
    %c0_56 = arith.constant 0 : index
    %c0_57 = arith.constant 0 : index
    %78 = vector.load %arg20[%c0_56, %c0_57] : memref<1x16xf32, #tpu.memory_space<vmem>>, vector<1x16xf32>
    %79 = vector.broadcast %78 : vector<1x16xf32> to vector<16x16xf32>
    %80 = arith.addf %77, %79 : vector<16x16xf32>
    %81 = arith.addf %68, %80 : vector<16x16xf32>
    %c0_58 = arith.constant 0 : index
    %c0_59 = arith.constant 0 : index
    %82 = vector.load %arg21[%c0_58, %c0_59] : memref<1x16xf32, #tpu.memory_space<vmem>>, vector<1x16xf32>
    %c0_60 = arith.constant 0 : index
    %c0_61 = arith.constant 0 : index
    %83 = vector.load %arg22[%c0_60, %c0_61] : memref<1x16xf32, #tpu.memory_space<vmem>>, vector<1x16xf32>
    %cst_62 = arith.constant dense<0.000000e+00> : vector<16xf32>
    %84 = vector.multi_reduction <add>, %81, %cst_62 [1] : vector<16x16xf32> to vector<16xf32>
    %85 = vector.shape_cast %84 : vector<16xf32> to vector<16x1xf32>
    %cst_63 = arith.constant 1.600000e+01 : f32
    %86 = vector.broadcast %cst_63 : f32 to vector<16x1xf32>
    %87 = arith.divf %85, %86 : vector<16x1xf32>
    %88 = vector.broadcast %87 : vector<16x1xf32> to vector<16x16xf32>
    %89 = arith.subf %81, %88 : vector<16x16xf32>
    %90 = arith.mulf %89, %89 : vector<16x16xf32>
    %cst_64 = arith.constant dense<0.000000e+00> : vector<16xf32>
    %91 = vector.multi_reduction <add>, %90, %cst_64 [1] : vector<16x16xf32> to vector<16xf32>
    %92 = vector.shape_cast %91 : vector<16xf32> to vector<16x1xf32>
    %cst_65 = arith.constant 1.600000e+01 : f32
    %93 = vector.broadcast %cst_65 : f32 to vector<16x1xf32>
    %94 = arith.divf %92, %93 : vector<16x1xf32>
    %cst_66 = arith.constant 9.99999974E-6 : f32
    %95 = vector.broadcast %cst_66 : f32 to vector<16x1xf32>
    %96 = arith.addf %94, %95 : vector<16x1xf32>
    %97 = math.rsqrt %96 : vector<16x1xf32>
    %98 = vector.broadcast %97 : vector<16x1xf32> to vector<16x16xf32>
    %99 = arith.mulf %89, %98 : vector<16x16xf32>
    %100 = vector.broadcast %82 : vector<1x16xf32> to vector<16x16xf32>
    %101 = arith.mulf %99, %100 : vector<16x16xf32>
    %102 = vector.broadcast %83 : vector<1x16xf32> to vector<16x16xf32>
    %103 = arith.addf %101, %102 : vector<16x16xf32>
    %c0_67 = arith.constant 0 : index
    %c0_68 = arith.constant 0 : index
    %c0_69 = arith.constant 0 : index
    %104 = vector.load %arg23[%c0_67, %c0_68, %c0_69] : memref<1x16x16xf32, #tpu.memory_space<vmem>>, vector<1x16x16xf32>
    %105 = vector.shape_cast %104 : vector<1x16x16xf32> to vector<16x16xf32>
    %106 = vector.shape_cast %103 : vector<16x16xf32> to vector<1x16x16xf32>
    tpu.vector_store %arg23[%c0_67, %c0_68, %c0_69], %106 {strides = array<i32>} : memref<1x16x16xf32, #tpu.memory_space<vmem>>, vector<1x16x16xf32>,
    return
  }
  func.func @transform_0(%arg0: i32) -> (i32, i32, i32) {
    %c0_i32 = arith.constant 0 : i32
    %c0_i32_0 = arith.constant 0 : i32
    %c0_i32_1 = arith.constant 0 : i32
    return %arg0, %c0_i32, %c0_i32_0 : i32, i32, i32
  }
  func.func @transform_1(%arg0: i32) -> (i32, i32) {
    %c0_i32 = arith.constant 0 : i32
    %c0_i32_0 = arith.constant 0 : i32
    %c0_i32_1 = arith.constant 0 : i32
    return %c0_i32, %c0_i32_0 : i32, i32
  }
  func.func @transform_2(%arg0: i32) -> (i32, i32) {
    %c0_i32 = arith.constant 0 : i32
    %c0_i32_0 = arith.constant 0 : i32
    %c0_i32_1 = arith.constant 0 : i32
    return %c0_i32, %c0_i32_0 : i32, i32
  }
  func.func @transform_3(%arg0: i32) -> (i32, i32) {
    %c0_i32 = arith.constant 0 : i32
    %c0_i32_0 = arith.constant 0 : i32
    %c0_i32_1 = arith.constant 0 : i32
    return %c0_i32, %c0_i32_0 : i32, i32
  }
  func.func @transform_4(%arg0: i32) -> (i32, i32) {
    %c0_i32 = arith.constant 0 : i32
    %c0_i32_0 = arith.constant 0 : i32
    %c0_i32_1 = arith.constant 0 : i32
    return %c0_i32, %c0_i32_0 : i32, i32
  }
  func.func @transform_5(%arg0: i32) -> (i32, i32) {
    %c0_i32 = arith.constant 0 : i32
    %c0_i32_0 = arith.constant 0 : i32
    %c0_i32_1 = arith.constant 0 : i32
    return %c0_i32, %c0_i32_0 : i32, i32
  }
  func.func @transform_6(%arg0: i32) -> (i32, i32) {
    %c0_i32 = arith.constant 0 : i32
    %c0_i32_0 = arith.constant 0 : i32
    %c0_i32_1 = arith.constant 0 : i32
    return %c0_i32, %c0_i32_0 : i32, i32
  }
  func.func @transform_7(%arg0: i32) -> (i32, i32) {
    %c0_i32 = arith.constant 0 : i32
    %c0_i32_0 = arith.constant 0 : i32
    %c0_i32_1 = arith.constant 0 : i32
    return %c0_i32, %c0_i32_0 : i32, i32
  }
  func.func @transform_8(%arg0: i32) -> (i32, i32) {
    %c0_i32 = arith.constant 0 : i32
    %c0_i32_0 = arith.constant 0 : i32
    %c0_i32_1 = arith.constant 0 : i32
    return %c0_i32, %c0_i32_0 : i32, i32
  }
  func.func @transform_9(%arg0: i32) -> (i32, i32) {
    %c0_i32 = arith.constant 0 : i32
    %c0_i32_0 = arith.constant 0 : i32
    %c0_i32_1 = arith.constant 0 : i32
    return %c0_i32, %c0_i32_0 : i32, i32
  }
  func.func @transform_10(%arg0: i32) -> (i32, i32) {
    %c0_i32 = arith.constant 0 : i32
    %c0_i32_0 = arith.constant 0 : i32
    %c0_i32_1 = arith.constant 0 : i32
    return %c0_i32, %c0_i32_0 : i32, i32
  }
  func.func @transform_11(%arg0: i32) -> (i32, i32) {
    %c0_i32 = arith.constant 0 : i32
    %c0_i32_0 = arith.constant 0 : i32
    %c0_i32_1 = arith.constant 0 : i32
    return %c0_i32, %c0_i32_0 : i32, i32
  }
  func.func @transform_12(%arg0: i32) -> (i32, i32) {
    %c0_i32 = arith.constant 0 : i32
    %c0_i32_0 = arith.constant 0 : i32
    %c0_i32_1 = arith.constant 0 : i32
    return %c0_i32, %c0_i32_0 : i32, i32
  }
  func.func @transform_13(%arg0: i32) -> (i32, i32) {
    %c0_i32 = arith.constant 0 : i32
    %c0_i32_0 = arith.constant 0 : i32
    %c0_i32_1 = arith.constant 0 : i32
    return %c0_i32, %c0_i32_0 : i32, i32
  }
  func.func @transform_14(%arg0: i32) -> (i32, i32) {
    %c0_i32 = arith.constant 0 : i32
    %c0_i32_0 = arith.constant 0 : i32
    %c0_i32_1 = arith.constant 0 : i32
    return %c0_i32, %c0_i32_0 : i32, i32
  }
  func.func @transform_15(%arg0: i32) -> (i32, i32) {
    %c0_i32 = arith.constant 0 : i32
    %c0_i32_0 = arith.constant 0 : i32
    %c0_i32_1 = arith.constant 0 : i32
    return %c0_i32, %c0_i32_0 : i32, i32
  }
  func.func @transform_16(%arg0: i32) -> (i32, i32) {
    %c0_i32 = arith.constant 0 : i32
    %c0_i32_0 = arith.constant 0 : i32
    %c0_i32_1 = arith.constant 0 : i32
    return %c0_i32, %c0_i32_0 : i32, i32
  }
  func.func @transform_17(%arg0: i32) -> (i32, i32) {
    %c0_i32 = arith.constant 0 : i32
    %c0_i32_0 = arith.constant 0 : i32
    %c0_i32_1 = arith.constant 0 : i32
    return %c0_i32, %c0_i32_0 : i32, i32
  }
  func.func @transform_18(%arg0: i32) -> (i32, i32) {
    %c0_i32 = arith.constant 0 : i32
    %c0_i32_0 = arith.constant 0 : i32
    %c0_i32_1 = arith.constant 0 : i32
    return %c0_i32, %c0_i32_0 : i32, i32
  }
  func.func @transform_19(%arg0: i32) -> (i32, i32) {
    %c0_i32 = arith.constant 0 : i32
    %c0_i32_0 = arith.constant 0 : i32
    %c0_i32_1 = arith.constant 0 : i32
    return %c0_i32, %c0_i32_0 : i32, i32
  }
  func.func @transform_20(%arg0: i32) -> (i32, i32) {
    %c0_i32 = arith.constant 0 : i32
    %c0_i32_0 = arith.constant 0 : i32
    %c0_i32_1 = arith.constant 0 : i32
    return %c0_i32, %c0_i32_0 : i32, i32
  }
  func.func @transform_21(%arg0: i32) -> (i32, i32) {
    %c0_i32 = arith.constant 0 : i32
    %c0_i32_0 = arith.constant 0 : i32
    %c0_i32_1 = arith.constant 0 : i32
    return %c0_i32, %c0_i32_0 : i32, i32
  }
  func.func @transform_22(%arg0: i32) -> (i32, i32, i32) {
    %c0_i32 = arith.constant 0 : i32
    %c0_i32_0 = arith.constant 0 : i32
    %c0_i32_1 = arith.constant 0 : i32
    return %arg0, %c0_i32, %c0_i32_0 : i32, i32, i32
  }
}

module attributes {stable_mosaic.version = 11 : i64} {
  func.func @_disc_kernel(%arg0: i32, %arg1: memref<1x1x256xf32, #tpu.memory_space<vmem>>, %arg2: memref<8x3xf32, #tpu.memory_space<vmem>>, %arg3: memref<8x1xf32, #tpu.memory_space<vmem>>, %arg4: memref<3x16x8xf32, #tpu.memory_space<vmem>>, %arg5: memref<16x1xf32, #tpu.memory_space<vmem>>, %arg6: memref<3x32x16xf32, #tpu.memory_space<vmem>>, %arg7: memref<32x1xf32, #tpu.memory_space<vmem>>, %arg8: memref<3x64x32xf32, #tpu.memory_space<vmem>>, %arg9: memref<64x1xf32, #tpu.memory_space<vmem>>, %arg10: memref<64x14xf32, #tpu.memory_space<vmem>>, %arg11: memref<1x1xf32, #tpu.memory_space<vmem>>, %arg12: memref<1x1x1xf32, #tpu.memory_space<vmem>>) attributes {dimension_semantics = [#tpu.dimension_semantics<parallel>], iteration_bounds = array<i64: 2>, scalar_prefetch = 0 : i64, scratch_operands = 0 : i64, tpu.core_type = #tpu.core_type<tc>, window_params = [{transform_indices = @transform_0, window_bounds = array<i64: 1, 1, 256>}, {pipeline_mode = #tpu.pipeline_mode<synchronous>, transform_indices = @transform_1, window_bounds = array<i64: 8, 3>}, {pipeline_mode = #tpu.pipeline_mode<synchronous>, transform_indices = @transform_2, window_bounds = array<i64: 8, 1>}, {pipeline_mode = #tpu.pipeline_mode<synchronous>, transform_indices = @transform_3, window_bounds = array<i64: 3, 16, 8>}, {pipeline_mode = #tpu.pipeline_mode<synchronous>, transform_indices = @transform_4, window_bounds = array<i64: 16, 1>}, {pipeline_mode = #tpu.pipeline_mode<synchronous>, transform_indices = @transform_5, window_bounds = array<i64: 3, 32, 16>}, {pipeline_mode = #tpu.pipeline_mode<synchronous>, transform_indices = @transform_6, window_bounds = array<i64: 32, 1>}, {pipeline_mode = #tpu.pipeline_mode<synchronous>, transform_indices = @transform_7, window_bounds = array<i64: 3, 64, 32>}, {pipeline_mode = #tpu.pipeline_mode<synchronous>, transform_indices = @transform_8, window_bounds = array<i64: 64, 1>}, {pipeline_mode = #tpu.pipeline_mode<synchronous>, transform_indices = @transform_9, window_bounds = array<i64: 64, 14>}, {pipeline_mode = #tpu.pipeline_mode<synchronous>, transform_indices = @transform_10, window_bounds = array<i64: 1, 1>}, {transform_indices = @transform_11, window_bounds = array<i64: 1, 1, 1>}]} {
    %c0 = arith.constant 0 : index
    %c0_0 = arith.constant 0 : index
    %c0_1 = arith.constant 0 : index
    %0 = vector.load %arg1[%c0, %c0_0, %c0_1] : memref<1x1x256xf32, #tpu.memory_space<vmem>>, vector<1x1x256xf32>
    %1 = vector.shape_cast %0 : vector<1x1x256xf32> to vector<1x256xf32>
    %c0_2 = arith.constant 0 : index
    %c0_3 = arith.constant 0 : index
    %2 = vector.load %arg2[%c0_2, %c0_3] : memref<8x3xf32, #tpu.memory_space<vmem>>, vector<8x3xf32>
    %3 = vector.extract_strided_slice %2 {offsets = [0, 0], sizes = [8, 1], strides = [1, 1]} : vector<8x3xf32> to vector<8x1xf32>
    %4 = vector.extract_strided_slice %1 {offsets = [0, 0], sizes = [1, 254], strides = [1, 1]} : vector<1x256xf32> to vector<1x254xf32>
    %5 = vector.broadcast %3 : vector<8x1xf32> to vector<8x254xf32>
    %6 = vector.broadcast %4 : vector<1x254xf32> to vector<8x254xf32>
    %7 = arith.mulf %5, %6 : vector<8x254xf32>
    %8 = vector.extract_strided_slice %2 {offsets = [0, 1], sizes = [8, 1], strides = [1, 1]} : vector<8x3xf32> to vector<8x1xf32>
    %9 = vector.extract_strided_slice %1 {offsets = [0, 1], sizes = [1, 254], strides = [1, 1]} : vector<1x256xf32> to vector<1x254xf32>
    %10 = vector.broadcast %8 : vector<8x1xf32> to vector<8x254xf32>
    %11 = vector.broadcast %9 : vector<1x254xf32> to vector<8x254xf32>
    %12 = arith.mulf %10, %11 : vector<8x254xf32>
    %13 = arith.addf %7, %12 : vector<8x254xf32>
    %14 = vector.extract_strided_slice %2 {offsets = [0, 2], sizes = [8, 1], strides = [1, 1]} : vector<8x3xf32> to vector<8x1xf32>
    %15 = vector.extract_strided_slice %1 {offsets = [0, 2], sizes = [1, 254], strides = [1, 1]} : vector<1x256xf32> to vector<1x254xf32>
    %16 = vector.broadcast %14 : vector<8x1xf32> to vector<8x254xf32>
    %17 = vector.broadcast %15 : vector<1x254xf32> to vector<8x254xf32>
    %18 = arith.mulf %16, %17 : vector<8x254xf32>
    %19 = arith.addf %13, %18 : vector<8x254xf32>
    %c0_4 = arith.constant 0 : index
    %c0_5 = arith.constant 0 : index
    %20 = vector.load %arg3[%c0_4, %c0_5] : memref<8x1xf32, #tpu.memory_space<vmem>>, vector<8x1xf32>
    %21 = vector.broadcast %20 : vector<8x1xf32> to vector<8x254xf32>
    %22 = arith.addf %19, %21 : vector<8x254xf32>
    %cst = arith.constant 0.000000e+00 : f32
    %23 = vector.broadcast %cst : f32 to vector<8x254xf32>
    %24 = arith.maximumf %22, %23 : vector<8x254xf32>
    %25 = tpu.iota {dimensions = array<i32: 0>} : vector<254x127xi32>
    %26 = tpu.iota {dimensions = array<i32: 1>} : vector<254x127xi32>
    %c2_i32 = arith.constant 2 : i32
    %27 = vector.broadcast %c2_i32 : i32 to vector<254x127xi32>
    %28 = arith.muli %27, %26 : vector<254x127xi32>
    %29 = arith.cmpi eq, %25, %28 : vector<254x127xi32>
    %30 = arith.extui %29 : vector<254x127xi1> to vector<254x127xi32>
    %31 = arith.sitofp %30 : vector<254x127xi32> to vector<254x127xf32>
    %c2_i32_6 = arith.constant 2 : i32
    %32 = vector.broadcast %c2_i32_6 : i32 to vector<254x127xi32>
    %33 = arith.muli %32, %26 : vector<254x127xi32>
    %c1_i32 = arith.constant 1 : i32
    %34 = vector.broadcast %c1_i32 : i32 to vector<254x127xi32>
    %35 = arith.addi %33, %34 : vector<254x127xi32>
    %36 = arith.cmpi eq, %25, %35 : vector<254x127xi32>
    %37 = arith.extui %36 : vector<254x127xi1> to vector<254x127xi32>
    %38 = arith.sitofp %37 : vector<254x127xi32> to vector<254x127xf32>
    %cst_7 = arith.constant dense<0.000000e+00> : vector<8x127xf32>
    %39 = tpu.matmul %24, %31, %cst_7 {dimension_numbers = #tpu.dot_dimension_numbers<[1], [0], [0], [1], [0, 0, 1, 1], [], []>} : vector<8x254xf32>, vector<254x127xf32>, vector<8x127xf32> -> vector<8x127xf32>
    %cst_8 = arith.constant dense<0.000000e+00> : vector<8x127xf32>
    %40 = tpu.matmul %24, %38, %cst_8 {dimension_numbers = #tpu.dot_dimension_numbers<[1], [0], [0], [1], [0, 0, 1, 1], [], []>} : vector<8x254xf32>, vector<254x127xf32>, vector<8x127xf32> -> vector<8x127xf32>
    %41 = arith.maximumf %39, %40 : vector<8x127xf32>
    %c0_9 = arith.constant 0 : index
    %c0_10 = arith.constant 0 : index
    %c0_11 = arith.constant 0 : index
    %42 = vector.load %arg4[%c0_9, %c0_10, %c0_11] : memref<3x16x8xf32, #tpu.memory_space<vmem>>, vector<3x16x8xf32>
    %c0_12 = arith.constant 0 : index
    %c0_13 = arith.constant 0 : index
    %43 = vector.load %arg5[%c0_12, %c0_13] : memref<16x1xf32, #tpu.memory_space<vmem>>, vector<16x1xf32>
    %44 = vector.extract_strided_slice %42 {offsets = [0, 0, 0], sizes = [1, 16, 8], strides = [1, 1, 1]} : vector<3x16x8xf32> to vector<1x16x8xf32>
    %45 = vector.shape_cast %44 : vector<1x16x8xf32> to vector<16x8xf32>
    %46 = vector.extract_strided_slice %41 {offsets = [0, 0], sizes = [8, 125], strides = [1, 1]} : vector<8x127xf32> to vector<8x125xf32>
    %cst_14 = arith.constant dense<0.000000e+00> : vector<16x125xf32>
    %47 = tpu.matmul %45, %46, %cst_14 {dimension_numbers = #tpu.dot_dimension_numbers<[1], [0], [0], [1], [0, 0, 1, 1], [], []>} : vector<16x8xf32>, vector<8x125xf32>, vector<16x125xf32> -> vector<16x125xf32>
    %48 = vector.extract_strided_slice %42 {offsets = [1, 0, 0], sizes = [1, 16, 8], strides = [1, 1, 1]} : vector<3x16x8xf32> to vector<1x16x8xf32>
    %49 = vector.shape_cast %48 : vector<1x16x8xf32> to vector<16x8xf32>
    %50 = vector.extract_strided_slice %41 {offsets = [0, 1], sizes = [8, 125], strides = [1, 1]} : vector<8x127xf32> to vector<8x125xf32>
    %cst_15 = arith.constant dense<0.000000e+00> : vector<16x125xf32>
    %51 = tpu.matmul %49, %50, %cst_15 {dimension_numbers = #tpu.dot_dimension_numbers<[1], [0], [0], [1], [0, 0, 1, 1], [], []>} : vector<16x8xf32>, vector<8x125xf32>, vector<16x125xf32> -> vector<16x125xf32>
    %52 = arith.addf %47, %51 : vector<16x125xf32>
    %53 = vector.extract_strided_slice %42 {offsets = [2, 0, 0], sizes = [1, 16, 8], strides = [1, 1, 1]} : vector<3x16x8xf32> to vector<1x16x8xf32>
    %54 = vector.shape_cast %53 : vector<1x16x8xf32> to vector<16x8xf32>
    %55 = vector.extract_strided_slice %41 {offsets = [0, 2], sizes = [8, 125], strides = [1, 1]} : vector<8x127xf32> to vector<8x125xf32>
    %cst_16 = arith.constant dense<0.000000e+00> : vector<16x125xf32>
    %56 = tpu.matmul %54, %55, %cst_16 {dimension_numbers = #tpu.dot_dimension_numbers<[1], [0], [0], [1], [0, 0, 1, 1], [], []>} : vector<16x8xf32>, vector<8x125xf32>, vector<16x125xf32> -> vector<16x125xf32>
    %57 = arith.addf %52, %56 : vector<16x125xf32>
    %58 = vector.broadcast %43 : vector<16x1xf32> to vector<16x125xf32>
    %59 = arith.addf %57, %58 : vector<16x125xf32>
    %cst_17 = arith.constant 0.000000e+00 : f32
    %60 = vector.broadcast %cst_17 : f32 to vector<16x125xf32>
    %61 = arith.maximumf %59, %60 : vector<16x125xf32>
    %62 = tpu.iota {dimensions = array<i32: 0>} : vector<125x62xi32>
    %63 = tpu.iota {dimensions = array<i32: 1>} : vector<125x62xi32>
    %c2_i32_18 = arith.constant 2 : i32
    %64 = vector.broadcast %c2_i32_18 : i32 to vector<125x62xi32>
    %65 = arith.muli %64, %63 : vector<125x62xi32>
    %66 = arith.cmpi eq, %62, %65 : vector<125x62xi32>
    %67 = arith.extui %66 : vector<125x62xi1> to vector<125x62xi32>
    %68 = arith.sitofp %67 : vector<125x62xi32> to vector<125x62xf32>
    %c2_i32_19 = arith.constant 2 : i32
    %69 = vector.broadcast %c2_i32_19 : i32 to vector<125x62xi32>
    %70 = arith.muli %69, %63 : vector<125x62xi32>
    %c1_i32_20 = arith.constant 1 : i32
    %71 = vector.broadcast %c1_i32_20 : i32 to vector<125x62xi32>
    %72 = arith.addi %70, %71 : vector<125x62xi32>
    %73 = arith.cmpi eq, %62, %72 : vector<125x62xi32>
    %74 = arith.extui %73 : vector<125x62xi1> to vector<125x62xi32>
    %75 = arith.sitofp %74 : vector<125x62xi32> to vector<125x62xf32>
    %cst_21 = arith.constant dense<0.000000e+00> : vector<16x62xf32>
    %76 = tpu.matmul %61, %68, %cst_21 {dimension_numbers = #tpu.dot_dimension_numbers<[1], [0], [0], [1], [0, 0, 1, 1], [], []>} : vector<16x125xf32>, vector<125x62xf32>, vector<16x62xf32> -> vector<16x62xf32>
    %cst_22 = arith.constant dense<0.000000e+00> : vector<16x62xf32>
    %77 = tpu.matmul %61, %75, %cst_22 {dimension_numbers = #tpu.dot_dimension_numbers<[1], [0], [0], [1], [0, 0, 1, 1], [], []>} : vector<16x125xf32>, vector<125x62xf32>, vector<16x62xf32> -> vector<16x62xf32>
    %78 = arith.maximumf %76, %77 : vector<16x62xf32>
    %c0_23 = arith.constant 0 : index
    %c0_24 = arith.constant 0 : index
    %c0_25 = arith.constant 0 : index
    %79 = vector.load %arg6[%c0_23, %c0_24, %c0_25] : memref<3x32x16xf32, #tpu.memory_space<vmem>>, vector<3x32x16xf32>
    %c0_26 = arith.constant 0 : index
    %c0_27 = arith.constant 0 : index
    %80 = vector.load %arg7[%c0_26, %c0_27] : memref<32x1xf32, #tpu.memory_space<vmem>>, vector<32x1xf32>
    %81 = vector.extract_strided_slice %79 {offsets = [0, 0, 0], sizes = [1, 32, 16], strides = [1, 1, 1]} : vector<3x32x16xf32> to vector<1x32x16xf32>
    %82 = vector.shape_cast %81 : vector<1x32x16xf32> to vector<32x16xf32>
    %83 = vector.extract_strided_slice %78 {offsets = [0, 0], sizes = [16, 60], strides = [1, 1]} : vector<16x62xf32> to vector<16x60xf32>
    %cst_28 = arith.constant dense<0.000000e+00> : vector<32x60xf32>
    %84 = tpu.matmul %82, %83, %cst_28 {dimension_numbers = #tpu.dot_dimension_numbers<[1], [0], [0], [1], [0, 0, 1, 1], [], []>} : vector<32x16xf32>, vector<16x60xf32>, vector<32x60xf32> -> vector<32x60xf32>
    %85 = vector.extract_strided_slice %79 {offsets = [1, 0, 0], sizes = [1, 32, 16], strides = [1, 1, 1]} : vector<3x32x16xf32> to vector<1x32x16xf32>
    %86 = vector.shape_cast %85 : vector<1x32x16xf32> to vector<32x16xf32>
    %87 = vector.extract_strided_slice %78 {offsets = [0, 1], sizes = [16, 60], strides = [1, 1]} : vector<16x62xf32> to vector<16x60xf32>
    %cst_29 = arith.constant dense<0.000000e+00> : vector<32x60xf32>
    %88 = tpu.matmul %86, %87, %cst_29 {dimension_numbers = #tpu.dot_dimension_numbers<[1], [0], [0], [1], [0, 0, 1, 1], [], []>} : vector<32x16xf32>, vector<16x60xf32>, vector<32x60xf32> -> vector<32x60xf32>
    %89 = arith.addf %84, %88 : vector<32x60xf32>
    %90 = vector.extract_strided_slice %79 {offsets = [2, 0, 0], sizes = [1, 32, 16], strides = [1, 1, 1]} : vector<3x32x16xf32> to vector<1x32x16xf32>
    %91 = vector.shape_cast %90 : vector<1x32x16xf32> to vector<32x16xf32>
    %92 = vector.extract_strided_slice %78 {offsets = [0, 2], sizes = [16, 60], strides = [1, 1]} : vector<16x62xf32> to vector<16x60xf32>
    %cst_30 = arith.constant dense<0.000000e+00> : vector<32x60xf32>
    %93 = tpu.matmul %91, %92, %cst_30 {dimension_numbers = #tpu.dot_dimension_numbers<[1], [0], [0], [1], [0, 0, 1, 1], [], []>} : vector<32x16xf32>, vector<16x60xf32>, vector<32x60xf32> -> vector<32x60xf32>
    %94 = arith.addf %89, %93 : vector<32x60xf32>
    %95 = vector.broadcast %80 : vector<32x1xf32> to vector<32x60xf32>
    %96 = arith.addf %94, %95 : vector<32x60xf32>
    %cst_31 = arith.constant 0.000000e+00 : f32
    %97 = vector.broadcast %cst_31 : f32 to vector<32x60xf32>
    %98 = arith.maximumf %96, %97 : vector<32x60xf32>
    %99 = tpu.iota {dimensions = array<i32: 0>} : vector<60x30xi32>
    %100 = tpu.iota {dimensions = array<i32: 1>} : vector<60x30xi32>
    %c2_i32_32 = arith.constant 2 : i32
    %101 = vector.broadcast %c2_i32_32 : i32 to vector<60x30xi32>
    %102 = arith.muli %101, %100 : vector<60x30xi32>
    %103 = arith.cmpi eq, %99, %102 : vector<60x30xi32>
    %104 = arith.extui %103 : vector<60x30xi1> to vector<60x30xi32>
    %105 = arith.sitofp %104 : vector<60x30xi32> to vector<60x30xf32>
    %c2_i32_33 = arith.constant 2 : i32
    %106 = vector.broadcast %c2_i32_33 : i32 to vector<60x30xi32>
    %107 = arith.muli %106, %100 : vector<60x30xi32>
    %c1_i32_34 = arith.constant 1 : i32
    %108 = vector.broadcast %c1_i32_34 : i32 to vector<60x30xi32>
    %109 = arith.addi %107, %108 : vector<60x30xi32>
    %110 = arith.cmpi eq, %99, %109 : vector<60x30xi32>
    %111 = arith.extui %110 : vector<60x30xi1> to vector<60x30xi32>
    %112 = arith.sitofp %111 : vector<60x30xi32> to vector<60x30xf32>
    %cst_35 = arith.constant dense<0.000000e+00> : vector<32x30xf32>
    %113 = tpu.matmul %98, %105, %cst_35 {dimension_numbers = #tpu.dot_dimension_numbers<[1], [0], [0], [1], [0, 0, 1, 1], [], []>} : vector<32x60xf32>, vector<60x30xf32>, vector<32x30xf32> -> vector<32x30xf32>
    %cst_36 = arith.constant dense<0.000000e+00> : vector<32x30xf32>
    %114 = tpu.matmul %98, %112, %cst_36 {dimension_numbers = #tpu.dot_dimension_numbers<[1], [0], [0], [1], [0, 0, 1, 1], [], []>} : vector<32x60xf32>, vector<60x30xf32>, vector<32x30xf32> -> vector<32x30xf32>
    %115 = arith.maximumf %113, %114 : vector<32x30xf32>
    %c0_37 = arith.constant 0 : index
    %c0_38 = arith.constant 0 : index
    %c0_39 = arith.constant 0 : index
    %116 = vector.load %arg8[%c0_37, %c0_38, %c0_39] : memref<3x64x32xf32, #tpu.memory_space<vmem>>, vector<3x64x32xf32>
    %c0_40 = arith.constant 0 : index
    %c0_41 = arith.constant 0 : index
    %117 = vector.load %arg9[%c0_40, %c0_41] : memref<64x1xf32, #tpu.memory_space<vmem>>, vector<64x1xf32>
    %118 = vector.extract_strided_slice %116 {offsets = [0, 0, 0], sizes = [1, 64, 32], strides = [1, 1, 1]} : vector<3x64x32xf32> to vector<1x64x32xf32>
    %119 = vector.shape_cast %118 : vector<1x64x32xf32> to vector<64x32xf32>
    %120 = vector.extract_strided_slice %115 {offsets = [0, 0], sizes = [32, 28], strides = [1, 1]} : vector<32x30xf32> to vector<32x28xf32>
    %cst_42 = arith.constant dense<0.000000e+00> : vector<64x28xf32>
    %121 = tpu.matmul %119, %120, %cst_42 {dimension_numbers = #tpu.dot_dimension_numbers<[1], [0], [0], [1], [0, 0, 1, 1], [], []>} : vector<64x32xf32>, vector<32x28xf32>, vector<64x28xf32> -> vector<64x28xf32>
    %122 = vector.extract_strided_slice %116 {offsets = [1, 0, 0], sizes = [1, 64, 32], strides = [1, 1, 1]} : vector<3x64x32xf32> to vector<1x64x32xf32>
    %123 = vector.shape_cast %122 : vector<1x64x32xf32> to vector<64x32xf32>
    %124 = vector.extract_strided_slice %115 {offsets = [0, 1], sizes = [32, 28], strides = [1, 1]} : vector<32x30xf32> to vector<32x28xf32>
    %cst_43 = arith.constant dense<0.000000e+00> : vector<64x28xf32>
    %125 = tpu.matmul %123, %124, %cst_43 {dimension_numbers = #tpu.dot_dimension_numbers<[1], [0], [0], [1], [0, 0, 1, 1], [], []>} : vector<64x32xf32>, vector<32x28xf32>, vector<64x28xf32> -> vector<64x28xf32>
    %126 = arith.addf %121, %125 : vector<64x28xf32>
    %127 = vector.extract_strided_slice %116 {offsets = [2, 0, 0], sizes = [1, 64, 32], strides = [1, 1, 1]} : vector<3x64x32xf32> to vector<1x64x32xf32>
    %128 = vector.shape_cast %127 : vector<1x64x32xf32> to vector<64x32xf32>
    %129 = vector.extract_strided_slice %115 {offsets = [0, 2], sizes = [32, 28], strides = [1, 1]} : vector<32x30xf32> to vector<32x28xf32>
    %cst_44 = arith.constant dense<0.000000e+00> : vector<64x28xf32>
    %130 = tpu.matmul %128, %129, %cst_44 {dimension_numbers = #tpu.dot_dimension_numbers<[1], [0], [0], [1], [0, 0, 1, 1], [], []>} : vector<64x32xf32>, vector<32x28xf32>, vector<64x28xf32> -> vector<64x28xf32>
    %131 = arith.addf %126, %130 : vector<64x28xf32>
    %132 = vector.broadcast %117 : vector<64x1xf32> to vector<64x28xf32>
    %133 = arith.addf %131, %132 : vector<64x28xf32>
    %cst_45 = arith.constant 0.000000e+00 : f32
    %134 = vector.broadcast %cst_45 : f32 to vector<64x28xf32>
    %135 = arith.maximumf %133, %134 : vector<64x28xf32>
    %136 = tpu.iota {dimensions = array<i32: 0>} : vector<28x14xi32>
    %137 = tpu.iota {dimensions = array<i32: 1>} : vector<28x14xi32>
    %c2_i32_46 = arith.constant 2 : i32
    %138 = vector.broadcast %c2_i32_46 : i32 to vector<28x14xi32>
    %139 = arith.muli %138, %137 : vector<28x14xi32>
    %140 = arith.cmpi eq, %136, %139 : vector<28x14xi32>
    %141 = arith.extui %140 : vector<28x14xi1> to vector<28x14xi32>
    %142 = arith.sitofp %141 : vector<28x14xi32> to vector<28x14xf32>
    %c2_i32_47 = arith.constant 2 : i32
    %143 = vector.broadcast %c2_i32_47 : i32 to vector<28x14xi32>
    %144 = arith.muli %143, %137 : vector<28x14xi32>
    %c1_i32_48 = arith.constant 1 : i32
    %145 = vector.broadcast %c1_i32_48 : i32 to vector<28x14xi32>
    %146 = arith.addi %144, %145 : vector<28x14xi32>
    %147 = arith.cmpi eq, %136, %146 : vector<28x14xi32>
    %148 = arith.extui %147 : vector<28x14xi1> to vector<28x14xi32>
    %149 = arith.sitofp %148 : vector<28x14xi32> to vector<28x14xf32>
    %cst_49 = arith.constant dense<0.000000e+00> : vector<64x14xf32>
    %150 = tpu.matmul %135, %142, %cst_49 {dimension_numbers = #tpu.dot_dimension_numbers<[1], [0], [0], [1], [0, 0, 1, 1], [], []>} : vector<64x28xf32>, vector<28x14xf32>, vector<64x14xf32> -> vector<64x14xf32>
    %cst_50 = arith.constant dense<0.000000e+00> : vector<64x14xf32>
    %151 = tpu.matmul %135, %149, %cst_50 {dimension_numbers = #tpu.dot_dimension_numbers<[1], [0], [0], [1], [0, 0, 1, 1], [], []>} : vector<64x28xf32>, vector<28x14xf32>, vector<64x14xf32> -> vector<64x14xf32>
    %152 = arith.maximumf %150, %151 : vector<64x14xf32>
    %c0_51 = arith.constant 0 : index
    %c0_52 = arith.constant 0 : index
    %153 = vector.load %arg10[%c0_51, %c0_52] : memref<64x14xf32, #tpu.memory_space<vmem>>, vector<64x14xf32>
    %154 = arith.mulf %152, %153 : vector<64x14xf32>
    %cst_53 = arith.constant dense<0.000000e+00> : vector<64xf32>
    %155 = vector.multi_reduction <add>, %154, %cst_53 [1] : vector<64x14xf32> to vector<64xf32>
    %156 = vector.shape_cast %155 : vector<64xf32> to vector<64x1xf32>
    %cst_54 = arith.constant dense<0.000000e+00> : vector<1xf32>
    %157 = vector.multi_reduction <add>, %156, %cst_54 [0] : vector<64x1xf32> to vector<1xf32>
    %158 = vector.shape_cast %157 : vector<1xf32> to vector<1x1xf32>
    %c0_55 = arith.constant 0 : index
    %c0_56 = arith.constant 0 : index
    %159 = vector.load %arg11[%c0_55, %c0_56] : memref<1x1xf32, #tpu.memory_space<vmem>>, vector<1x1xf32>
    %160 = arith.addf %158, %159 : vector<1x1xf32>
    %cst_57 = arith.constant 0.000000e+00 : f32
    %161 = vector.broadcast %cst_57 : f32 to vector<1x1xf32>
    %162 = arith.subf %161, %160 : vector<1x1xf32>
    %163 = math.exp %162 : vector<1x1xf32>
    %cst_58 = arith.constant 1.000000e+00 : f32
    %164 = vector.broadcast %cst_58 : f32 to vector<1x1xf32>
    %165 = arith.addf %164, %163 : vector<1x1xf32>
    %cst_59 = arith.constant 1.000000e+00 : f32
    %166 = vector.broadcast %cst_59 : f32 to vector<1x1xf32>
    %167 = arith.divf %166, %165 : vector<1x1xf32>
    %c0_60 = arith.constant 0 : index
    %c0_61 = arith.constant 0 : index
    %c0_62 = arith.constant 0 : index
    %168 = vector.load %arg12[%c0_60, %c0_61, %c0_62] : memref<1x1x1xf32, #tpu.memory_space<vmem>>, vector<1x1x1xf32>
    %169 = vector.shape_cast %168 : vector<1x1x1xf32> to vector<1x1xf32>
    %170 = vector.shape_cast %167 : vector<1x1xf32> to vector<1x1x1xf32>
    tpu.vector_store %arg12[%c0_60, %c0_61, %c0_62], %170 {strides = array<i32>} : memref<1x1x1xf32, #tpu.memory_space<vmem>>, vector<1x1x1xf32>,
    return
  }
  func.func @transform_0(%arg0: i32) -> (i32, i32, i32) {
    %c0_i32 = arith.constant 0 : i32
    %c0_i32_0 = arith.constant 0 : i32
    %c0_i32_1 = arith.constant 0 : i32
    return %arg0, %c0_i32, %c0_i32_0 : i32, i32, i32
  }
  func.func @transform_1(%arg0: i32) -> (i32, i32) {
    %c0_i32 = arith.constant 0 : i32
    %c0_i32_0 = arith.constant 0 : i32
    %c0_i32_1 = arith.constant 0 : i32
    return %c0_i32, %c0_i32_0 : i32, i32
  }
  func.func @transform_2(%arg0: i32) -> (i32, i32) {
    %c0_i32 = arith.constant 0 : i32
    %c0_i32_0 = arith.constant 0 : i32
    %c0_i32_1 = arith.constant 0 : i32
    return %c0_i32, %c0_i32_0 : i32, i32
  }
  func.func @transform_3(%arg0: i32) -> (i32, i32, i32) {
    %c0_i32 = arith.constant 0 : i32
    %c0_i32_0 = arith.constant 0 : i32
    %c0_i32_1 = arith.constant 0 : i32
    %c0_i32_2 = arith.constant 0 : i32
    return %c0_i32, %c0_i32_0, %c0_i32_1 : i32, i32, i32
  }
  func.func @transform_4(%arg0: i32) -> (i32, i32) {
    %c0_i32 = arith.constant 0 : i32
    %c0_i32_0 = arith.constant 0 : i32
    %c0_i32_1 = arith.constant 0 : i32
    return %c0_i32, %c0_i32_0 : i32, i32
  }
  func.func @transform_5(%arg0: i32) -> (i32, i32, i32) {
    %c0_i32 = arith.constant 0 : i32
    %c0_i32_0 = arith.constant 0 : i32
    %c0_i32_1 = arith.constant 0 : i32
    %c0_i32_2 = arith.constant 0 : i32
    return %c0_i32, %c0_i32_0, %c0_i32_1 : i32, i32, i32
  }
  func.func @transform_6(%arg0: i32) -> (i32, i32) {
    %c0_i32 = arith.constant 0 : i32
    %c0_i32_0 = arith.constant 0 : i32
    %c0_i32_1 = arith.constant 0 : i32
    return %c0_i32, %c0_i32_0 : i32, i32
  }
  func.func @transform_7(%arg0: i32) -> (i32, i32, i32) {
    %c0_i32 = arith.constant 0 : i32
    %c0_i32_0 = arith.constant 0 : i32
    %c0_i32_1 = arith.constant 0 : i32
    %c0_i32_2 = arith.constant 0 : i32
    return %c0_i32, %c0_i32_0, %c0_i32_1 : i32, i32, i32
  }
  func.func @transform_8(%arg0: i32) -> (i32, i32) {
    %c0_i32 = arith.constant 0 : i32
    %c0_i32_0 = arith.constant 0 : i32
    %c0_i32_1 = arith.constant 0 : i32
    return %c0_i32, %c0_i32_0 : i32, i32
  }
  func.func @transform_9(%arg0: i32) -> (i32, i32) {
    %c0_i32 = arith.constant 0 : i32
    %c0_i32_0 = arith.constant 0 : i32
    %c0_i32_1 = arith.constant 0 : i32
    return %c0_i32, %c0_i32_0 : i32, i32
  }
  func.func @transform_10(%arg0: i32) -> (i32, i32) {
    %c0_i32 = arith.constant 0 : i32
    %c0_i32_0 = arith.constant 0 : i32
    %c0_i32_1 = arith.constant 0 : i32
    return %c0_i32, %c0_i32_0 : i32, i32
  }
  func.func @transform_11(%arg0: i32) -> (i32, i32, i32) {
    %c0_i32 = arith.constant 0 : i32
    %c0_i32_0 = arith.constant 0 : i32
    %c0_i32_1 = arith.constant 0 : i32
    return %arg0, %c0_i32, %c0_i32_0 : i32, i32, i32
  }
}

</mosaic_0001>

<bundles_post_ra>
// kernel: transam_forward.4
= control target key start
LH: loop header
LB: loop body
LE: loop exit
PB: predicated region body
PF: predicated region fallthrough
CT: control target
= control target key end

     0   :  { %18 = vsyncpa [#allocation3], 0  ;;  %s928_s0 = inlined_call_operand.vmem [shape: f32[2,256], index: 0, kind: input, shape index: {}]   ;;  %s929_s1 = inlined_call_operand.vmem [shape: f32[256,256], index: 1, kind: input, shape index: {}]   ;;  %s930_s2 = inlined_call_operand.vmem [shape: f32[1,256], index: 2, kind: input, shape index: {}]   ;;  %s931_s3 = inlined_call_operand.hbm [shape: f32[256,128], index: 3, kind: input, shape index: {}]   ;;  %s932_s4 = inlined_call_operand.vmem [shape: f32[1,128], index: 4, kind: input, shape index: {}]   ;;  %s933_s5 = inlined_call_operand.hbm [shape: f32[128,128], index: 5, kind: input, shape index: {}]   ;;  %s934_s6 = inlined_call_operand.vmem [shape: f32[1,128], index: 6, kind: input, shape index: {}]   ;;  %s935_s7 = inlined_call_operand.hbm [shape: f32[128,128], index: 7, kind: input, shape index: {}]   ;;  %s936_s8 = inlined_call_operand.vmem [shape: f32[1,128], index: 8, kind: input, shape index: {}]   ;;  %s937_s9 = inlined_call_operand.hbm [shape: f32[128,128], index: 9, kind: input, shape index: {}]   ;;  %s938_s10 = inlined_call_operand.hbm [shape: f32[1,128], index: 10, kind: input, shape index: {}]   ;;  %s939_s11 = inlined_call_operand.vmem [shape: f32[2,256], index: 11, kind: output, shape index: {0}]   ;;  %s940_s12 = inlined_call_operand.vmem [shape: f32[2,128], index: 12, kind: output, shape index: {1}]  }
   0x1   :  { %19 = vsyncpa [#allocation5], 0 }
   0x2   :  { %20 = vsyncpa [#allocation8], 0  ;;  %s46_s23 = sshll.u32 %s933_s5, 4  ;;  %s628_s24 = smov [#allocation4]   ;;  %s47_s23 = int_to_ptr.hbm [resolvable:$true] %s46_s23 }
   0x3   :  { %s48_s25 = sshll.u32 %s628_s24, 4  ;;  %s76_s28 = sshll.u32 %s937_s9, 4  ;;  %s49_s25 = int_to_ptr.vmem [resolvable:$true] %s48_s25  ;;  %s77_s28 = int_to_ptr.hbm [resolvable:$true] %s76_s28 }
   0x4   :  { %s629_s29 = smov 128   ;;  %s630_s30 = smov 8  }
   0x5   :  { %54 = dma.hbm_to_vmem [thread:$0]  %s47_s23, 2048, %s49_s25, [#allocation5], %s629_s29, %s629_s29, %s630_s30  }
   0x6   :  { %s631_s13 = smov [#allocation7]   ;;  %s31_s17 = sshll.u32 %s931_s3, 4  ;;  %s32_s17 = int_to_ptr.hbm [resolvable:$true] %s31_s17 }
   0x7   :  { %s78_s14 = sshll.u32 %s631_s13, 4  ;;  %s61_s19 = sshll.u32 %s935_s7, 4  ;;  %s79_s14 = int_to_ptr.vmem [resolvable:$true] %s78_s14  ;;  %s62_s19 = int_to_ptr.hbm [resolvable:$true] %s61_s19 }
   0x8   :  { %84 = dma.hbm_to_vmem [thread:$0]  %s77_s28, 2048, %s79_s14, [#allocation8], %s629_s29, %s629_s29, %s630_s30  }
   0x9   :  { %s632_s20 = smov [#allocation2]   ;;  %s633_s9 = smov [#allocation6]  }
   0xa   :  { %s33_s21 = sshll.u32 %s632_s20, 4  ;;  %s63_s22 = sshll.u32 %s633_s9, 4  ;;  %s34_s21 = int_to_ptr.vmem [resolvable:$true] %s33_s21  ;;  %s64_s22 = int_to_ptr.vmem [resolvable:$true] %s63_s22 }
   0xb   :  { %39 = dma.hbm_to_vmem [thread:$0]  %s32_s17, 4096, %s34_s21, [#allocation3], %s629_s29, %s629_s29, %s630_s30  }
   0xc   :  { %s90_s25 = sshll.u32 %s938_s10, 4  ;;  %s634_s3 = smov [#allocation9]   ;;  %s91_s25 = int_to_ptr.hbm [resolvable:$true] %s90_s25 }
   0xd   :  { %69 = dma.hbm_to_vmem [thread:$0]  %s62_s19, 2048, %s64_s22, [#allocation5], %s629_s29, %s629_s29, %s630_s30  }
   0xe   :  { %s92_s26 = sshll.u32 %s634_s3, 4  ;;  %s93_s26 = int_to_ptr.vmem [resolvable:$true] %s92_s26 }
   0xf   :  { %95 = dma.hbm_to_vmem [thread:$0]  %s91_s25, 16, %s93_s26, [#allocation8]  }
  0x10   :  { %622 = dma.done.wait [#allocation3], 4096  }
  0x11   :  { %623 = vsyncadd [#allocation3], 4294963200 }
  0x12   :  { %624 = dma.done.wait [#allocation5], 4096  }
  0x13   :  { %625 = vsyncadd [#allocation5], 4294963200 }
  0x14   :  { %626 = dma.done.wait [#allocation8], 2064  }
  0x15   :  { %627 = vsyncadd [#allocation8], 4294965232  ;;  %v148_v0 = vld [vmem:[%s929_s1 + $0xf8] sm:$0xff]  ;;  %v146_v1 = vld [vmem:[%s929_s1 + $0xe8] sm:$0xff]  ;;  %vm276_vm0 = vcmask 1041408  }
  0x16   :  { %v180_v2 = vld [vmem:[%s929_s1 + $0x1f8] sm:$0xff]  ;;  %233 = vmatpush.msra.mxu2 %v148_v0  ;;  %v147_v3 = vld [vmem:[%s929_s1 + $0xf0] sm:$0xff]  ;;  %v178_v4 = vld [vmem:[%s929_s1 + $0x1e8] sm:$0xff] }
  0x17   :  { %253 = vmatpush.msra.mxu3 %v180_v2  ;;  %193 = vmatpush.msra.mxu0 %v147_v3  ;;  %v144_v5 = vld [vmem:[%s929_s1 + $0xd8] sm:$0xff]  ;;  %v145_v6 = vld [vmem:[%s929_s1 + $0xe0] sm:$0xff]  ;;  %v179_v7 = vld [vmem:[%s929_s1 + $0x1f0] sm:$0xff] }
  0x18   :  { %234 = vmatpush.msra.mxu2 %v146_v1  ;;  %v176_v8 = vld [vmem:[%s929_s1 + $0x1d8] sm:$0xff]  ;;  %v143_v9 = vld [vmem:[%s929_s1 + $0xd0] sm:$0xff]  ;;  %v177_v10 = vld [vmem:[%s929_s1 + $0x1e0] sm:$0xff]  ;;  %213 = vmatpush.msra.mxu1 %v179_v7 }
  0x19   :  { %254 = vmatpush.msra.mxu3 %v178_v4  ;;  %194 = vmatpush.msra.mxu0 %v145_v6  ;;  %v142_v11 = vld [vmem:[%s929_s1 + $0xc8] sm:$0xff]  ;;  %v141_v13 = vld [vmem:[%s929_s1 + $0xc0] sm:$0xff]  ;;  %v175_v14 = vld [vmem:[%s929_s1 + $0x1d0] sm:$0xff] }
  0x1a   :  { %v174_v12 = vld [vmem:[%s929_s1 + $0x1c8] sm:$0xff]  ;;  %235 = vmatpush.msra.mxu2 %v144_v5  ;;  %214 = vmatpush.msra.mxu1 %v177_v10  ;;  %v140_v15 = vld [vmem:[%s929_s1 + $0xb8] sm:$0xff]  ;;  %v139_v17 = vld [vmem:[%s929_s1 + $0xb0] sm:$0xff] }
  0x1b   :  { %255 = vmatpush.msra.mxu3 %v176_v8  ;;  %195 = vmatpush.msra.mxu0 %v143_v9  ;;  %v172_v16 = vld [vmem:[%s929_s1 + $0x1b8] sm:$0xff]  ;;  %v173_v18 = vld [vmem:[%s929_s1 + $0x1c0] sm:$0xff]  ;;  %v138_v19 = vld [vmem:[%s929_s1 + $0xa8] sm:$0xff] }
  0x1c   :  { %236 = vmatpush.msra.mxu2 %v142_v11  ;;  %215 = vmatpush.msra.mxu1 %v175_v14  ;;  %v170_v20 = vld [vmem:[%s929_s1 + $0x1a8] sm:$0xff]  ;;  %v137_v21 = vld [vmem:[%s929_s1 + $0xa0] sm:$0xff]  ;;  %v171_v22 = vld [vmem:[%s929_s1 + $0x1b0] sm:$0xff] }
  0x1d   :  { %256 = vmatpush.msra.mxu3 %v174_v12  ;;  %196 = vmatpush.msra.mxu0 %v141_v13  ;;  %v136_v23 = vld [vmem:[%s929_s1 + $0x98] sm:$0xff]  ;;  %v135_v25 = vld [vmem:[%s929_s1 + $0x90] sm:$0xff]  ;;  %v169_v26 = vld [vmem:[%s929_s1 + $0x1a0] sm:$0xff] }
  0x1e   :  { %237 = vmatpush.msra.mxu2 %v140_v15  ;;  %216 = vmatpush.msra.mxu1 %v173_v18  ;;  %v168_v24 = vld [vmem:[%s929_s1 + $0x198] sm:$0xff]  ;;  %v134_v27 = vld [vmem:[%s929_s1 + $0x88] sm:$0xff]  ;;  %v133_v29 = vld [vmem:[%s929_s1 + $0x80] sm:$0xff] }
  0x1f   :  { %257 = vmatpush.msra.mxu3 %v172_v16  ;;  %197 = vmatpush.msra.mxu0 %v139_v17  ;;  %v166_v28 = vld [vmem:[%s929_s1 + $0x188] sm:$0xff]  ;;  %v167_v30 = vld [vmem:[%s929_s1 + $0x190] sm:$0xff]  ;;  %v132_v31 = vld [vmem:[%s929_s1 + $0x78] sm:$0xff] }
  0x20   :  { %238 = vmatpush.msra.mxu2 %v138_v19  ;;  %217 = vmatpush.msra.mxu1 %v171_v22  ;;  %v164_v32 = vld [vmem:[%s929_s1 + $0x178] sm:$0xff]  ;;  %v131_v33 = vld [vmem:[%s929_s1 + $0x70] sm:$0xff]  ;;  %v165_v34 = vld [vmem:[%s929_s1 + $0x180] sm:$0xff] }
  0x21   :  { %258 = vmatpush.msra.mxu3 %v170_v20  ;;  %198 = vmatpush.msra.mxu0 %v137_v21  ;;  %v130_v35 = vld [vmem:[%s929_s1 + $0x68] sm:$0xff]  ;;  %v129_v37 = vld [vmem:[%s929_s1 + $0x60] sm:$0xff]  ;;  %v163_v38 = vld [vmem:[%s929_s1 + $0x170] sm:$0xff] }
  0x22   :  { %239 = vmatpush.msra.mxu2 %v136_v23  ;;  %218 = vmatpush.msra.mxu1 %v169_v26  ;;  %v162_v36 = vld [vmem:[%s929_s1 + $0x168] sm:$0xff]  ;;  %v128_v39 = vld [vmem:[%s929_s1 + $0x58] sm:$0xff]  ;;  %v127_v41 = vld [vmem:[%s929_s1 + $0x50] sm:$0xff] }
  0x23   :  { %259 = vmatpush.msra.mxu3 %v168_v24  ;;  %199 = vmatpush.msra.mxu0 %v135_v25  ;;  %v160_v40 = vld [vmem:[%s929_s1 + $0x158] sm:$0xff]  ;;  %v161_v42 = vld [vmem:[%s929_s1 + $0x160] sm:$0xff]  ;;  %v126_v44 = vld [vmem:[%s929_s1 + $0x48] sm:$0xff] }
  0x24   :  { %240 = vmatpush.msra.mxu2 %v134_v27  ;;  %219 = vmatpush.msra.mxu1 %v167_v30  ;;  %v116_v43 = vld [vmem:[%s928_s0] sm:$0xf]  ;;  %v158_v45 = vld [vmem:[%s929_s1 + $0x148] sm:$0xff]  ;;  %v159_v47 = vld [vmem:[%s929_s1 + $0x150] sm:$0xff] }
  0x25   :  { %260 = vmatpush.msra.mxu3 %v166_v28  ;;  %200 = vmatpush.msra.mxu0 %v133_v29  ;;  %188 = vst [vmem:[#allocation1] ss:$4 sm:$0xff] %v116_v43  ;;  %v125_v46 = vld [vmem:[%s929_s1 + $0x40] sm:$0xff]  ;;  %v124_v48 = vld [vmem:[%s929_s1 + $0x38] sm:$0xff]  ;;  %v123_v50 = vld [vmem:[%s929_s1 + $0x30] sm:$0xff] }
  0x26   :  { %241 = vmatpush.msra.mxu2 %v132_v31  ;;  %220 = vmatpush.msra.mxu1 %v165_v34  ;;  %v156_v49 = vld [vmem:[%s929_s1 + $0x138] sm:$0xff]  ;;  %v157_v51 = vld [vmem:[%s929_s1 + $0x140] sm:$0xff]  ;;  %v122_v52 = vld [vmem:[%s929_s1 + $0x28] sm:$0xff] }
  0x27   :  { %261 = vmatpush.msra.mxu3 %v164_v32  ;;  %201 = vmatpush.msra.mxu0 %v131_v33  ;;  %v154_v53 = vld [vmem:[%s929_s1 + $0x128] sm:$0xff]  ;;  %v121_v54 = vld [vmem:[%s929_s1 + $0x20] sm:$0xff]  ;;  %v155_v55 = vld [vmem:[%s929_s1 + $0x130] sm:$0xff] }
  0x28   :  { %242 = vmatpush.msra.mxu2 %v130_v35  ;;  %221 = vmatpush.msra.mxu1 %v163_v38  ;;  %v120_v56 = vld [vmem:[%s929_s1 + $0x18] sm:$0xff]  ;;  %v119_v58 = vld [vmem:[%s929_s1 + $0x10] sm:$0xff]  ;;  %v153_v59 = vld [vmem:[%s929_s1 + $0x120] sm:$0xff] }
  0x29   :  { %262 = vmatpush.msra.mxu3 %v162_v36  ;;  %202 = vmatpush.msra.mxu0 %v129_v37  ;;  %v152_v57 = vld [vmem:[%s929_s1 + $0x118] sm:$0xff]  ;;  %v118_v60 = vld [vmem:[%s929_s1 + $0x8] sm:$0xff]  ;;  %v117_v0 = vld [vmem:[%s929_s1] sm:$0xff] }
  0x2a   :  { %243 = vmatpush.msra.mxu2 %v128_v39  ;;  %222 = vmatpush.msra.mxu1 %v161_v42  ;;  %v150_v61 = vld [vmem:[%s929_s1 + $0x108] sm:$0xff]  ;;  %v151_v1 = vld [vmem:[%s929_s1 + $0x110] sm:$0xff]  ;;  %v149_v2 = vld [vmem:[%s929_s1 + $0x100] sm:$0xff] }
  0x2b   :  { %263 = vmatpush.msra.mxu3 %v160_v40  ;;  %203 = vmatpush.msra.mxu0 %v127_v41  ;;  %v295_v3 = vld [vmem:[#allocation2 + $0x78] sm:$0xff]  ;;  %v294_v4 = vld [vmem:[#allocation2 + $0x70] sm:$0xff]  ;;  %v293_v6 = vld [vmem:[#allocation2 + $0x68] sm:$0xff] }
  0x2c   :  { %244 = vmatpush.msra.mxu2 %v126_v44  ;;  %223 = vmatpush.msra.mxu1 %v159_v47  ;;  %v189_v62 = vld.sshfl [vmem:[#allocation1] sm:$0xff pattern:$0x73625140]  ;;  %v190_v63 = vld.sshfl [vmem:[#allocation1 + $0x8] sm:$0xff pattern:$0x73625140] }
  0x2d   :  { %264 = vmatpush.msra.mxu3 %v158_v45  ;;  %204 = vmatpush.msra.mxu0 %v125_v46  ;;  %v311_v5 = vld [vmem:[#allocation2 + $0xf8] sm:$0xff]  ;;  %v310_v7 = vld [vmem:[#allocation2 + $0xf0] sm:$0xff]  ;;  %v292_v8 = vld [vmem:[#allocation2 + $0x60] sm:$0xff] }
  0x2e   :  { %245 = vmatpush.msra.mxu2 %v124_v48  ;;  %224 = vmatpush.msra.mxu1 %v157_v51  ;;  %v309_v9 = vld [vmem:[#allocation2 + $0xe8] sm:$0xff]  ;;  %v291_v10 = vld [vmem:[#allocation2 + $0x58] sm:$0xff]  ;;  %v308_v11 = vld [vmem:[#allocation2 + $0xe0] sm:$0xff] }
  0x2f   :  { %265 = vmatpush.msra.mxu3 %v156_v49  ;;  %205 = vmatpush.msra.mxu0 %v123_v50  ;;  %v290_v12 = vld [vmem:[#allocation2 + $0x50] sm:$0xff]  ;;  %v307_v13 = vld [vmem:[#allocation2 + $0xd8] sm:$0xff]  ;;  %v289_v14 = vld [vmem:[#allocation2 + $0x48] sm:$0xff] }
  0x30   :  { %246 = vmatpush.msra.mxu2 %v122_v52  ;;  %225 = vmatpush.msra.mxu1 %v155_v55  ;;  %v306_v15 = vld [vmem:[#allocation2 + $0xd0] sm:$0xff]  ;;  %v288_v16 = vld [vmem:[#allocation2 + $0x40] sm:$0xff]  ;;  %v305_v17 = vld [vmem:[#allocation2 + $0xc8] sm:$0xff] }
  0x31   :  { %266 = vmatpush.msra.mxu3 %v154_v53  ;;  %206 = vmatpush.msra.mxu0 %v121_v54  ;;  %v287_v18 = vld [vmem:[#allocation2 + $0x38] sm:$0xff]  ;;  %v304_v19 = vld [vmem:[#allocation2 + $0xc0] sm:$0xff]  ;;  %v286_v20 = vld [vmem:[#allocation2 + $0x30] sm:$0xff] }
  0x32   :  { %247 = vmatpush.msra.mxu2 %v120_v56  ;;  %226 = vmatpush.msra.mxu1 %v153_v59  ;;  %v303_v21 = vld [vmem:[#allocation2 + $0xb8] sm:$0xff]  ;;  %v285_v22 = vld [vmem:[#allocation2 + $0x28] sm:$0xff]  ;;  %v302_v23 = vld [vmem:[#allocation2 + $0xb0] sm:$0xff] }
  0x33   :  { %267 = vmatpush.msra.mxu3 %v152_v57  ;;  %207 = vmatpush.msra.mxu0 %v119_v58  ;;  %v284_v24 = vld [vmem:[#allocation2 + $0x20] sm:$0xff]  ;;  %v301_v25 = vld [vmem:[#allocation2 + $0xa8] sm:$0xff]  ;;  %v283_v26 = vld [vmem:[#allocation2 + $0x18] sm:$0xff] }
  0x34   :  { %248 = vmatpush.msra.mxu2 %v118_v60  ;;  %227 = vmatpush.msra.mxu1 %v151_v1  ;;  %v300_v27 = vld [vmem:[#allocation2 + $0xa0] sm:$0xff]  ;;  %v282_v28 = vld [vmem:[#allocation2 + $0x10] sm:$0xff]  ;;  %v299_v29 = vld [vmem:[#allocation2 + $0x98] sm:$0xff] }
  0x35   :  { %268 = vmatpush.msra.mxu3 %v150_v61  ;;  %249 = vmatmul.f32.vlgmr.msra.gmra.mxu2 %v189_v62  ;;  %v281_v30 = vld [vmem:[#allocation2 + $0x8] sm:$0xff]  ;;  %v298_v31 = vld [vmem:[#allocation2 + $0x90] sm:$0xff]  ;;  %v280_v32 = vld [vmem:[#allocation2] sm:$0xff] }
  0x36   :  { %269 = vmatmul.f32.vlgmr.msra.gmra.mxu3 %v190_v63  ;;  %208 = vmatpush.msra.mxu0 %v117_v0  ;;  %v297_v33 = vld [vmem:[#allocation2 + $0x88] sm:$0xff]  ;;  %v296_v34 = vld [vmem:[#allocation2 + $0x80] sm:$0xff]  ;;  %v372_v35 = vld [vmem:[#allocation4 + $0x78] sm:$0xff] }
  0x37   :  { %209 = vmatmul.f32.vlgmr.msra.gmra.mxu0 %v189_v62  ;;  %228 = vmatpush.msra.mxu1 %v149_v2  ;;  %v371_v36 = vld [vmem:[#allocation4 + $0x70] sm:$0xff]  ;;  %v370_v37 = vld [vmem:[#allocation4 + $0x68] sm:$0xff]  ;;  %v369_v38 = vld [vmem:[#allocation4 + $0x60] sm:$0xff] }
  0x38   :  { %316 = vmatpush.msrb.mxu0 %v295_v3  ;;  %229 = vmatmul.f32.vlgmr.msra.gmra.mxu1 %v190_v63  ;;  %v368_v39 = vld [vmem:[#allocation4 + $0x58] sm:$0xff]  ;;  %v367_v40 = vld [vmem:[#allocation4 + $0x50] sm:$0xff]  ;;  %v366_v41 = vld [vmem:[#allocation4 + $0x48] sm:$0xff] }
  0x39   :  { %336 = vmatpush.msrb.mxu1 %v311_v5  ;;  %377 = vmatpush.msrb.mxu2 %v372_v35  ;;  %v365_v42 = vld [vmem:[#allocation4 + $0x40] sm:$0xff]  ;;  %v181_v43 = vld [vmem:[%s930_s2] sm:$0x3]  ;;  %v363_v45 = vld [vmem:[#allocation4 + $0x30] sm:$0xff] }
  0x3a   :  { %317 = vmatpush.msrb.mxu0 %v294_v4  ;;  %v364_v44 = vld [vmem:[#allocation4 + $0x38] sm:$0xff]  ;;  %v183_v46 = vperm.slane %v181_v43, 0  ;;  %v362_v47 = vld [vmem:[#allocation4 + $0x28] sm:$0xff]  ;;  %v361_v49 = vld [vmem:[#allocation4 + $0x20] sm:$0xff]  ;;  %v184_v51 = vperm.slane %v181_v43, 1 }
  0x3b   :  { %337 = vmatpush.msrb.mxu1 %v310_v7  ;;  %378 = vmatpush.msrb.mxu2 %v371_v36  ;;  %v360_v60 = vld [vmem:[#allocation4 + $0x18] sm:$0xff]  ;;  %v359_v61 = vld [vmem:[#allocation4 + $0x10] sm:$0xff]  ;;  %v358_v62 = vld [vmem:[#allocation4 + $0x8] sm:$0xff] }
  0x3c   :  { %318 = vmatpush.msrb.mxu0 %v293_v6  ;;  %v357_v63 = vld [vmem:[#allocation4] sm:$0xff]  ;;  %v413_v0 = vld [vmem:[#allocation6 + $0x78] sm:$0xff]  ;;  %v412_v1 = vld [vmem:[#allocation6 + $0x70] sm:$0xff] }
  0x3d   :  { %338 = vmatpush.msrb.mxu1 %v309_v9  ;;  %379 = vmatpush.msrb.mxu2 %v370_v37  ;;  %v411_v2 = vld [vmem:[#allocation6 + $0x68] sm:$0xff]  ;;  %v410_v3 = vld [vmem:[#allocation6 + $0x60] sm:$0xff]  ;;  %v409_v4 = vld [vmem:[#allocation6 + $0x58] sm:$0xff] }
  0x3e   :  { %319 = vmatpush.msrb.mxu0 %v292_v8  ;;  %418 = vmatpush.msrb.mxu3 %v413_v0  ;;  %v408_v5 = vld [vmem:[#allocation6 + $0x50] sm:$0xff]  ;;  %v407_v6 = vld [vmem:[#allocation6 + $0x48] sm:$0xff]  ;;  %v406_v7 = vld [vmem:[#allocation6 + $0x40] sm:$0xff] }
  0x3f   :  { %339 = vmatpush.msrb.mxu1 %v308_v11  ;;  %380 = vmatpush.msrb.mxu2 %v369_v38  ;;  %v405_v8 = vld [vmem:[#allocation6 + $0x38] sm:$0xff]  ;;  %v404_v9 = vld [vmem:[#allocation6 + $0x30] sm:$0xff] }
  0x40   :  { %320 = vmatpush.msrb.mxu0 %v291_v10  ;;  %419 = vmatpush.msrb.mxu3 %v412_v1  ;;  %v403_v10 = vld [vmem:[#allocation6 + $0x28] sm:$0xff]  ;;  %v498_v11 = vld [vmem:[%s932_s4] ss:$0 sm:$0xff] }
  0x41   :  { %340 = vmatpush.msrb.mxu1 %v307_v13  ;;  %381 = vmatpush.msrb.mxu2 %v368_v39  ;;  %v401_v13 = vld [vmem:[#allocation6 + $0x18] sm:$0xff]  ;;  %v441_v39 = vld [vmem:[#allocation7 + $0x10] sm:$0xff] }
  0x42   :  { %321 = vmatpush.msrb.mxu0 %v290_v12  ;;  %420 = vmatpush.msrb.mxu3 %v411_v2  ;;  %v402_v12 = vld [vmem:[#allocation6 + $0x20] sm:$0xff]  ;;  %v499_v35 = vld [vmem:[%s934_s6] ss:$0 sm:$0xff] }
  0x43   :  { %341 = vmatpush.msrb.mxu1 %v306_v15  ;;  %382 = vmatpush.msrb.mxu2 %v367_v40  ;;  %v440_v40 = vld [vmem:[#allocation7 + $0x8] sm:$0xff] }
  0x44   :  { %322 = vmatpush.msrb.mxu0 %v289_v14  ;;  %421 = vmatpush.msrb.mxu3 %v410_v3 }
  0x45   :  { %342 = vmatpush.msrb.mxu1 %v305_v17  ;;  %383 = vmatpush.msrb.mxu2 %v366_v41  ;;  %v439_v41 = vld [vmem:[#allocation7] sm:$0xff] }
  0x46   :  { %323 = vmatpush.msrb.mxu0 %v288_v16  ;;  %422 = vmatpush.msrb.mxu3 %v409_v4 }
  0x47   :  { %343 = vmatpush.msrb.mxu1 %v304_v19  ;;  %384 = vmatpush.msrb.mxu2 %v365_v42  ;;  %v400_v19 = vld [vmem:[#allocation6 + $0x10] sm:$0xff]  ;;  %v500_v42 = vld [vmem:[%s936_s8] ss:$0 sm:$0xff] }
  0x48   :  { %324 = vmatpush.msrb.mxu0 %v287_v18  ;;  %423 = vmatpush.msrb.mxu3 %v408_v5 }
  0x49   :  { %344 = vmatpush.msrb.mxu1 %v303_v21  ;;  %385 = vmatpush.msrb.mxu2 %v364_v44  ;;  %v398_v21 = vld [vmem:[#allocation6] sm:$0xff] }
  0x4a   :  { %325 = vmatpush.msrb.mxu0 %v286_v20  ;;  %424 = vmatpush.msrb.mxu3 %v407_v6  ;;  %v399_v20 = vld [vmem:[#allocation6 + $0x8] sm:$0xff] }
  0x4b   :  { %345 = vmatpush.msrb.mxu1 %v302_v23  ;;  %386 = vmatpush.msrb.mxu2 %v363_v45  ;;  %v453_v23 = vld [vmem:[#allocation7 + $0x70] sm:$0xff] }
  0x4c   :  { %326 = vmatpush.msrb.mxu0 %v285_v22  ;;  %425 = vmatpush.msrb.mxu3 %v406_v7  ;;  %v454_v22 = vld [vmem:[#allocation7 + $0x78] sm:$0xff] }
  0x4d   :  { %346 = vmatpush.msrb.mxu1 %v301_v25  ;;  %387 = vmatpush.msrb.mxu2 %v362_v47  ;;  %v451_v25 = vld [vmem:[#allocation7 + $0x60] sm:$0xff] }
  0x4e   :  { %327 = vmatpush.msrb.mxu0 %v284_v24  ;;  %426 = vmatpush.msrb.mxu3 %v405_v8  ;;  %v452_v24 = vld [vmem:[#allocation7 + $0x68] sm:$0xff] }
  0x4f   :  { %347 = vmatpush.msrb.mxu1 %v300_v27  ;;  %388 = vmatpush.msrb.mxu2 %v361_v49  ;;  %v449_v27 = vld [vmem:[#allocation7 + $0x50] sm:$0xff] }
  0x50   :  { %328 = vmatpush.msrb.mxu0 %v283_v26  ;;  %427 = vmatpush.msrb.mxu3 %v404_v9  ;;  %v450_v26 = vld [vmem:[#allocation7 + $0x58] sm:$0xff] }
  0x51   :  { %348 = vmatpush.msrb.mxu1 %v299_v29  ;;  %389 = vmatpush.msrb.mxu2 %v360_v60  ;;  %v447_v29 = vld [vmem:[#allocation7 + $0x40] sm:$0xff] }
  0x52   :  { %329 = vmatpush.msrb.mxu0 %v282_v28  ;;  %428 = vmatpush.msrb.mxu3 %v403_v10  ;;  %v448_v28 = vld [vmem:[#allocation7 + $0x48] sm:$0xff] }
  0x53   :  { %349 = vmatpush.msrb.mxu1 %v298_v31  ;;  %390 = vmatpush.msrb.mxu2 %v359_v61  ;;  %v445_v31 = vld [vmem:[#allocation7 + $0x30] sm:$0xff] }
  0x54   :  { %330 = vmatpush.msrb.mxu0 %v281_v30  ;;  %429 = vmatpush.msrb.mxu3 %v402_v12  ;;  %v446_v30 = vld [vmem:[#allocation7 + $0x38] sm:$0xff] }
  0x55   :  { %350 = vmatpush.msrb.mxu1 %v297_v33  ;;  %391 = vmatpush.msrb.mxu2 %v358_v62  ;;  %v443_v33 = vld [vmem:[#allocation7 + $0x20] sm:$0xff] }
  0x56   :  { %331 = vmatpush.msrb.mxu0 %v280_v32  ;;  %430 = vmatpush.msrb.mxu3 %v401_v13  ;;  %v444_v32 = vld [vmem:[#allocation7 + $0x28] sm:$0xff] }
  0x57   :  { %351 = vmatpush.msrb.mxu1 %v296_v34  ;;  %392 = vmatpush.msrb.mxu2 %v357_v63  ;;  %v442_v34 = vld [vmem:[#allocation7 + $0x18] sm:$0xff] }
  0x58   :  { %431 = vmatpush.msrb.mxu3 %v400_v19  ;;  %459 = vmatpush.msra.mxu0 %v454_v22 }
  0x5a   :  { %432 = vmatpush.msrb.mxu3 %v399_v20  ;;  %460 = vmatpush.msra.mxu0 %v453_v23 }
  0x5c   :  { %433 = vmatpush.msrb.mxu3 %v398_v21  ;;  %461 = vmatpush.msra.mxu0 %v452_v24 }
  0x5e   :  { %462 = vmatpush.msra.mxu0 %v451_v25 }
  0x60   :  { %463 = vmatpush.msra.mxu0 %v450_v26 }
  0x62   :  { %464 = vmatpush.msra.mxu0 %v449_v27 }
  0x64   :  { %465 = vmatpush.msra.mxu0 %v448_v28 }
  0x66   :  { %466 = vmatpush.msra.mxu0 %v447_v29 }
  0x68   :  { %467 = vmatpush.msra.mxu0 %v446_v30 }
  0x6a   :  { %468 = vmatpush.msra.mxu0 %v445_v31 }
  0x6c   :  { %469 = vmatpush.msra.mxu0 %v444_v32 }
  0x6e   :  { %470 = vmatpush.msra.mxu0 %v443_v33 }
  0x70   :  { %471 = vmatpush.msra.mxu0 %v442_v34 }
  0x72   :  { %472 = vmatpush.msra.mxu0 %v441_v39 }
  0x74   :  { %473 = vmatpush.msra.mxu0 %v440_v40 }
  0x76   :  { %474 = vmatpush.msra.mxu0 %v439_v41 }
  0xb4   :  { %v210_v48 = vpop.f32.mrf.mxu0 }
  0xb5   :  { %v211_v50 = vadd.f32 %v210_v48, %v183_v46  ;;  %v230_v52 = vpop.f32.mrf.mxu1  ;;  %v501_v46 = vld [vmem:[#allocation9] ss:$0 sm:$0xff] }
  0xb7   :  { %v231_v53 = vadd.f32 %v230_v52, %v211_v50 }
  0xb8   :  { %v250_v54 = vpop.f32.mrf.mxu2 }
  0xb9   :  { %v270_v55 = vpop.f32.mrf.mxu3  ;;  %v251_v56 = vadd.f32 %v250_v54, %v184_v51  ;;  %332 = vmatmul.f32.vlgmr.msrb.gmra.mxu0 %v231_v53 }
  0xbb   :  { %v271_v57 = vadd.f32 %v270_v55, %v251_v56 }
  0xbd   :  { %v275_v58 = vrot.slane %v271_v57, 6  ;;  %352 = vmatmul.f32.vlgmr.msrb.gmra.mxu1 %v271_v57 }
  0xbf   :  { %v277_v59 = vsel %vm276_vm0, %v231_v53, %v275_v58 }
  0xc0   :  { %279 = vst [vmem:[%s939_s11] sm:$0xf] %v277_v59 }
 0x136   :  { %v333_v14 = vpop.f32.mrf.mxu0 }
 0x137   :  { %v334_v15 = vadd.f32 %v498_v11, %v333_v14 }
 0x13a   :  { %v353_v16 = vpop.f32.mrf.mxu1 }
 0x13b   :  { %v354_v17 = vadd.f32 %v353_v16, %v334_v15 }
 0x13d   :  { %v356_v18 = vmax.f32 %v354_v17, 0.0 }
 0x13f   :  { %393 = vmatmul.f32.vlgmr.msrb.gmra.mxu2 %v356_v18 }
 0x1c2   :  { %v394_v36 = vpop.f32.mrf.mxu2 }
 0x1c3   :  { %v395_v37 = vadd.f32 %v499_v35, %v394_v36 }
 0x1c5   :  { %v397_v38 = vmax.f32 %v395_v37, 0.0 }
 0x1c7   :  { %434 = vmatmul.f32.vlgmr.msrb.gmra.mxu3 %v397_v38 }
 0x24a   :  { %v435_v43 = vpop.f32.mrf.mxu3 }
 0x24b   :  { %v436_v44 = vadd.f32 %v500_v42, %v435_v43 }
 0x24d   :  { %v438_v45 = vmax.f32 %v436_v44, 0.0 }
 0x24f   :  { %475 = vmatmul.f32.vlgmr.msra.gmra.mxu0 %v438_v45 }
 0x2cc   :  { %v476_v47 = vpop.f32.mrf.mxu0 }
 0x2cd   :  { %v477_v48 = vadd.f32 %v501_v46, %v476_v47 }
 0x2cf   :  { %479 = vst [vmem:[%s940_s12] sm:$0x3] %v477_v48 }
 0x2d0   :  { %488 = vsyncpa [#allocation3], 1 }
 0x2d1   :  { %489 = vsyncpa [#allocation5], 1 }
 0x2d2   :  { %490 = vsyncpa [#allocation8], 1 }

// kernel: transam_forward.5
= control target key start
LH: loop header
LB: loop body
LE: loop exit
PB: predicated region body
PF: predicated region fallthrough
CT: control target
= control target key end

     0   :  { %s3481_s0 = inlined_call_operand.vmem [shape: f32[2,1,256], index: 0, kind: input, shape index: {}]   ;;  %s3482_s1 = inlined_call_operand.hbm [shape: f32[8,3], index: 1, kind: input, shape index: {}]   ;;  %s3483_s2 = inlined_call_operand.hbm [shape: f32[8,1], index: 2, kind: input, shape index: {}]   ;;  %s3484_s3 = inlined_call_operand.hbm [shape: f32[3,16,8], index: 3, kind: input, shape index: {}]   ;;  %s3485_s4 = inlined_call_operand.hbm [shape: f32[16,1], index: 4, kind: input, shape index: {}]   ;;  %s3486_s5 = inlined_call_operand.vmem [shape: f32[3,32,16], index: 5, kind: input, shape index: {}]   ;;  %s3487_s6 = inlined_call_operand.vmem [shape: f32[32,1], index: 6, kind: input, shape index: {}]   ;;  %s3488_s7 = inlined_call_operand.hbm [shape: f32[3,64,32], index: 7, kind: input, shape index: {}]   ;;  %s3489_s8 = inlined_call_operand.hbm [shape: f32[64,1], index: 8, kind: input, shape index: {}]   ;;  %s3490_s9 = inlined_call_operand.hbm [shape: f32[64,14], index: 9, kind: input, shape index: {}]   ;;  %s3491_s10 = inlined_call_operand.<no memory space> [shape: f32[1,1], index: 10, kind: input, shape index: {}]   ;;  %s3492_s11 = inlined_call_operand.vmem [shape: f32[2,1,1], index: 11, kind: output, shape index: {}]  }
   0x1   :  { %v16_v0 = vstv %s3491_s10 }
   0x2   :  { %17 = vst [vmem:[#allocation2] sm:$0x1] %v16_v0 }
   0x3   :  { %18 = vsyncpa [#allocation4], 0 }
   0x4   :  { %19 = vsyncpa [#allocation6], 0 }
   0x5   :  { %20 = vsyncpa [#allocation9], 0 }
   0x6   :  { %21 = vsyncpa [#allocation12], 0  ;;  %s2679_s19 = smov 0  }
   0x7 LB: > { %s318_s22 = sshll.u32 %s3483_s2, 4  ;;  %s2688_s10 = sadd.s32 4294967295, %s2598_s19   ;;  %s2598_s19 = sphi %s2679_s19, %s27_s19   ;;  %s319_s22 = int_to_ptr.hbm [resolvable:$true] %s318_s22 }
   0x8   : > { %p1959_p0 = scmp.ge.s32.totalorder %s2598_s19, 1  ;;  %p294_p1 = scmp.lt.s32.totalorder %s2598_s19, 3 }
   0x9   : > { %p2289_p2 = scmp.eq.s32.totalorder %s2688_s10, 0  ;;  %s2600_s24 = smov [#allocation5]  }
   0xa   : > { %p2693_p3 = pnand %p1959_p0, %p294_p1  ;;  %s320_s25 = sshll.u32 %s2600_s24, 4  ;;  %s321_s25 = int_to_ptr.vmem [resolvable:$true] %s320_s25 }
   0xb   : > { %s343_s28 = sshll.u32 %s3485_s4, 4  ;;  %s2601_s30 = smov [#allocation8]   ;;  %s344_s28 = int_to_ptr.hbm [resolvable:$true] %s343_s28 }
   0xc   : > { %p2267_p4 = pneg %p2693_p3  ;;  %s345_s12 = sshll.u32 %s2601_s30, 4  ;;  %s346_s12 = int_to_ptr.vmem [resolvable:$true] %s345_s12 }
   0xd   : > { %s377_s15 = sshll.u32 %s3489_s8, 4  ;;  %s2602_s16 = smov 128   ;;  %s378_s15 = int_to_ptr.hbm [resolvable:$true] %s377_s15 }
   0xe   : > { %p2704_p5 = pnand %p2289_p2, %p2267_p4  ;;  %s2603_s17 = smov 8  }
   0xf   : > { %s2604_s18 = smov [#allocation11]   ;;  %s306_s26 = sshll.u32 %s3482_s1, 4  ;;  %s307_s26 = int_to_ptr.hbm [resolvable:$true] %s306_s26 }
  0x10   : > { %2273 = dma.hbm_to_vmem [thread:$0]  (!%p2704_p5), %s319_s22, 128, %s321_s25, [#allocation6]  }
  0x11   : > { %2279 = dma.hbm_to_vmem [thread:$0]  (!%p2704_p5), %s344_s28, 256, %s346_s12, [#allocation9], %s2602_s16, %s2602_s16, %s2603_s17  }
  0x12   : > { %s379_s20 = sshll.u32 %s2604_s18, 4  ;;  %s329_s27 = sshll.u32 %s3484_s3, 4  ;;  %s380_s20 = int_to_ptr.vmem [resolvable:$true] %s379_s20  ;;  %s330_s27 = int_to_ptr.hbm [resolvable:$true] %s329_s27 }
  0x13   : > { %2285 = dma.hbm_to_vmem [thread:$0]  (!%p2704_p5), %s378_s15, 1024, %s380_s20, [#allocation12], %s2602_s16, %s2602_s16, %s2603_s17  }
  0x14   : > { %s2605_s28 = smov [#allocation3]   ;;  %s2606_s12 = smov [#allocation7]  }
  0x15   : > { %s308_s30 = sshll.u32 %s2605_s28, 4  ;;  %s331_s13 = sshll.u32 %s2606_s12, 4  ;;  %s309_s30 = int_to_ptr.vmem [resolvable:$true] %s308_s30  ;;  %s332_s13 = int_to_ptr.vmem [resolvable:$true] %s331_s13 }
  0x16   : > { %2270 = dma.hbm_to_vmem [thread:$0]  (!%p2704_p5), %s307_s26, 128, %s309_s30, [#allocation4]  }
  0x17   : > { %s363_s21 = sshll.u32 %s3488_s7, 4  ;;  %s391_s24 = sshll.u32 %s3490_s9, 4  ;;  %s364_s21 = int_to_ptr.hbm [resolvable:$true] %s363_s21  ;;  %s392_s24 = int_to_ptr.hbm [resolvable:$true] %s391_s24 }
  0x18   : > { %2276 = dma.hbm_to_vmem [thread:$0]  (!%p2704_p5), %s330_s27, 768, %s332_s13, [#allocation6], %s2602_s16, %s2602_s16, %s2603_s17  }
  0x19   : > { %s2607_s22 = smov [#allocation10]   ;;  %s2608_s25 = smov [#allocation13]  }
  0x1a   : > { %s365_s26 = sshll.u32 %s2607_s22, 4  ;;  %s393_s28 = sshll.u32 %s2608_s25, 4  ;;  %s366_s26 = int_to_ptr.vmem [resolvable:$true] %s365_s26  ;;  %s394_s28 = int_to_ptr.vmem [resolvable:$true] %s393_s28 }
  0x1b   : > { %2282 = dma.hbm_to_vmem [thread:$0]  (!%p2704_p5), %s364_s21, 3072, %s366_s26, [#allocation9], %s2602_s16, %s2602_s16, %s2603_s17  }
  0x1c   : > { %2288 = dma.hbm_to_vmem [thread:$0]  (!%p2704_p5), %s392_s24, 1024, %s394_s28, [#allocation12], %s2602_s16, %s2602_s16, %s2603_s17  }
  0x1d   : > { %419 = sbr.rel (%p2693_p3) target bundleno = 1849 (0x739), region = 64 }
  0x22   : > { %2581 = dma.done.wait (%p2289_p2), [#allocation4], 128  }
  0x23   : > { %2583 = vsyncadd (%p2289_p2), [#allocation4], 4294967168 }
  0x24   : > { %2585 = dma.done.wait (%p2289_p2), [#allocation6], 896  }
  0x25   : > { %2587 = vsyncadd (%p2289_p2), [#allocation6], 4294966400 }
  0x26   : > { %2589 = dma.done.wait (%p2289_p2), [#allocation9], 3328  }
  0x27   : > { %2591 = vsyncadd (%p2289_p2), [#allocation9], 4294963968 }
  0x28   : > { %2593 = dma.done.wait (%p2289_p2), [#allocation12], 2048  }
  0x29   : > { %2595 = vsyncadd (%p2289_p2), [#allocation12], 4294965248  ;;  %v2609_v1 = vmov 1   ;;  %v2610_v2 = vmov 0   ;;  %v495_v3 = vld [vmem:[#allocation3] sm:$0xff]  ;;  %v2611_v4 = vmov 2   ;;  %v554_v16 = vlaneseq }
  0x2a   : > { %2327 = vset.pattern.permute.xlu0 %v2609_v1  ;;  %2329 = vset.pattern.permute.xlu1 %v2610_v2  ;;  %p487_p6 = scmp.lt.s32.totalorder %s2688_s10, 1  ;;  %s2612_s27 = smov 127   ;;  %v544_v14 = vld [vmem:[#allocation5] sm:$0xff]  ;;  %v880_v15 = vld [vmem:[#allocation8] sm:$0xff]  ;;  %vm786_vm0 = vcmask 1045504   ;;  %v2614_v22 = vmov 0.0  }
  0x2b   : > { %2330 = vset.pattern.permute.xlu2 %v2610_v2  ;;  %509 = vperm.xlu0 %2327, %v495_v3   ;;  %s2613_s30 = smov 126   ;;  %v2790_v17 = vshrl.u32 %v554_v16, 7  ;;  %v588_v18 = vand.u32 127, %v554_v16  ;;  %v2615_v28 = vmov 1.0  }
  0x2c   : > { %498 = vperm.xlu1 %2329, %v495_v3   ;;  %s3548_s10 = smov (!%p487_p6, %s2688_s10), 1 }
  0x2d   : > { %s1976_s23 = sshll.u32 %s3548_s10, 1  ;;  %v586_v19 = vadd.s32 248, %v2790_v17  ;;  %v2793_v20 = vmul.u32 2, %v588_v18  ;;  %v2802_v24 = vadd.s32 120, %v2790_v17  ;;  %v585_v26 = vadd.s32 240, %v2790_v17  ;;  %v874_v18 = vld [vmem:[#allocation7] sm:$0xff]  ;;  %s493_s12 = scalar_lea.vmem %s3492_s11, %s3548_s10 }
  0x2e   : > { %s490_s17 = scalar_lea.vmem %s3481_s0, %s1976_s23  ;;  %v2811_v27 = vadd.s32 112, %v2790_v17  ;;  %v584_v29 = vadd.s32 232, %v2790_v17  ;;  %v2831_v30 = vadd.s32 104, %v2790_v17  ;;  %v583_v31 = vadd.s32 224, %v2790_v17 }
  0x2f   : > { %v494_v5 = vld [vmem:[%s490_s17] sm:$0x3]  ;;  %vm621_vm1 = vcmp.eq.s32.totalorder %v586_v19, %v2793_v20  ;;  %v2797_v21 = vadd.s32 1, %v2793_v20  ;;  %vm605_vm3 = vcmp.eq.s32.totalorder %v2802_v24, %v2793_v20  ;;  %vm620_vm5 = vcmp.eq.s32.totalorder %v585_v26, %v2793_v20 }
  0x30   : > { %v2778_v6 = vperm.slane %v494_v5, 0  ;;  %v2780_v7 = vperm.slane %v494_v5, 1  ;;  %v2008_v23 = vsel %vm621_vm1, 1.0, %v2614_v22  ;;  %2041 = vmatpush.msk.msra.mxu0 %vm605_vm3, %v2615_v28  ;;  %vm604_vm7 = vcmp.eq.s32.totalorder %v2811_v27, %v2793_v20 }
  0x31   : > { %2057 = vmatpush.msk.msra.mxu1 %vm786_vm0, %v2008_v23  ;;  %vm718_vm2 = vcmp.eq.s32.totalorder %v586_v19, %v2797_v21  ;;  %vm702_vm4 = vcmp.eq.s32.totalorder %v2802_v24, %v2797_v21  ;;  %vm717_vm6 = vcmp.eq.s32.totalorder %v585_v26, %v2797_v21  ;;  %vm701_vm8 = vcmp.eq.s32.totalorder %v2811_v27, %v2797_v21  ;;  %v875_v19 = vld [vmem:[#allocation7 + $0x8] sm:$0xff]  ;;  %v881_v23 = vld [vmem:[#allocation8 + $0x8] sm:$0xff]  ;;  %v878_v26 = vld [vmem:[#allocation7 + $0x20] sm:$0xff] }
  0x32   : > { %v2040_v25 = vsel %vm718_vm2, 1.0, %v2614_v22  ;;  %2074 = vmatpush.msk.msra.mxu2 %vm702_vm4, %v2615_v28  ;;  %2042 = vmatpush.msk.msra.mxu0 %vm604_vm7, %v2615_v28  ;;  %v2843_v32 = vadd.s32 96, %v2790_v17  ;;  %v582_v33 = vadd.s32 216, %v2790_v17  ;;  %v2847_v34 = vadd.s32 88, %v2790_v17  ;;  %v879_v24 = vld [vmem:[#allocation7 + $0x28] sm:$0xff] }
  0x33   : > { %2328 = vset.pattern.permute.xlu0 %v2611_v4  ;;  %2090 = vmatpush.msk.msra.mxu3 %vm786_vm0, %v2040_v25  ;;  %vm619_vm9 = vcmp.eq.s32.totalorder %v584_v29, %v2793_v20  ;;  %vm716_vm10 = vcmp.eq.s32.totalorder %v584_v29, %v2797_v21  ;;  %vm603_vm11 = vcmp.eq.s32.totalorder %v2831_v30, %v2793_v20  ;;  %v581_v35 = vadd.s32 208, %v2790_v17  ;;  %v1069_v25 = vld [vmem:[%s3487_s6 + $0x10] sm:$0xff]  ;;  %v876_v29 = vld [vmem:[#allocation7 + $0x10] sm:$0xff] }
  0x34   : > { %527 = vperm.xlu0 %2328, %v495_v3   ;;  %2058 = vmatpush.msk.msra.mxu1 %vm620_vm5, %v2615_v28  ;;  %vm700_vm12 = vcmp.eq.s32.totalorder %v2831_v30, %v2797_v21  ;;  %vm618_vm13 = vcmp.eq.s32.totalorder %v583_v31, %v2793_v20  ;;  %vm715_vm14 = vcmp.eq.s32.totalorder %v583_v31, %v2797_v21  ;;  %v2875_v36 = vadd.s32 80, %v2790_v17 }
  0x35   : > { %2091 = vmatpush.msk.msra.mxu3 %vm717_vm6, %v2615_v28  ;;  %2075 = vmatpush.msk.msra.mxu2 %vm701_vm8, %v2615_v28  ;;  %vm3494_vm15 = vcmp.eq.s32.totalorder %v2843_v32, %v2793_v20  ;;  %vm3493_vm0 = vcmp.eq.s32.totalorder %v2843_v32, %v2797_v21  ;;  %vm617_vm1 = vcmp.eq.s32.totalorder %v582_v33, %v2793_v20  ;;  %v580_v37 = vadd.s32 200, %v2790_v17 }
  0x36   : > { %2059 = vmatpush.msk.msra.mxu1 %vm619_vm9, %v2615_v28  ;;  %2043 = vmatpush.msk.msra.mxu0 %vm603_vm11, %v2615_v28  ;;  %vm714_vm2 = vcmp.eq.s32.totalorder %v582_v33, %v2797_v21  ;;  %vm3496_vm5 = vcmp.eq.s32.totalorder %v2847_v34, %v2793_v20  ;;  %vm3495_vm6 = vcmp.eq.s32.totalorder %v2847_v34, %v2797_v21  ;;  %v2895_v38 = vadd.s32 72, %v2790_v17 }
  0x37   : > { %2092 = vmatpush.msk.msra.mxu3 %vm716_vm10, %v2615_v28  ;;  %2076 = vmatpush.msk.msra.mxu2 %vm700_vm12, %v2615_v28  ;;  %vm616_vm9 = vcmp.eq.s32.totalorder %v581_v35, %v2793_v20  ;;  %vm713_vm10 = vcmp.eq.s32.totalorder %v581_v35, %v2797_v21  ;;  %v579_v39 = vadd.s32 192, %v2790_v17  ;;  %v2905_v40 = vadd.s32 64, %v2790_v17 }
  0x38   : > { %2060 = vmatpush.msk.msra.mxu1 %vm618_vm13, %v2615_v28  ;;  %2044 = vmatpush.msk.msra.mxu0 %vm3494_vm15, %v2615_v28  ;;  %vm600_vm13 = vcmp.eq.s32.totalorder %v2875_v36, %v2793_v20  ;;  %vm3498_vm15 = vcmp.eq.s32.totalorder %v2895_v38, %v2797_v21  ;;  %v578_v41 = vadd.s32 184, %v2790_v17  ;;  %v2949_v42 = vadd.s32 56, %v2790_v17 }
  0x39   : > { %2093 = vmatpush.msk.msra.mxu3 %vm715_vm14, %v2615_v28  ;;  %2077 = vmatpush.msk.msra.mxu2 %vm3493_vm0, %v2615_v28  ;;  %vm697_vm14 = vcmp.eq.s32.totalorder %v2875_v36, %v2797_v21  ;;  %vm3510_vm0 = vcmp.eq.s32.totalorder %v2895_v38, %v2793_v20  ;;  %v577_v43 = vadd.s32 176, %v2790_v17  ;;  %v2969_v44 = vadd.s32 48, %v2790_v17 }
  0x3a   : > { %2061 = vmatpush.msk.msra.mxu1 %vm617_vm1, %v2615_v28  ;;  %2045 = vmatpush.msk.msra.mxu0 %vm3496_vm5, %v2615_v28  ;;  %vm615_vm1 = vcmp.eq.s32.totalorder %v580_v37, %v2793_v20  ;;  %vm3499_vm5 = vcmp.eq.s32.totalorder %v2905_v40, %v2797_v21  ;;  %v576_v45 = vadd.s32 168, %v2790_v17  ;;  %v2989_v46 = vadd.s32 40, %v2790_v17 }
  0x3b   : > { %2094 = vmatpush.msk.msra.mxu3 %vm714_vm2, %v2615_v28  ;;  %2078 = vmatpush.msk.msra.mxu2 %vm3495_vm6, %v2615_v28  ;;  %vm712_vm2 = vcmp.eq.s32.totalorder %v580_v37, %v2797_v21  ;;  %vm3497_vm6 = vcmp.eq.s32.totalorder %v2905_v40, %v2793_v20  ;;  %v575_v47 = vadd.s32 160, %v2790_v17  ;;  %v2995_v48 = vadd.s32 32, %v2790_v17 }
  0x3c   : > { %2331 = vset.pattern.permute.xlu0 %v2610_v2  ;;  %2062 = vmatpush.msk.msra.mxu1 %vm616_vm9, %v2615_v28  ;;  %vm614_vm9 = vcmp.eq.s32.totalorder %v579_v39, %v2793_v20  ;;  %v574_v49 = vadd.s32 152, %v2790_v17  ;;  %v3030_v50 = vadd.s32 24, %v2790_v17  ;;  %v573_v51 = vadd.s32 144, %v2790_v17 }
  0x3d   : > { %2095 = vmatpush.msk.msra.mxu3 %vm713_vm10, %v2615_v28  ;;  %2046 = vmatpush.msk.msra.mxu0 %vm600_vm13, %v2615_v28  ;;  %vm711_vm10 = vcmp.eq.s32.totalorder %v579_v39, %v2797_v21  ;;  %v3049_v52 = vadd.s32 16, %v2790_v17  ;;  %v572_v53 = vadd.s32 136, %v2790_v17  ;;  %v3069_v54 = vadd.s32 8, %v2790_v17  ;;  %v877_v39 = vld [vmem:[#allocation7 + $0x18] sm:$0xff] }
  0x3e   : > { %2079 = vmatpush.msk.msra.mxu2 %vm697_vm14, %v2615_v28  ;;  %2063 = vmatpush.msk.msra.mxu1 %vm615_vm1, %v2615_v28  ;;  %vm613_vm1 = vcmp.eq.s32.totalorder %v578_v41, %v2793_v20  ;;  %v571_v55 = vadd.s32 128, %v2790_v17  ;;  %v1992_v31 = vsel %vm605_vm3, 1.0, %v2614_v22  ;;  %v2024_v33 = vsel %vm702_vm4, 1.0, %v2614_v22 }
  0x3f   : > { %2096 = vmatpush.msk.msra.mxu3 %vm712_vm2, %v2615_v28  ;;  %2047 = vmatpush.msk.msra.mxu0 %vm3510_vm0, %v2615_v28  ;;  %vm710_vm2 = vcmp.eq.s32.totalorder %v578_v41, %v2797_v21  ;;  %vm3514_vm3 = vcmp.eq.s32.totalorder %v2843_v32, %v2793_v20  ;;  %vm3515_vm4 = vcmp.eq.s32.totalorder %v2843_v32, %v2797_v21 }
  0x40   : > { %2080 = vmatpush.msk.msra.mxu2 %vm3498_vm15, %v2615_v28  ;;  %2064 = vmatpush.msk.msra.mxu1 %vm614_vm9, %v2615_v28  ;;  %vm3502_vm9 = vcmp.eq.s32.totalorder %v2949_v42, %v2793_v20  ;;  %vm709_vm15 = vcmp.eq.s32.totalorder %v577_v43, %v2797_v21  ;;  %vm703_vm0 = vcmp.eq.s32.totalorder %v571_v55, %v2797_v21 }
  0x41   : > { %2097 = vmatpush.msk.msra.mxu3 %vm711_vm10, %v2615_v28  ;;  %2048 = vmatpush.msk.msra.mxu0 %vm3497_vm6, %v2615_v28  ;;  %vm3500_vm10 = vcmp.eq.s32.totalorder %v2949_v42, %v2797_v21  ;;  %vm612_vm6 = vcmp.eq.s32.totalorder %v577_v43, %v2793_v20 }
  0x42   : > { %2081 = vmatpush.msk.msra.mxu2 %vm3499_vm5, %v2615_v28  ;;  %2065 = vmatpush.msk.msra.mxu1 %vm613_vm1, %v2615_v28  ;;  %vm3501_vm5 = vcmp.eq.s32.totalorder %v2969_v44, %v2793_v20  ;;  %vm3503_vm1 = vcmp.eq.s32.totalorder %v2969_v44, %v2797_v21 }
  0x43   : > { %2098 = vmatpush.msk.msra.mxu3 %vm710_vm2, %v2615_v28  ;;  %2049 = vmatpush.msk.msra.mxu0 %vm3502_vm9, %v2615_v28  ;;  %vm3504_vm2 = vcmp.eq.s32.totalorder %v2989_v46, %v2793_v20  ;;  %vm707_vm9 = vcmp.eq.s32.totalorder %v575_v47, %v2797_v21 }
  0x44   : > { %2082 = vmatpush.msk.msra.mxu2 %vm3500_vm10, %v2615_v28  ;;  %2066 = vmatpush.msk.msra.mxu1 %vm612_vm6, %v2615_v28  ;;  %vm611_vm6 = vcmp.eq.s32.totalorder %v576_v45, %v2793_v20  ;;  %vm3505_vm10 = vcmp.eq.s32.totalorder %v2989_v46, %v2797_v21 }
  0x45   : > { %2099 = vmatpush.msk.msra.mxu3 %vm709_vm15, %v2615_v28  ;;  %2050 = vmatpush.msk.msra.mxu0 %vm3501_vm5, %v2615_v28  ;;  %vm708_vm15 = vcmp.eq.s32.totalorder %v576_v45, %v2797_v21  ;;  %vm610_vm5 = vcmp.eq.s32.totalorder %v575_v47, %v2793_v20 }
  0x46   : > { %2083 = vmatpush.msk.msra.mxu2 %vm3503_vm1, %v2615_v28  ;;  %2067 = vmatpush.msk.msra.mxu1 %vm611_vm6, %v2615_v28  ;;  %vm3506_vm6 = vcmp.eq.s32.totalorder %v2995_v48, %v2793_v20  ;;  %vm609_vm1 = vcmp.eq.s32.totalorder %v574_v49, %v2793_v20 }
  0x47   : > { %2100 = vmatpush.msk.msra.mxu3 %vm708_vm15, %v2615_v28  ;;  %2051 = vmatpush.msk.msra.mxu0 %vm3504_vm2, %v2615_v28  ;;  %vm3508_vm15 = vcmp.eq.s32.totalorder %v2995_v48, %v2797_v21  ;;  %vm706_vm2 = vcmp.eq.s32.totalorder %v574_v49, %v2797_v21 }
  0x48   : > { %2084 = vmatpush.msk.msra.mxu2 %vm3505_vm10, %v2615_v28  ;;  %2068 = vmatpush.msk.msra.mxu1 %vm610_vm5, %v2615_v28  ;;  %vm3507_vm10 = vcmp.eq.s32.totalorder %v3030_v50, %v2793_v20  ;;  %vm3509_vm5 = vcmp.eq.s32.totalorder %v3030_v50, %v2797_v21 }
  0x49   : > { %2101 = vmatpush.msk.msra.mxu3 %vm707_vm9, %v2615_v28  ;;  %2052 = vmatpush.msk.msra.mxu0 %vm3506_vm6, %v2615_v28  ;;  %vm608_vm9 = vcmp.eq.s32.totalorder %v573_v51, %v2793_v20  ;;  %vm705_vm6 = vcmp.eq.s32.totalorder %v573_v51, %v2797_v21 }
  0x4a   : > { %2085 = vmatpush.msk.msra.mxu2 %vm3508_vm15, %v2615_v28  ;;  %2069 = vmatpush.msk.msra.mxu1 %vm609_vm1, %v2615_v28  ;;  %vm3511_vm1 = vcmp.eq.s32.totalorder %v3049_v52, %v2793_v20  ;;  %vm704_vm15 = vcmp.eq.s32.totalorder %v572_v53, %v2797_v21 }
  0x4b   : > { %2102 = vmatpush.msk.msra.mxu3 %vm706_vm2, %v2615_v28  ;;  %2053 = vmatpush.msk.msra.mxu0 %vm3507_vm10, %v2615_v28  ;;  %vm689_vm2 = vcmp.eq.s32.totalorder %v3049_v52, %v2797_v21  ;;  %vm607_vm10 = vcmp.eq.s32.totalorder %v572_v53, %v2793_v20 }
  0x4c   : > { %2086 = vmatpush.msk.msra.mxu2 %vm3509_vm5, %v2615_v28  ;;  %2070 = vmatpush.msk.msra.mxu1 %vm608_vm9, %v2615_v28  ;;  %vm591_vm9 = vcmp.eq.s32.totalorder %v3069_v54, %v2793_v20  ;;  %vm606_vm5 = vcmp.eq.s32.totalorder %v571_v55, %v2793_v20 }
  0x4d   : > { %2103 = vmatpush.msk.msra.mxu3 %vm705_vm6, %v2615_v28  ;;  %2054 = vmatpush.msk.msra.mxu0 %vm3511_vm1, %v2615_v28  ;;  %vm688_vm6 = vcmp.eq.s32.totalorder %v3069_v54, %v2797_v21  ;;  %vm590_vm1 = vcmp.eq.s32.totalorder %v2790_v17, %v2793_v20 }
  0x4e   : > { %2087 = vmatpush.msk.msra.mxu2 %vm689_vm2, %v2615_v28  ;;  %2071 = vmatpush.msk.msra.mxu1 %vm607_vm10, %v2615_v28  ;;  %vm687_vm10 = vcmp.eq.s32.totalorder %v2790_v17, %v2797_v21 }
  0x4f   : > { %2104 = vmatpush.msk.msra.mxu3 %vm704_vm15, %v2615_v28  ;;  %2055 = vmatpush.msk.msra.mxu0 %vm591_vm9, %v2615_v28  ;;  %vm520_vm15 = vcmask 1039360  }
  0x50   : > { %2088 = vmatpush.msk.msra.mxu2 %vm688_vm6, %v2615_v28  ;;  %2072 = vmatpush.msk.msra.mxu1 %vm606_vm5, %v2615_v28  ;;  %vm886_vm5 = vcmask 64512  }
  0x51   : > { %2105 = vmatpush.msk.msra.mxu3 %vm703_vm0, %v2615_v28  ;;  %2056 = vmatpush.msk.msra.mxu0 %vm590_vm1, %v2615_v28  ;;  %vm538_vm0 = vcmask 1031168  }
  0x52   : > { %2089 = vmatpush.msk.msra.mxu2 %vm687_vm10, %v2615_v28 }
  0x9d   : > { %v510_v8 = vpop.permute.xlu0 %509 }
  0x9e   : > { %v512_v9 = vmul.f32 %v510_v8, %v2778_v6  ;;  %v513_v10 = vmul.f32 %v510_v8, %v2780_v7  ;;  %v499_v56 = vpop.permute.xlu1 %498 }
  0x9f   : > { %v507_v60 = vmul.f32 %v2780_v7, %v499_v56  ;;  %v506_v62 = vmul.f32 %v2778_v6, %v499_v56 }
  0xa0   : > { %518 = vrot.lane.b32.xlu2 %v513_v10, %s2612_s27  ;;  %516 = vrot.lane.b32.xlu1 %v512_v9, %s2612_s27 }
  0xa6   : > { %v528_v11 = vpop.permute.xlu0 %527 }
  0xa7   : > { %v530_v12 = vmul.f32 %v528_v11, %v2778_v6  ;;  %v531_v13 = vmul.f32 %v528_v11, %v2780_v7 }
  0xa9   : > { %534 = vrot.lane.b32.xlu2 %v530_v12, %s2613_s30  ;;  %536 = vrot.lane.b32.xlu1 %v531_v13, %s2613_s30 }
  0xb1   : > { %547 = vperm.xlu2 %2330, %v544_v14  }
  0xb9   : > { %981 = vperm.xlu2 %2330, %v880_v15  }
  0xfa   : > { %v519_v57 = vpop.permute.xlu2 %518 }
  0xfb   : > { %v525_v63 = vadd.f32 %v519_v57, %v507_v60 }
 0x103   : > { %v535_v59 = vpop.permute.xlu2 %534 }
 0x10b   : > { %v548_v4 = vpop.permute.xlu2 %547 }
 0x112   : > { %v517_v58 = vpop.permute.xlu1 %516 }
 0x113   : > { %v521_v61 = vsel %vm520_vm15, %v517_v58, %v519_v57  ;;  %vm1000_vm15 = vcmask 1044480   ;;  %v982_v36 = vpop.permute.xlu2 %981 }
 0x114   : > { %v524_v0 = vadd.f32 %v521_v61, %v506_v62 }
 0x11b   : > { %v537_v1 = vpop.permute.xlu1 %536 }
 0x11c   : > { %v539_v2 = vsel %vm538_vm0, %v535_v59, %v537_v1  ;;  %v543_v3 = vadd.f32 %v537_v1, %v525_v63  ;;  %v1067_v1 = vld [vmem:[%s3487_s6] sm:$0xff] }
 0x11d   : > { %v542_v5 = vadd.f32 %v539_v2, %v524_v0  ;;  %v1068_v0 = vld [vmem:[%s3487_s6 + $0x8] sm:$0xff]  ;;  %v1070_v2 = vld [vmem:[%s3487_s6 + $0x18] sm:$0xff] }
 0x11e   : > { %v551_v8 = vadd.f32 %v548_v4, %v543_v3  ;;  %v1055_v3 = vld [vmem:[%s3486_s5] sm:$0xff] }
 0x11f   : > { %v550_v9 = vadd.f32 %v548_v4, %v542_v5 }
 0x120   : > { %v553_v10 = vmax.f32 %v551_v8, 0.0  ;;  %v1056_v8 = vld [vmem:[%s3486_s5 + $0x8] sm:$0xff] }
 0x121   : > { %v552_v11 = vmax.f32 %v550_v9, 0.0 }
 0x122   : > { %2073 = vmatmul.msk.f32.vlgmr.msra.gmra.mxu1 %vm538_vm0, %v553_v10  ;;  %2106 = vmatmul.msk.f32.vlgmr.msra.gmra.mxu3 %vm538_vm0, %v553_v10  ;;  %vm3520_vm0 = vcmp.eq.s32.totalorder %v2905_v40, %v2793_v20  ;;  %v1059_v10 = vld [vmem:[%s3486_s5 + $0x20] sm:$0xff] }
 0x123   : > { %806 = vmatmul.f32.vlgmr.msra.gmra.mxu0 %v552_v11  ;;  %849 = vmatmul.f32.vlgmr.msra.gmra.mxu2 %v552_v11  ;;  %v1057_v11 = vld [vmem:[%s3486_s5 + $0x10] sm:$0xff] }
 0x19f   : > { %v827_v7 = vpop.f32.mrf.mxu1 }
 0x1a0   : > { %v807_v12 = vpop.f32.mrf.mxu0 }
 0x1a1   : > { %v828_v14 = vadd.f32 %v827_v7, %v807_v12  ;;  %v1060_v7 = vld [vmem:[%s3486_s5 + $0x28] sm:$0xff]  ;;  %v1058_v12 = vld [vmem:[%s3486_s5 + $0x18] sm:$0xff] }
 0x1a5   : > { %v870_v13 = vpop.f32.mrf.mxu3 }
 0x1a6   : > { %v850_v6 = vpop.f32.mrf.mxu2 }
 0x1a7   : > { %v871_v15 = vadd.f32 %v870_v13, %v850_v6  ;;  %v1061_v13 = vld [vmem:[%s3486_s5 + $0x30] sm:$0xff] }
 0x1a9   : > { %v873_v16 = vmax.f32 %v828_v14, %v871_v15 }
 0x1ab   : > { %883 = vrot.lane.b32.xlu1 %v873_v16, %s2612_s27  ;;  %945 = vrot.lane.b32.xlu0 %v873_v16, %s2613_s30 }
 0x1ac   : > { %937 = vmatpush.msrb.mxu1 %v873_v16 }
 0x1ad   : > { %2109 = vmatmul.msk.f32.vlgmr.msrb.gmra.mxu1 %vm886_vm5, %v874_v18  ;;  %v1063_v18 = vld [vmem:[%s3486_s5 + $0x40] sm:$0xff] }
 0x1b3   : > { %986 = vperm.xlu0 %2331, %v881_v23  }
 0x1b5   : > { %2110 = vmatmul.msk.f32.gmra.mxu1 %vm886_vm5, %v875_v19  ;;  %v1062_v19 = vld [vmem:[%s3486_s5 + $0x38] sm:$0xff] }
 0x1bb   : > { %1225 = vperm.xlu0 %2331, %v1069_v25  }
 0x21d   : > { %v884_v35 = vpop.permute.xlu1 %883  ;;  %v946_v37 = vpop.permute.xlu0 %945 }
 0x21e   : > { %908 = vmatpush.msrb.mxu0 %v884_v35  ;;  %969 = vmatpush.msrb.mxu3 %v946_v37 }
 0x21f   : > { %2111 = vmatmul.msk.f32.vlgmr.msrb.gmra.mxu3 %vm886_vm5, %v878_v26  ;;  %2107 = vmatmul.msk.f32.vlgmr.msrb.gmra.mxu0 %vm886_vm5, %v876_v29 }
 0x220   : > { %2113 = vmatpush.msk.msra.mxu3 %vm1000_vm15, %v1992_v31  ;;  %2131 = vmatpush.msk.msra.mxu0 %vm1000_vm15, %v2024_v33  ;;  %vm3524_vm15 = vcmp.eq.s32.totalorder %v2969_v44, %v2793_v20 }
 0x222   : > { %2114 = vmatpush.msk.msra.mxu3 %vm604_vm7, %v2615_v28  ;;  %2132 = vmatpush.msk.msra.mxu0 %vm701_vm8, %v2615_v28  ;;  %vm3516_vm7 = vcmp.eq.s32.totalorder %v2847_v34, %v2793_v20  ;;  %vm3517_vm8 = vcmp.eq.s32.totalorder %v2847_v34, %v2797_v21 }
 0x224   : > { %2115 = vmatpush.msk.msra.mxu3 %vm603_vm11, %v2615_v28  ;;  %2133 = vmatpush.msk.msra.mxu0 %vm700_vm12, %v2615_v28  ;;  %vm3518_vm11 = vcmp.eq.s32.totalorder %v2895_v38, %v2793_v20  ;;  %vm3519_vm12 = vcmp.eq.s32.totalorder %v2895_v38, %v2797_v21 }
 0x225   : > { %v987_v53 = vpop.permute.xlu0 %986 }
 0x226   : > { %2116 = vmatpush.msk.msra.mxu3 %vm3514_vm3, %v2615_v28  ;;  %2134 = vmatpush.msk.msra.mxu0 %vm3515_vm4, %v2615_v28  ;;  %vm3525_vm3 = vcmp.eq.s32.totalorder %v2969_v44, %v2797_v21  ;;  %vm3526_vm4 = vcmp.eq.s32.totalorder %v2989_v46, %v2793_v20 }
 0x227   : > { %2112 = vmatmul.msk.f32.gmra.mxu3 %vm886_vm5, %v879_v24  ;;  %2108 = vmatmul.msk.f32.gmra.mxu0 %vm886_vm5, %v877_v39  ;;  %vm3523_vm5 = vcmp.eq.s32.totalorder %v2949_v42, %v2797_v21 }
 0x228   : > { %2117 = vmatpush.msk.msra.mxu3 %vm3516_vm7, %v2615_v28  ;;  %2135 = vmatpush.msk.msra.mxu0 %vm3517_vm8, %v2615_v28  ;;  %vm3527_vm7 = vcmp.eq.s32.totalorder %v2989_v46, %v2797_v21  ;;  %vm3528_vm8 = vcmp.eq.s32.totalorder %v2995_v48, %v2793_v20 }
 0x22a   : > { %2118 = vmatpush.msk.msra.mxu3 %vm600_vm13, %v2615_v28  ;;  %2136 = vmatpush.msk.msra.mxu0 %vm697_vm14, %v2615_v28  ;;  %vm3521_vm13 = vcmp.eq.s32.totalorder %v2905_v40, %v2797_v21  ;;  %vm3522_vm14 = vcmp.eq.s32.totalorder %v2949_v42, %v2793_v20  ;;  %v939_v27 = vpop.f32.mrf.mxu1 }
 0x22c   : > { %2119 = vmatpush.msk.msra.mxu3 %vm3518_vm11, %v2615_v28  ;;  %2137 = vmatpush.msk.msra.mxu0 %vm3519_vm12, %v2615_v28  ;;  %vm3529_vm11 = vcmp.eq.s32.totalorder %v2995_v48, %v2797_v21  ;;  %vm3530_vm12 = vcmp.eq.s32.totalorder %v3030_v50, %v2793_v20 }
 0x22e   : > { %2120 = vmatpush.msk.msra.mxu3 %vm3520_vm0, %v2615_v28  ;;  %2138 = vmatpush.msk.msra.mxu0 %vm3521_vm13, %v2615_v28  ;;  %vm3531_vm0 = vcmp.eq.s32.totalorder %v3030_v50, %v2797_v21  ;;  %vm3532_vm13 = vcmp.eq.s32.totalorder %v3049_v52, %v2793_v20 }
 0x230   : > { %2121 = vmatpush.msk.msra.mxu3 %vm3522_vm14, %v2615_v28  ;;  %2139 = vmatpush.msk.msra.mxu0 %vm3523_vm5, %v2615_v28  ;;  %vm993_vm14 = vcmask 1022976   ;;  %vm1079_vm5 = vcmask 130048  }
 0x232   : > { %2122 = vmatpush.msk.msra.mxu3 %vm3524_vm15, %v2615_v28  ;;  %2140 = vmatpush.msk.msra.mxu0 %vm3525_vm3, %v2615_v28  ;;  %v942_v41 = vpop.f32.mrf.mxu1  ;;  %vm3533_vm15 = vcmp.eq.s32.totalorder %v2949_v42, %v2793_v20  ;;  %vm3534_vm3 = vcmp.eq.s32.totalorder %v2949_v42, %v2797_v21 }
 0x233   : > { %v1984_v6 = vsel %vm3533_vm15, 1.0, %v2614_v22  ;;  %v2016_v14 = vsel %vm3534_vm3, 1.0, %v2614_v22  ;;  %vm3542_vm15 = vcmp.eq.s32.totalorder %v3030_v50, %v2797_v21  ;;  %vm3543_vm3 = vcmp.eq.s32.totalorder %v3049_v52, %v2793_v20 }
 0x234   : > { %2123 = vmatpush.msk.msra.mxu3 %vm3526_vm4, %v2615_v28  ;;  %2141 = vmatpush.msk.msra.mxu0 %vm3527_vm7, %v2615_v28  ;;  %vm1254_vm4 = vcmask 1043456   ;;  %vm3535_vm7 = vcmp.eq.s32.totalorder %v2969_v44, %v2797_v21 }
 0x236   : > { %2124 = vmatpush.msk.msra.mxu3 %vm3528_vm8, %v2615_v28  ;;  %2142 = vmatpush.msk.msra.mxu0 %vm3529_vm11, %v2615_v28  ;;  %vm3536_vm8 = vcmp.eq.s32.totalorder %v2969_v44, %v2793_v20  ;;  %vm3537_vm11 = vcmp.eq.s32.totalorder %v2989_v46, %v2793_v20  ;;  %v1064_v44 = vld [vmem:[%s3486_s5 + $0x48] sm:$0xff] }
 0x238   : > { %2125 = vmatpush.msk.msra.mxu3 %vm3530_vm12, %v2615_v28  ;;  %2143 = vmatpush.msk.msra.mxu0 %vm3531_vm0, %v2615_v28  ;;  %vm3538_vm12 = vcmp.eq.s32.totalorder %v2989_v46, %v2797_v21  ;;  %vm3539_vm0 = vcmp.eq.s32.totalorder %v2995_v48, %v2793_v20  ;;  %v1065_v46 = vld [vmem:[%s3486_s5 + $0x50] sm:$0xff] }
 0x23a   : > { %2126 = vmatpush.msk.msra.mxu3 %vm3532_vm13, %v2615_v28  ;;  %2144 = vmatpush.msk.msra.mxu0 %vm689_vm2, %v2615_v28  ;;  %vm3540_vm13 = vcmp.eq.s32.totalorder %v2995_v48, %v2797_v21  ;;  %v1066_v48 = vld [vmem:[%s3486_s5 + $0x58] sm:$0xff] }
 0x23c   : > { %2127 = vmatpush.msk.msra.mxu3 %vm591_vm9, %v2615_v28  ;;  %2145 = vmatpush.msk.msra.mxu0 %vm688_vm6, %v2615_v28 }
 0x23e   : > { %2128 = vmatpush.msk.msra.mxu3 %vm590_vm1, %v2615_v28  ;;  %2146 = vmatpush.msk.msra.mxu0 %vm687_vm10, %v2615_v28 }
 0x240   : > { %2161 = vmatpush.msk.msrb.mxu0 %vm1254_vm4, %v1984_v6  ;;  %v1350_v6 = vld [vmem:[#allocation11 + $0x18] sm:$0xff] }
 0x242   : > { %2162 = vmatpush.msk.msrb.mxu0 %vm3536_vm8, %v2615_v28  ;;  %vm3544_vm8 = vmmov %vm3542_vm15 }
 0x244   : > { %2163 = vmatpush.msk.msrb.mxu0 %vm3537_vm11, %v2615_v28  ;;  %vm1839_vm11 = vcmask 0  }
 0x246   : > { %2164 = vmatpush.msk.msrb.mxu0 %vm3539_vm0, %v2615_v28 }
 0x29c   : > { %v910_v30 = vpop.f32.mrf.mxu0 }
 0x29d   : > { %v940_v32 = vadd.f32 %v939_v27, %v910_v30 }
 0x2a2   : > { %v971_v34 = vpop.f32.mrf.mxu3 }
 0x2a3   : > { %v977_v38 = vadd.f32 %v971_v34, %v940_v32 }
 0x2a4   : > { %v913_v40 = vpop.f32.mrf.mxu0 }
 0x2a5   : > { %v989_v43 = vadd.f32 %v982_v36, %v977_v38  ;;  %v943_v47 = vadd.f32 %v942_v41, %v913_v40 }
 0x2a7   : > { %v991_v45 = vmax.f32 %v989_v43, 0.0 }
 0x2a9   : > { %2129 = vmatmul.msk.f32.vlgmr.msra.gmra.mxu3 %vm993_vm14, %v991_v45  ;;  %2147 = vmatmul.msk.f32.vlgmr.msra.gmra.mxu0 %vm993_vm14, %v991_v45 }
 0x2aa   : > { %v974_v49 = vpop.f32.mrf.mxu3 }
 0x2ab   : > { %v978_v51 = vadd.f32 %v974_v49, %v943_v47  ;;  %v1226_v47 = vpop.permute.xlu0 %1225 }
 0x2ad   : > { %v990_v55 = vadd.f32 %v987_v53, %v978_v51 }
 0x2af   : > { %v992_v56 = vmax.f32 %v990_v55, 0.0 }
 0x2b1   : > { %2130 = vmatmul.msk.f32.gmra.mxu3 %vm993_vm14, %v992_v56  ;;  %2148 = vmatmul.msk.f32.gmra.mxu0 %vm993_vm14, %v992_v56  ;;  %vm3541_vm14 = vcmp.eq.s32.totalorder %v3030_v50, %v2793_v20 }
 0x2b2   : > { %2165 = vmatpush.msk.msrb.mxu0 %vm3541_vm14, %v2615_v28 }
 0x2b4   : > { %2166 = vmatpush.msk.msrb.mxu0 %vm3543_vm3, %v2615_v28 }
 0x2b6   : > { %2167 = vmatpush.msk.msrb.mxu0 %vm591_vm9, %v2615_v28 }
 0x2b8   : > { %2168 = vmatpush.msk.msrb.mxu0 %vm590_vm1, %v2615_v28 }
 0x326   : > { %v1047_v57 = vpop.f32.mrf.mxu0 }
 0x32c   : > { %v1021_v58 = vpop.f32.mrf.mxu3 }
 0x32d   : > { %v1053_v61 = vmax.f32 %v1021_v58, %v1047_v57 }
 0x32e   : > { %v1050_v59 = vpop.f32.mrf.mxu0 }
 0x334   : > { %v1024_v60 = vpop.f32.mrf.mxu3 }
 0x335   : > { %v1054_v62 = vmax.f32 %v1024_v60, %v1050_v59 }
 0x337   : > { %1147 = vmatpush.msrb.mxu2 %v1054_v62  ;;  %v2337_v63 = vpack.i.bf16 %v1053_v61, %v1054_v62 }
 0x339   : > { %2338 = vrot.lane.b32.xlu2 %v2337_v63, %s2612_s27  ;;  %2333 = vrot.lane.b32.xlu1 %v2337_v63, %s2613_s30 }
 0x33a   : > { %1148 = vmatpush.msrb.mxu2 %v1053_v61 }
 0x33b   : > { %2153 = vmatmul.msk.f32.vlgmr.msrb.gmra.mxu2 %vm1079_vm5, %v1055_v3 }
 0x341   : > { %1220 = vperm.xlu2 %2330, %v1068_v0   ;;  %1215 = vperm.xlu1 %2329, %v1067_v1  }
 0x343   : > { %2154 = vmatmul.msk.f32.gmra.mxu2 %vm1079_vm5, %v1056_v8 }
 0x349   : > { %1230 = vperm.xlu1 %2329, %v1070_v2  }
 0x34b   : > { %2155 = vmatmul.msk.f32.gmra.mxu2 %vm1079_vm5, %v1057_v11 }
 0x353   : > { %2156 = vmatmul.msk.f32.gmra.mxu2 %vm1079_vm5, %v1058_v12 }
 0x393   : > { %v2339_v4 = vpop.permute.xlu2 %2338 }
 0x394   : > { %v2340_v5 = vunpack.i.l.bf16 %v2339_v4  ;;  %v2341_v9 = vunpack.i.h.bf16 %v2339_v4 }
 0x396   : > { %1106 = vmatpush.msra.mxu1 %v2340_v5 }
 0x398   : > { %1107 = vmatpush.msra.mxu1 %v2341_v9 }
 0x399   : > { %2149 = vmatmul.msk.f32.vlgmr.msra.gmra.mxu1 %vm1079_vm5, %v1059_v10  ;;  %v1347_v10 = vld [vmem:[#allocation11] sm:$0xff] }
 0x39a   : > { %2173 = vmatpush.msk.msrb.mxu1 %vm1254_vm4, %v2016_v14 }
 0x39b   : > { %v1221_v38 = vpop.permute.xlu2 %1220 }
 0x39c   : > { %2174 = vmatpush.msk.msrb.mxu1 %vm3535_vm7, %v2615_v28  ;;  %vm1241_vm7 = vcmask 490496  }
 0x39e   : > { %2175 = vmatpush.msk.msrb.mxu1 %vm3538_vm12, %v2615_v28 }
 0x3a0   : > { %2176 = vmatpush.msk.msrb.mxu1 %vm3540_vm13, %v2615_v28 }
 0x3a1   : > { %2150 = vmatmul.msk.f32.gmra.mxu1 %vm1079_vm5, %v1060_v7 }
 0x3a2   : > { %2177 = vmatpush.msk.msrb.mxu1 %vm3542_vm15, %v2615_v28 }
 0x3a4   : > { %2178 = vmatpush.msk.msrb.mxu1 %vm689_vm2, %v2615_v28 }
 0x3a6   : > { %2179 = vmatpush.msk.msrb.mxu1 %vm688_vm6, %v2615_v28 }
 0x3a8   : > { %2180 = vmatpush.msk.msrb.mxu1 %vm687_vm10, %v2615_v28 }
 0x3a9   : > { %2151 = vmatmul.msk.f32.gmra.mxu1 %vm1079_vm5, %v1061_v13 }
 0x3ab   : > { %v2334_v15 = vpop.permute.xlu1 %2333 }
 0x3ac   : > { %v2335_v16 = vunpack.i.l.bf16 %v2334_v15  ;;  %v2336_v42 = vunpack.i.h.bf16 %v2334_v15  ;;  %v1353_v15 = vld [vmem:[#allocation11 + $0x30] sm:$0xff] }
 0x3ae   : > { %1194 = vmatpush.msrb.mxu3 %v2335_v16  ;;  %v1348_v16 = vld [vmem:[#allocation11 + $0x8] sm:$0xff] }
 0x3b0   : > { %1195 = vmatpush.msrb.mxu3 %v2336_v42  ;;  %v1351_v42 = vld [vmem:[#allocation11 + $0x20] sm:$0xff] }
 0x3b1   : > { %2157 = vmatmul.msk.f32.vlgmr.msrb.gmra.mxu3 %vm1079_vm5, %v1063_v18  ;;  %2152 = vmatmul.msk.f32.gmra.mxu1 %vm1079_vm5, %v1062_v19  ;;  %v1349_v18 = vld [vmem:[#allocation11 + $0x10] sm:$0xff]  ;;  %v1354_v19 = vld [vmem:[#allocation11 + $0x38] sm:$0xff] }
 0x3b3   : > { %v1216_v37 = vpop.permute.xlu1 %1215 }
 0x3b9   : > { %2158 = vmatmul.msk.f32.gmra.mxu3 %vm1079_vm5, %v1064_v44  ;;  %v1352_v44 = vld [vmem:[#allocation11 + $0x28] sm:$0xff] }
 0x3bb   : > { %v1231_v60 = vpop.permute.xlu1 %1230 }
 0x3be   : > { %v1150_v23 = vpop.f32.mrf.mxu2 }
 0x3c1   : > { %2159 = vmatmul.msk.f32.gmra.mxu3 %vm1079_vm5, %v1065_v46  ;;  %v1323_v46 = vld [vmem:[#allocation10] sm:$0xff] }
 0x3c6   : > { %v1153_v29 = vpop.f32.mrf.mxu2 }
 0x3c9   : > { %2160 = vmatmul.msk.f32.gmra.mxu3 %vm1079_vm5, %v1066_v48  ;;  %vm1371_vm5 = vcmask 261120  }
 0x3ce   : > { %v1156_v30 = vpop.f32.mrf.mxu2 }
 0x3d6   : > { %v1159_v53 = vpop.f32.mrf.mxu2 }
 0x416   : > { %v1109_v25 = vpop.f32.mrf.mxu1 }
 0x417   : > { %v1151_v26 = vadd.f32 %v1150_v23, %v1109_v25  ;;  %v1324_v23 = vld [vmem:[#allocation10 + $0x8] sm:$0xff] }
 0x41e   : > { %v1112_v31 = vpop.f32.mrf.mxu1 }
 0x41f   : > { %v1154_v27 = vadd.f32 %v1153_v29, %v1112_v31  ;;  %v1325_v31 = vld [vmem:[#allocation10 + $0x10] sm:$0xff] }
 0x426   : > { %v1115_v34 = vpop.f32.mrf.mxu1 }
 0x427   : > { %v1157_v43 = vadd.f32 %v1156_v30, %v1115_v34  ;;  %v1327_v30 = vld [vmem:[#allocation10 + $0x20] sm:$0xff] }
 0x42e   : > { %v1118_v51 = vpop.f32.mrf.mxu1 }
 0x42f   : > { %v1160_v57 = vadd.f32 %v1159_v53, %v1118_v51  ;;  %v1340_v51 = vld [vmem:[#allocation10 + $0x88] sm:$0xff]  ;;  %v1329_v53 = vld [vmem:[#allocation10 + $0x30] sm:$0xff] }
 0x434   : > { %v1197_v33 = vpop.f32.mrf.mxu3 }
 0x435   : > { %v1209_v35 = vadd.f32 %v1197_v33, %v1151_v26 }
 0x437   : > { %v1233_v24 = vadd.f32 %v1216_v37, %v1209_v35  ;;  %v1331_v37 = vld [vmem:[#allocation10 + $0x40] sm:$0xff] }
 0x439   : > { %v1237_v39 = vmax.f32 %v1233_v24, 0.0  ;;  %v1332_v24 = vld [vmem:[#allocation10 + $0x48] sm:$0xff] }
 0x43b   : > { %2169 = vmatmul.msk.f32.vlgmr.msrb.gmra.mxu0 %vm1241_vm7, %v1237_v39  ;;  %2181 = vmatmul.msk.f32.vlgmr.msrb.gmra.mxu1 %vm1241_vm7, %v1237_v39  ;;  %v1326_v39 = vld [vmem:[#allocation10 + $0x18] sm:$0xff] }
 0x43c   : > { %v1200_v32 = vpop.f32.mrf.mxu3 }
 0x43d   : > { %v1210_v36 = vadd.f32 %v1200_v32, %v1154_v27  ;;  %v1333_v27 = vld [vmem:[#allocation10 + $0x50] sm:$0xff] }
 0x43f   : > { %v1234_v40 = vadd.f32 %v1221_v38, %v1210_v36 }
 0x441   : > { %v1238_v41 = vmax.f32 %v1234_v40, 0.0  ;;  %v1334_v40 = vld [vmem:[#allocation10 + $0x58] sm:$0xff] }
 0x443   : > { %2170 = vmatmul.msk.f32.gmra.mxu0 %vm1241_vm7, %v1238_v41  ;;  %2182 = vmatmul.msk.f32.gmra.mxu1 %vm1241_vm7, %v1238_v41 }
 0x444   : > { %v1203_v45 = vpop.f32.mrf.mxu3 }
 0x445   : > { %v1211_v49 = vadd.f32 %v1203_v45, %v1157_v43  ;;  %v1339_v45 = vld [vmem:[#allocation10 + $0x80] sm:$0xff] }
 0x447   : > { %v1235_v55 = vadd.f32 %v1226_v47, %v1211_v49  ;;  %v1328_v47 = vld [vmem:[#allocation10 + $0x28] sm:$0xff]  ;;  %v1335_v49 = vld [vmem:[#allocation10 + $0x60] sm:$0xff] }
 0x449   : > { %v1239_v56 = vmax.f32 %v1235_v55, 0.0  ;;  %v1336_v55 = vld [vmem:[#allocation10 + $0x68] sm:$0xff] }
 0x44b   : > { %2171 = vmatmul.msk.f32.gmra.mxu0 %vm1241_vm7, %v1239_v56  ;;  %2183 = vmatmul.msk.f32.gmra.mxu1 %vm1241_vm7, %v1239_v56  ;;  %v1341_v56 = vld [vmem:[#allocation10 + $0x90] sm:$0xff] }
 0x44c   : > { %v1206_v58 = vpop.f32.mrf.mxu3 }
 0x44d   : > { %v1212_v59 = vadd.f32 %v1206_v58, %v1160_v57  ;;  %v1330_v57 = vld [vmem:[#allocation10 + $0x38] sm:$0xff]  ;;  %v1337_v58 = vld [vmem:[#allocation10 + $0x70] sm:$0xff] }
 0x44f   : > { %v1236_v61 = vadd.f32 %v1231_v60, %v1212_v59  ;;  %v1342_v59 = vld [vmem:[#allocation10 + $0x98] sm:$0xff]  ;;  %v2012_v60 = vsel %vm3544_vm8, 1.0, %v2614_v22 }
 0x451   : > { %v1240_v62 = vmax.f32 %v1236_v61, 0.0  ;;  %v1338_v61 = vld [vmem:[#allocation10 + $0x78] sm:$0xff] }
 0x453   : > { %2172 = vmatmul.msk.f32.gmra.mxu0 %vm1241_vm7, %v1240_v62  ;;  %2184 = vmatmul.msk.f32.gmra.mxu1 %vm1241_vm7, %v1240_v62  ;;  %v1343_v62 = vld [vmem:[#allocation10 + $0xa0] sm:$0xff] }
 0x4b8   : > { %v1275_v63 = vpop.f32.mrf.mxu0  ;;  %v1307_v0 = vpop.f32.mrf.mxu1 }
 0x4b9   : > { %v1319_v3 = vmax.f32 %v1275_v63, %v1307_v0  ;;  %v1344_v63 = vld [vmem:[#allocation10 + $0xa8] sm:$0xff]  ;;  %v1345_v0 = vld [vmem:[#allocation10 + $0xb0] sm:$0xff] }
 0x4c0   : > { %v1278_v1 = vpop.f32.mrf.mxu0  ;;  %v1310_v2 = vpop.f32.mrf.mxu1 }
 0x4c1   : > { %v1320_v4 = vmax.f32 %v1278_v1, %v1310_v2  ;;  %v1346_v1 = vld [vmem:[#allocation10 + $0xb8] sm:$0xff] }
 0x4c3   : > { %v2347_v5 = vpack.i.bf16 %v1319_v3, %v1320_v4 }
 0x4c5   : > { %2348 = vrot.lane.b32.xlu0 %v2347_v5, %s2612_s27 }
 0x4c8   : > { %v1281_v8 = vpop.f32.mrf.mxu0  ;;  %v1313_v9 = vpop.f32.mrf.mxu1 }
 0x4c9   : > { %v1321_v12 = vmax.f32 %v1281_v8, %v1313_v9 }
 0x4cd   : > { %1589 = vperm.xlu0 %2331, %v1347_v10  }
 0x4d0   : > { %v1284_v11 = vpop.f32.mrf.mxu0  ;;  %v1316_v7 = vpop.f32.mrf.mxu1 }
 0x4d1   : > { %v1322_v13 = vmax.f32 %v1284_v11, %v1316_v7 }
 0x4d3   : > { %1473 = vmatpush.msra.mxu3 %v1322_v13  ;;  %v2352_v14 = vpack.i.bf16 %v1321_v12, %v1322_v13 }
 0x4d5   : > { %1604 = vperm.xlu0 %2331, %v1350_v6   ;;  %2353 = vrot.lane.b32.xlu1 %v2352_v14, %s2613_s30 }
 0x4d6   : > { %2343 = vrot.lane.b32.xlu2 %v2352_v14, %s2612_s27  ;;  %1474 = vmatpush.msra.mxu3 %v1321_v12 }
 0x4d8   : > { %1475 = vmatpush.msra.mxu3 %v1320_v4 }
 0x4da   : > { %1476 = vmatpush.msra.mxu3 %v1319_v3 }
 0x4db   : > { %2193 = vmatmul.msk.f32.vlgmr.msra.gmra.mxu3 %vm1371_vm5, %v1323_v46 }
 0x4dd   : > { %1619 = vperm.xlu0 %2331, %v1353_v15   ;;  %1594 = vperm.xlu1 %2329, %v1348_v16  }
 0x4de   : > { %2358 = vrot.lane.b32.xlu2 %v2347_v5, %s2613_s30 }
 0x4e3   : > { %2194 = vmatmul.msk.f32.gmra.mxu3 %vm1371_vm5, %v1324_v23 }
 0x4e5   : > { %1609 = vperm.xlu1 %2329, %v1351_v42  }
 0x4e6   : > { %1599 = vperm.xlu2 %2330, %v1349_v18  }
 0x4eb   : > { %2195 = vmatmul.msk.f32.gmra.mxu3 %vm1371_vm5, %v1325_v31 }
 0x4ed   : > { %1624 = vperm.xlu1 %2329, %v1354_v19  }
 0x4ee   : > { %1614 = vperm.xlu2 %2330, %v1352_v44  }
 0x4f3   : > { %2196 = vmatmul.msk.f32.gmra.mxu3 %vm1371_vm5, %v1326_v39 }
 0x4fb   : > { %2197 = vmatmul.msk.f32.gmra.mxu3 %vm1371_vm5, %v1327_v30 }
 0x503   : > { %2198 = vmatmul.msk.f32.gmra.mxu3 %vm1371_vm5, %v1328_v47 }
 0x50b   : > { %2199 = vmatmul.msk.f32.gmra.mxu3 %vm1371_vm5, %v1329_v53 }
 0x513   : > { %2200 = vmatmul.msk.f32.gmra.mxu3 %vm1371_vm5, %v1330_v57 }
 0x530   : > { %v2344_v48 = vpop.permute.xlu2 %2343 }
 0x531   : > { %v2345_v25 = vunpack.i.l.bf16 %v2344_v48  ;;  %v2346_v26 = vunpack.i.h.bf16 %v2344_v48 }
 0x533   : > { %1408 = vmatpush.msra.mxu0 %v2345_v25  ;;  %2235 = vmatpush.msra.mxu2 %v2345_v25 }
 0x535   : > { %1409 = vmatpush.msra.mxu0 %v2346_v26  ;;  %2236 = vmatpush.msra.mxu2 %v2346_v26 }
 0x537   : > { %v2349_v29 = vpop.permute.xlu0 %2348 }
 0x538   : > { %v2350_v33 = vunpack.i.l.bf16 %v2349_v29  ;;  %v2351_v35 = vunpack.i.h.bf16 %v2349_v29  ;;  %v2359_v36 = vpop.permute.xlu2 %2358 }
 0x539   : > { %v2360_v41 = vunpack.i.l.bf16 %v2359_v36  ;;  %v2361_v43 = vunpack.i.h.bf16 %v2359_v36 }
 0x53a   : > { %1410 = vmatpush.msra.mxu0 %v2350_v33  ;;  %2237 = vmatpush.msra.mxu2 %v2350_v33 }
 0x53c   : > { %1411 = vmatpush.msra.mxu0 %v2351_v35  ;;  %2238 = vmatpush.msra.mxu2 %v2351_v35 }
 0x53d   : > { %2185 = vmatmul.msk.f32.vlgmr.msra.gmra.mxu0 %vm1371_vm5, %v1331_v37  ;;  %2186 = vmatmul.msk.f32.vlgmr.msra.gmra.mxu2 %vm1371_vm5, %v1332_v24 }
 0x53e   : > { %2221 = vmatpush.msk.msrb.mxu2 %vm1254_vm4, %v2012_v60 }
 0x53f   : > { %v1590_v10 = vpop.permute.xlu0 %1589 }
 0x540   : > { %2222 = vmatpush.msk.msrb.mxu2 %vm689_vm2, %v2615_v28  ;;  %vm3545_vm2 = vmmov %vm3541_vm14  ;;  %v1600_v18 = vpop.permute.xlu2 %1599 }
 0x541   : > { %v1980_v2 = vsel %vm3545_vm2, 1.0, %v2614_v22 }
 0x542   : > { %2223 = vmatpush.msk.msrb.mxu2 %vm688_vm6, %v2615_v28  ;;  %2209 = vmatpush.msk.msra.mxu1 %vm1254_vm4, %v1980_v2  ;;  %vm3546_vm6 = vmmov %vm3543_vm3 }
 0x544   : > { %2224 = vmatpush.msk.msrb.mxu2 %vm687_vm10, %v2615_v28  ;;  %2210 = vmatpush.msk.msra.mxu1 %vm3546_vm6, %v2615_v28  ;;  %vm1643_vm10 = vcmask 228352  }
 0x545   : > { %2187 = vmatmul.msk.f32.gmra.mxu2 %vm1371_vm5, %v1333_v27 }
 0x546   : > { %2211 = vmatpush.msk.msra.mxu1 %vm591_vm9, %v2615_v28 }
 0x547   : > { %v2354_v32 = vpop.permute.xlu1 %2353  ;;  %v1605_v29 = vpop.permute.xlu0 %1604 }
 0x548   : > { %v2355_v34 = vunpack.i.l.bf16 %v2354_v32  ;;  %v2356_v38 = vunpack.i.h.bf16 %v2354_v32  ;;  %2212 = vmatpush.msk.msra.mxu1 %vm590_vm1, %v2615_v28  ;;  %vm1780_vm1 = vcmask 113664  }
 0x54a   : > { %1550 = vmatpush.msrb.mxu0 %v2355_v34 }
 0x54c   : > { %1551 = vmatpush.msrb.mxu0 %v2356_v38 }
 0x54d   : > { %2188 = vmatmul.msk.f32.gmra.mxu2 %vm1371_vm5, %v1334_v40 }
 0x54e   : > { %1552 = vmatpush.msrb.mxu0 %v2360_v41 }
 0x54f   : > { %v1595_v12 = vpop.permute.xlu1 %1594 }
 0x550   : > { %1553 = vmatpush.msrb.mxu0 %v2361_v43 }
 0x551   : > { %2201 = vmatmul.msk.f32.vlgmr.msrb.gmra.mxu0 %vm1371_vm5, %v1339_v45  ;;  %v1615_v45 = vpop.permute.xlu2 %1614 }
 0x555   : > { %2189 = vmatmul.msk.f32.gmra.mxu2 %vm1371_vm5, %v1335_v49 }
 0x557   : > { %v1610_v30 = vpop.permute.xlu1 %1609 }
 0x559   : > { %2202 = vmatmul.msk.f32.gmra.mxu0 %vm1371_vm5, %v1340_v51 }
 0x55d   : > { %2190 = vmatmul.msk.f32.gmra.mxu2 %vm1371_vm5, %v1336_v55  ;;  %v1620_v55 = vpop.permute.xlu0 %1619 }
 0x55e   : > { %v1478_v21 = vpop.f32.mrf.mxu3 }
 0x561   : > { %2203 = vmatmul.msk.f32.gmra.mxu0 %vm1371_vm5, %v1341_v56 }
 0x565   : > { %2191 = vmatmul.msk.f32.gmra.mxu2 %vm1371_vm5, %v1337_v58 }
 0x566   : > { %v1481_v50 = vpop.f32.mrf.mxu3 }
 0x569   : > { %2204 = vmatmul.msk.f32.gmra.mxu0 %vm1371_vm5, %v1342_v59 }
 0x56d   : > { %2192 = vmatmul.msk.f32.gmra.mxu2 %vm1371_vm5, %v1338_v61 }
 0x56e   : > { %v1484_v5 = vpop.f32.mrf.mxu3 }
 0x571   : > { %2205 = vmatmul.msk.f32.gmra.mxu0 %vm1371_vm5, %v1343_v62 }
 0x576   : > { %v1487_v28 = vpop.f32.mrf.mxu3 }
 0x579   : > { %2206 = vmatmul.msk.f32.gmra.mxu0 %vm1371_vm5, %v1344_v63 }
 0x57e   : > { %v1490_v44 = vpop.f32.mrf.mxu3 }
 0x581   : > { %2207 = vmatmul.msk.f32.gmra.mxu0 %vm1371_vm5, %v1345_v0  ;;  %v1625_v0 = vpop.permute.xlu1 %1624 }
 0x586   : > { %v1493_v37 = vpop.f32.mrf.mxu3 }
 0x589   : > { %2208 = vmatmul.msk.f32.gmra.mxu0 %vm1371_vm5, %v1346_v1 }
 0x58e   : > { %v1496_v38 = vpop.f32.mrf.mxu3 }
 0x596   : > { %v1499_v58 = vpop.f32.mrf.mxu3 }
 0x5ba   : > { %v1413_v22 = vpop.f32.mrf.mxu0 }
 0x5bb   : > { %v1479_v4 = vadd.f32 %v1478_v21, %v1413_v22  ;;  %v1764_v22 = vld [vmem:[#allocation13] sm:$0xff] }
 0x5c0   : > { %v1416_v3 = vpop.f32.mrf.mxu2 }
 0x5c1   : > { %v1482_v54 = vadd.f32 %v1481_v50, %v1416_v3 }
 0x5c8   : > { %v1419_v9 = vpop.f32.mrf.mxu2 }
 0x5c9   : > { %v1485_v15 = vadd.f32 %v1484_v5, %v1419_v9 }
 0x5ce   : > { %v1555_v8 = vpop.f32.mrf.mxu0 }
 0x5cf   : > { %v1579_v52 = vadd.f32 %v1555_v8, %v1479_v4 }
 0x5d0   : > { %v1422_v13 = vpop.f32.mrf.mxu2 }
 0x5d1   : > { %v1627_v11 = vadd.f32 %v1590_v10, %v1579_v52  ;;  %v1488_v23 = vadd.f32 %v1487_v28, %v1422_v13  ;;  %v1765_v52 = vld [vmem:[#allocation13 + $0x8] sm:$0xff] }
 0x5d3   : > { %v1635_v7 = vmax.f32 %v1627_v11, 0.0 }
 0x5d5   : > { %2213 = vmatmul.msk.f32.vlgmr.msra.gmra.mxu1 %vm1643_vm10, %v1635_v7  ;;  %2225 = vmatmul.msk.f32.vlgmr.msrb.gmra.mxu2 %vm1643_vm10, %v1635_v7 }
 0x5d6   : > { %v1558_v17 = vpop.f32.mrf.mxu0 }
 0x5d7   : > { %v1580_v20 = vadd.f32 %v1558_v17, %v1482_v54 }
 0x5d8   : > { %v1425_v46 = vpop.f32.mrf.mxu2 }
 0x5d9   : > { %v1628_v6 = vadd.f32 %v1595_v12, %v1580_v20  ;;  %v1491_v35 = vadd.f32 %v1490_v44, %v1425_v46  ;;  %v1766_v20 = vld [vmem:[#allocation13 + $0x10] sm:$0xff]  ;;  %v1768_v46 = vld [vmem:[#allocation13 + $0x20] sm:$0xff] }
 0x5db   : > { %v1636_v14 = vmax.f32 %v1628_v6, 0.0 }
 0x5dd   : > { %2214 = vmatmul.msk.f32.gmra.mxu1 %vm1643_vm10, %v1636_v14  ;;  %2226 = vmatmul.msk.f32.gmra.mxu2 %vm1643_vm10, %v1636_v14 }
 0x5de   : > { %v1561_v16 = vpop.f32.mrf.mxu0 }
 0x5df   : > { %v1581_v42 = vadd.f32 %v1561_v16, %v1485_v15  ;;  %v1767_v15 = vld [vmem:[#allocation13 + $0x18] sm:$0xff] }
 0x5e0   : > { %v1428_v24 = vpop.f32.mrf.mxu2 }
 0x5e1   : > { %v1629_v19 = vadd.f32 %v1600_v18, %v1581_v42  ;;  %v1494_v36 = vadd.f32 %v1493_v37, %v1428_v24 }
 0x5e3   : > { %v1637_v48 = vmax.f32 %v1629_v19, 0.0 }
 0x5e5   : > { %2215 = vmatmul.msk.f32.gmra.mxu1 %vm1643_vm10, %v1637_v48  ;;  %2227 = vmatmul.msk.f32.gmra.mxu2 %vm1643_vm10, %v1637_v48 }
 0x5e6   : > { %v1564_v25 = vpop.f32.mrf.mxu0 }
 0x5e7   : > { %v1582_v26 = vadd.f32 %v1564_v25, %v1488_v23 }
 0x5e8   : > { %v1431_v41 = vpop.f32.mrf.mxu2 }
 0x5e9   : > { %v1630_v31 = vadd.f32 %v1605_v29, %v1582_v26  ;;  %v1497_v51 = vadd.f32 %v1496_v38, %v1431_v41 }
 0x5eb   : > { %v1638_v33 = vmax.f32 %v1630_v31, 0.0  ;;  %v1769_v31 = vld [vmem:[#allocation13 + $0x28] sm:$0xff] }
 0x5ed   : > { %2216 = vmatmul.msk.f32.gmra.mxu1 %vm1643_vm10, %v1638_v33  ;;  %2228 = vmatmul.msk.f32.gmra.mxu2 %vm1643_vm10, %v1638_v33 }
 0x5ee   : > { %v1567_v39 = vpop.f32.mrf.mxu0 }
 0x5ef   : > { %v1583_v27 = vadd.f32 %v1567_v39, %v1491_v35 }
 0x5f0   : > { %v1434_v57 = vpop.f32.mrf.mxu2 }
 0x5f1   : > { %v1631_v32 = vadd.f32 %v1610_v30, %v1583_v27  ;;  %v1500_v61 = vadd.f32 %v1499_v58, %v1434_v57  ;;  %v1770_v27 = vld [vmem:[#allocation13 + $0x30] sm:$0xff] }
 0x5f3   : > { %v1639_v34 = vmax.f32 %v1631_v32, 0.0 }
 0x5f5   : > { %2217 = vmatmul.msk.f32.gmra.mxu1 %vm1643_vm10, %v1639_v34  ;;  %2229 = vmatmul.msk.f32.gmra.mxu2 %vm1643_vm10, %v1639_v34 }
 0x5f6   : > { %v1570_v40 = vpop.f32.mrf.mxu0 }
 0x5f7   : > { %v1584_v43 = vadd.f32 %v1570_v40, %v1494_v36  ;;  %v1771_v40 = vld [vmem:[#allocation13 + $0x38] sm:$0xff] }
 0x5f9   : > { %v1632_v47 = vadd.f32 %v1615_v45, %v1584_v43 }
 0x5fb   : > { %v1640_v49 = vmax.f32 %v1632_v47, 0.0 }
 0x5fd   : > { %2218 = vmatmul.msk.f32.gmra.mxu1 %vm1643_vm10, %v1640_v49  ;;  %2230 = vmatmul.msk.f32.gmra.mxu2 %vm1643_vm10, %v1640_v49 }
 0x5fe   : > { %v1573_v53 = vpop.f32.mrf.mxu0 }
 0x5ff   : > { %v1585_v56 = vadd.f32 %v1573_v53, %v1497_v51 }
 0x601   : > { %v1633_v59 = vadd.f32 %v1620_v55, %v1585_v56 }
 0x603   : > { %v1641_v60 = vmax.f32 %v1633_v59, 0.0 }
 0x605   : > { %2219 = vmatmul.msk.f32.gmra.mxu1 %vm1643_vm10, %v1641_v60  ;;  %2231 = vmatmul.msk.f32.gmra.mxu2 %vm1643_vm10, %v1641_v60 }
 0x606   : > { %v1576_v62 = vpop.f32.mrf.mxu0 }
 0x607   : > { %v1586_v63 = vadd.f32 %v1576_v62, %v1500_v61 }
 0x609   : > { %v1634_v1 = vadd.f32 %v1625_v0, %v1586_v63 }
 0x60b   : > { %v1642_v2 = vmax.f32 %v1634_v1, 0.0 }
 0x60d   : > { %2220 = vmatmul.msk.f32.gmra.mxu1 %vm1643_vm10, %v1642_v2  ;;  %2232 = vmatmul.msk.f32.gmra.mxu2 %vm1643_vm10, %v1642_v2 }
 0x652   : > { %v1688_v21 = vpop.f32.mrf.mxu1 }
 0x658   : > { %v1732_v50 = vpop.f32.mrf.mxu2 }
 0x659   : > { %v1756_v3 = vmax.f32 %v1688_v21, %v1732_v50 }
 0x65a   : > { %v1691_v4 = vpop.f32.mrf.mxu1 }
 0x65b   : > { %v1772_v5 = vmul.f32 %v1764_v22, %v1756_v3 }
 0x65d   : > { %v1781_v8 = vsel %vm1780_vm1, %v1772_v5, 0.0 }
 0x65e   : > { %1782 = vadd.xlane.f32.xlu2 %v1781_v8 }
 0x660   : > { %v1735_v9 = vpop.f32.mrf.mxu2 }
 0x661   : > { %v1757_v10 = vmax.f32 %v1691_v4, %v1735_v9  ;;  %v1818_v4 = vld [vmem:[#allocation2] sm:$0x1] }
 0x662   : > { %v1694_v11 = vpop.f32.mrf.mxu1 }
 0x663   : > { %v1773_v7 = vmul.f32 %v1765_v52, %v1757_v10 }
 0x665   : > { %v1784_v54 = vsel %vm1780_vm1, %v1773_v7, 0.0 }
 0x666   : > { %1785 = vadd.xlane.f32.xlu0 %v1784_v54 }
 0x668   : > { %v1738_v17 = vpop.f32.mrf.mxu2 }
 0x669   : > { %v1758_v28 = vmax.f32 %v1694_v11, %v1738_v17 }
 0x66a   : > { %v1697_v12 = vpop.f32.mrf.mxu1 }
 0x66b   : > { %v1774_v13 = vmul.f32 %v1766_v20, %v1758_v28 }
 0x66d   : > { %v1787_v6 = vsel %vm1780_vm1, %v1774_v13, 0.0 }
 0x66e   : > { %1788 = vadd.xlane.f32.xlu1 %v1787_v6 }
 0x670   : > { %v1741_v14 = vpop.f32.mrf.mxu2 }
 0x671   : > { %v1759_v16 = vmax.f32 %v1697_v12, %v1741_v14 }
 0x672   : > { %v1700_v42 = vpop.f32.mrf.mxu1 }
 0x673   : > { %v1775_v18 = vmul.f32 %v1767_v15, %v1759_v16 }
 0x675   : > { %v1790_v19 = vsel %vm1780_vm1, %v1775_v18, 0.0 }
 0x676   : > { %1791 = vadd.xlane.f32.xlu2 %v1790_v19 }
 0x678   : > { %v1744_v44 = vpop.f32.mrf.mxu2 }
 0x679   : > { %v1760_v48 = vmax.f32 %v1700_v42, %v1744_v44 }
 0x67a   : > { %v1703_v25 = vpop.f32.mrf.mxu1 }
 0x67b   : > { %v1776_v23 = vmul.f32 %v1768_v46, %v1760_v48 }
 0x67d   : > { %v1793_v26 = vsel %vm1780_vm1, %v1776_v23, 0.0 }
 0x67e   : > { %1794 = vadd.xlane.f32.xlu2 %v1793_v26 }
 0x680   : > { %v1747_v29 = vpop.f32.mrf.mxu2 }
 0x681   : > { %v1761_v33 = vmax.f32 %v1703_v25, %v1747_v29 }
 0x682   : > { %v1706_v24 = vpop.f32.mrf.mxu1 }
 0x683   : > { %v1777_v35 = vmul.f32 %v1769_v31, %v1761_v33 }
 0x685   : > { %v1796_v37 = vsel %vm1780_vm1, %v1777_v35, 0.0 }
 0x686   : > { %1797 = vadd.xlane.f32.xlu0 %v1796_v37 }
 0x688   : > { %v1750_v39 = vpop.f32.mrf.mxu2 }
 0x689   : > { %v1762_v30 = vmax.f32 %v1706_v24, %v1750_v39 }
 0x68a   : > { %v1709_v36 = vpop.f32.mrf.mxu1 }
 0x68b   : > { %v1778_v32 = vmul.f32 %v1770_v27, %v1762_v30 }
 0x68d   : > { %v1799_v34 = vsel %vm1780_vm1, %v1778_v32, 0.0 }
 0x68e   : > { %1800 = vadd.xlane.f32.xlu1 %v1799_v34 }
 0x690   : > { %v1753_v38 = vpop.f32.mrf.mxu2 }
 0x691   : > { %v1763_v41 = vmax.f32 %v1709_v36, %v1753_v38 }
 0x693   : > { %v1779_v43 = vmul.f32 %v1771_v40, %v1763_v41 }
 0x695   : > { %v1802_v45 = vsel %vm1780_vm1, %v1779_v43, 0.0 }
 0x696   : > { %1803 = vadd.xlane.f32.xlu2 %v1802_v45 }
 0x6d1   : > { %v1783_v47 = vpop.xlane.xlu2 %1782 }
 0x6d9   : > { %v1786_v51 = vpop.xlane.xlu0 %1785 }
 0x6da   : > { %v1805_v55 = vadd.f32 %v1786_v51, %v1783_v47 }
 0x6e1   : > { %v1789_v53 = vpop.xlane.xlu1 %1788 }
 0x6e2   : > { %v1806_v56 = vadd.f32 %v1805_v55, %v1789_v53 }
 0x6e9   : > { %v1792_v49 = vpop.xlane.xlu2 %1791 }
 0x6ea   : > { %v1807_v58 = vadd.f32 %v1806_v56, %v1792_v49 }
 0x6f1   : > { %v1795_v57 = vpop.xlane.xlu2 %1794 }
 0x6f2   : > { %v1808_v60 = vadd.f32 %v1807_v58, %v1795_v57 }
 0x6f9   : > { %v1798_v59 = vpop.xlane.xlu0 %1797 }
 0x6fa   : > { %v1809_v62 = vadd.f32 %v1808_v60, %v1798_v59 }
 0x701   : > { %v1801_v61 = vpop.xlane.xlu1 %1800 }
 0x702   : > { %v1810_v63 = vadd.f32 %v1809_v62, %v1801_v61 }
 0x709   : > { %v1804_v0 = vpop.xlane.xlu2 %1803 }
 0x70a   : > { %v1811_v1 = vadd.f32 %v1810_v63, %v1804_v0 }
 0x70c   : > { %v1812_v2 = vrot.slane %v1811_v1, 4 }
 0x70e   : > { %v1813_v21 = vadd.f32 %v1812_v2, %v1811_v1 }
 0x710   : > { %v1814_v50 = vrot.slane %v1813_v21, 2 }
 0x712   : > { %v1815_v22 = vadd.f32 %v1814_v50, %v1813_v21 }
 0x714   : > { %v1816_v3 = vrot.slane %v1815_v22, 1 }
 0x716   : > { %v1817_v5 = vadd.f32 %v1816_v3, %v1815_v22 }
 0x718   : > { %v1819_v8 = vadd.f32 %v1818_v4, %v1817_v5 }
 0x71a   : > { %v1820_v9 = vsub.f32 0.0, %v1819_v8 }
 0x71c   : > { %v1821_v52 = vmul.f32 1.442695, %v1820_v9 }
 0x71e   : > { %2362 = vpow2.f32 %v1821_v52 }
 0x724   : > { %v2363_v10 = vpop.eup %2362 }
 0x725   : > { %v1823_v11 = vadd.f32 1.0, %v2363_v10 }
 0x727   : > { %2364 = vrcp.f32 %v1823_v11  ;;  %v1835_v20 = vand.u32 2147483648, %v1823_v11  ;;  %v1833_v12 = vand.u32 2147483647, %v1823_v11  ;;  %vm1829_vm4 = vweird.f32 %v1823_v11 }
 0x729   : > { %v1836_v6 = vor.u32 1.1754944e-38, %v1835_v20  ;;  %vm1834_vm0 = vcmp.eq.f32.partialorder %v1833_v12, 8.507059e+37 }
 0x72d   : > { %v2365_v7 = vpop.eup %2364 }
 0x72e   : > { %v1825_v54 = vmul.f32 %v2365_v7, %v1823_v11  ;;  %vm1830_vm9 = vweird.f32 %v2365_v7 }
 0x72f   : > { %vm1831_vm12 = vmor %vm1829_vm4, %vm1830_vm9 }
 0x730   : > { %v1826_v17 = vsub.f32 1.0, %v1825_v54 }
 0x732   : > { %v1827_v28 = vmul.f32 %v2365_v7, %v1826_v17 }
 0x734   : > { %v1828_v13 = vadd.f32 %v2365_v7, %v1827_v28 }
 0x736   : > { %v1832_v14 = vsel %vm1831_vm12, %v2365_v7, %v1828_v13 }
 0x737   : > { %v1837_v15 = vsel %vm1834_vm0, %v1836_v6, %v1832_v14 }
 0x738   : > { %1840 = vst.msk [vmem:[%s493_s12] sm:$0x1] %vm1839_vm11, %v1837_v15 }
 0x739 PF: > { %s27_s19 = sadd.s32 1, %s2598_s19  }
 0x73a   : > { %p24_p7 = scmp.ge.s32.totalorder %s27_s19, 4  }
 0x73c   :  { %26 = sbr.rel (!%p24_p7) target bundleno = 7 (0x7), region = 123 }
 0x741   :  { %1858 = vsyncpa [#allocation4], 1 }
 0x742   :  { %1860 = vsyncpa [#allocation4 + $0x1], 1 }
 0x743   :  { %1861 = vsyncpa [#allocation6], 1 }
 0x744   :  { %1862 = vsyncpa [#allocation9], 1 }
 0x745   :  { %1863 = vsyncpa [#allocation12], 1 }

// kernel: transam_forward.3
= control target key start
LH: loop header
LB: loop body
LE: loop exit
PB: predicated region body
PF: predicated region fallthrough
CT: control target
= control target key end

     0   :  { %s4798_s0 = inlined_call_operand.vmem [shape: f32[2,16,16], index: 0, kind: input, shape index: {}]   ;;  %s4799_s1 = inlined_call_operand.vmem [shape: f32[16,16], index: 1, kind: input, shape index: {}]   ;;  %s4800_s2 = inlined_call_operand.vmem [shape: f32[128,16], index: 2, kind: input, shape index: {}]   ;;  %s4801_s3 = inlined_call_operand.vmem [shape: f32[128,16], index: 3, kind: input, shape index: {}]   ;;  %s4802_s4 = inlined_call_operand.vmem [shape: f32[128,16], index: 4, kind: input, shape index: {}]   ;;  %s4803_s5 = inlined_call_operand.vmem [shape: f32[16,128], index: 5, kind: input, shape index: {}]   ;;  %s4804_s6 = inlined_call_operand.hbm [shape: f32[16,16], index: 6, kind: input, shape index: {}]   ;;  %s4805_s7 = inlined_call_operand.vmem [shape: f32[1,16], index: 7, kind: input, shape index: {}]   ;;  %s4806_s8 = inlined_call_operand.hbm [shape: f32[16,16], index: 8, kind: input, shape index: {}]   ;;  %s4807_s9 = inlined_call_operand.vmem [shape: f32[1,16], index: 9, kind: input, shape index: {}]   ;;  %s4808_s10 = inlined_call_operand.hbm [shape: f32[16,16], index: 10, kind: input, shape index: {}]   ;;  %s4809_s11 = inlined_call_operand.vmem [shape: f32[1,16], index: 11, kind: input, shape index: {}]   ;;  %s4810_s12 = inlined_call_operand.hbm [shape: f32[16,16], index: 12, kind: input, shape index: {}]   ;;  %s4811_s13 = inlined_call_operand.vmem [shape: f32[1,16], index: 13, kind: input, shape index: {}]   ;;  %s4812_s14 = inlined_call_operand.vmem [shape: f32[1,16], index: 14, kind: input, shape index: {}]   ;;  %s4813_s15 = inlined_call_operand.hbm [shape: f32[1,16], index: 15, kind: input, shape index: {}]   ;;  %s4814_s16 = inlined_call_operand.hbm [shape: f32[16,2048], index: 16, kind: input, shape index: {}]   ;;  %s4815_s17 = inlined_call_operand.hbm [shape: f32[1,2048], index: 17, kind: input, shape index: {}]   ;;  %s4816_s18 = inlined_call_operand.hbm [shape: f32[2048,16], index: 18, kind: input, shape index: {}]   ;;  %s4817_s19 = inlined_call_operand.hbm [shape: f32[1,16], index: 19, kind: input, shape index: {}]   ;;  %s4818_s20 = inlined_call_operand.hbm [shape: f32[1,16], index: 20, kind: input, shape index: {}]   ;;  %s4819_s21 = inlined_call_operand.hbm [shape: f32[1,16], index: 21, kind: input, shape index: {}]   ;;  %s4820_s22 = inlined_call_operand.vmem [shape: f32[2,16,16], index: 22, kind: output, shape index: {}]  }
   0x1   :  { %4827 = sst [smem:[#allocation26_spill]] %s4798_s0 }
   0x2   :  { %4828 = sst [smem:[#allocation27_spill]] %s4799_s1 }
   0x3   :  { %4829 = sst [smem:[#allocation28_spill]] %s4800_s2 }
   0x4   :  { %4830 = sst [smem:[#allocation29_spill]] %s4801_s3 }
   0x5   :  { %4831 = sst [smem:[#allocation30_spill]] %s4802_s4 }
   0x6   :  { %4832 = sst [smem:[#allocation31_spill]] %s4803_s5 }
   0x7   :  { %4833 = sst [smem:[#allocation32_spill]] %s4804_s6 }
   0x8   :  { %4834 = sst [smem:[#allocation33_spill]] %s4806_s8 }
   0x9   :  { %4835 = sst [smem:[#allocation34_spill]] %s4810_s12 }
   0xa   :  { %4836 = sst [smem:[#allocation35_spill]] %s4814_s16 }
   0xb   :  { %4837 = sst [smem:[#allocation36_spill]] %s4816_s18 }
   0xc   :  { %27 = vsyncpa [#allocation3], 0 }
   0xd   :  { %28 = vsyncpa [#allocation5], 0 }
   0xe   :  { %29 = vsyncpa [#allocation8], 0 }
   0xf   :  { %30 = vsyncpa [#allocation11], 0 }
  0x10   :  { %31 = vsyncpa [#allocation14], 0 }
  0x11   :  { %32 = vsyncpa [#allocation17], 0  ;;  %s4088_s3 = smov 0  }
  0x12 LB: > { %4838 = sst [smem:[#allocation25_spill]] %s3956_s3  ;;  %s4094_s28 = sadd.s32 4294967295, %s3956_s3   ;;  %s3956_s3 = sphi %s4088_s3, %s38_s3  }
  0x13   : > { %p3248_p0 = scmp.ge.s32.totalorder %s3956_s3, 1  ;;  %p536_p1 = scmp.lt.s32.totalorder %s3956_s3, 3 }
  0x14   : > { %p3453_p2 = scmp.eq.s32.totalorder %s4094_s28, 0  ;;  %s4839_s8 = sld [smem:[#allocation33_spill]] }
  0x15   : > { %p4102_p3 = pnand %p3248_p0, %p536_p1  ;;  %s4841_s12 = sld [smem:[#allocation34_spill]] }
  0x16   : > { %s3958_s24 = smov [#allocation4]   ;;  %s3959_s26 = smov [#allocation7]  }
  0x17   : > { %p3419_p4 = pneg %p4102_p3  ;;  %s581_s6 = sshll.u32 %s3958_s24, 4  ;;  %s582_s6 = int_to_ptr.vmem [resolvable:$true] %s581_s6 }
  0x18   : > { %s615_s2 = sshll.u32 %s3959_s26, 4  ;;  %s4843_s16 = sld [smem:[#allocation35_spill]]  ;;  %s616_s2 = int_to_ptr.vmem [resolvable:$true] %s615_s2 }
  0x19   : > { %p4113_p5 = pnand %p3453_p2, %p3419_p4  ;;  %s3960_s23 = smov 128  }
  0x1a   : > { %s579_s4 = sshll.u32 %s4839_s8, 4  ;;  %s3961_s1 = smov 8   ;;  %s580_s4 = int_to_ptr.hbm [resolvable:$true] %s579_s4 }
  0x1b   : > { %s613_s5 = sshll.u32 %s4841_s12, 4  ;;  %s3962_s24 = smov [#allocation10]   ;;  %s614_s5 = int_to_ptr.hbm [resolvable:$true] %s613_s5 }
  0x1c   : > { %3425 = dma.hbm_to_vmem [thread:$0]  (!%p4113_p5), %s580_s4, 256, %s582_s6, [#allocation5], %s3960_s23, %s3960_s23, %s3961_s1  }
  0x1d   : > { %3431 = dma.hbm_to_vmem [thread:$0]  (!%p4113_p5), %s614_s5, 256, %s616_s2, [#allocation8], %s3960_s23, %s3960_s23, %s3961_s1  }
  0x1e   : > { %s645_s30 = sshll.u32 %s4843_s16, 4  ;;  %s647_s26 = sshll.u32 %s3962_s24, 4  ;;  %s646_s30 = int_to_ptr.hbm [resolvable:$true] %s645_s30  ;;  %s648_s26 = int_to_ptr.vmem [resolvable:$true] %s647_s26 }
  0x1f   : > { %s4844_s18 = sld [smem:[#allocation36_spill]]  ;;  %s3963_s12 = smov 2048  }
  0x20   : > { %3437 = dma.hbm_to_vmem [thread:$0]  (!%p4113_p5), %s646_s30, 4096, %s648_s26, [#allocation11], %s3963_s12, %s3963_s12, %s3960_s23  }
  0x21   : > { %s3964_s4 = smov [#allocation13]   ;;  %s698_s5 = sshll.u32 %s4818_s20, 4  ;;  %s699_s5 = int_to_ptr.hbm [resolvable:$true] %s698_s5 }
  0x22   : > { %s673_s6 = sshll.u32 %s3964_s4, 4  ;;  %s4845_s27 = sld [smem:[#allocation32_spill]]  ;;  %s674_s6 = int_to_ptr.vmem [resolvable:$true] %s673_s6 }
  0x23   : > { %s3965_s12 = smov [#allocation16]   ;;  %s3966_s16 = smov [#allocation2]  }
  0x24   : > { %s700_s30 = sshll.u32 %s3965_s12, 4  ;;  %s564_s3 = sshll.u32 %s3966_s16, 4  ;;  %s701_s30 = int_to_ptr.vmem [resolvable:$true] %s700_s30  ;;  %s565_s3 = int_to_ptr.vmem [resolvable:$true] %s564_s3 }
  0x25   : > { %s671_s8 = sshll.u32 %s4844_s18, 4  ;;  %s596_s18 = sshll.u32 %s4808_s10, 4  ;;  %s672_s8 = int_to_ptr.hbm [resolvable:$true] %s671_s8  ;;  %s597_s18 = int_to_ptr.hbm [resolvable:$true] %s596_s18 }
  0x26   : > { %3443 = dma.hbm_to_vmem [thread:$0]  (!%p4113_p5), %s672_s8, 32768, %s674_s6, [#allocation14], %s3960_s23, %s3960_s23, %s3961_s1  }
  0x27   : > { %3449 = dma.hbm_to_vmem [thread:$0]  (!%p4113_p5), %s699_s5, 16, %s701_s30, [#allocation17]  }
  0x28   : > { %s562_s29 = sshll.u32 %s4845_s27, 4  ;;  %s634_s2 = sshll.u32 %s4813_s15, 4  ;;  %s563_s29 = int_to_ptr.hbm [resolvable:$true] %s562_s29  ;;  %s635_s2 = int_to_ptr.hbm [resolvable:$true] %s634_s2 }
  0x29   : > { %3422 = dma.hbm_to_vmem [thread:$0]  (!%p4113_p5), %s563_s29, 256, %s565_s3, [#allocation3], %s3960_s23, %s3960_s23, %s3961_s1  }
  0x2a   : > { %s3967_s24 = smov [#allocation6]   ;;  %s3968_s27 = smov [#allocation9]  }
  0x2b   : > { %s598_s5 = sshll.u32 %s3967_s24, 4  ;;  %s636_s12 = sshll.u32 %s3968_s27, 4  ;;  %s599_s5 = int_to_ptr.vmem [resolvable:$true] %s598_s5  ;;  %s637_s12 = int_to_ptr.vmem [resolvable:$true] %s636_s12 }
  0x2c   : > { %3428 = dma.hbm_to_vmem [thread:$0]  (!%p4113_p5), %s597_s18, 256, %s599_s5, [#allocation5], %s3960_s23, %s3960_s23, %s3961_s1  }
  0x2d   : > { %s660_s29 = sshll.u32 %s4815_s17, 4  ;;  %s686_s4 = sshll.u32 %s4817_s19, 4  ;;  %s661_s29 = int_to_ptr.hbm [resolvable:$true] %s660_s29  ;;  %s687_s4 = int_to_ptr.hbm [resolvable:$true] %s686_s4 }
  0x2e   : > { %3434 = dma.hbm_to_vmem [thread:$0]  (!%p4113_p5), %s635_s2, 16, %s637_s12, [#allocation8]  }
  0x2f   : > { %s3969_s8 = smov [#allocation12]   ;;  %s3970_s18 = smov [#allocation15]  }
  0x30   : > { %s662_s6 = sshll.u32 %s3969_s8, 4  ;;  %s688_s23 = sshll.u32 %s3970_s18, 4  ;;  %s663_s6 = int_to_ptr.vmem [resolvable:$true] %s662_s6  ;;  %s689_s23 = int_to_ptr.vmem [resolvable:$true] %s688_s23 }
  0x31   : > { %3440 = dma.hbm_to_vmem [thread:$0]  (!%p4113_p5), %s661_s29, 256, %s663_s6, [#allocation11]  }
  0x32   : > { %s710_s5 = sshll.u32 %s4819_s21, 4  ;;  %s3971_s2 = smov [#allocation18]   ;;  %s711_s5 = int_to_ptr.hbm [resolvable:$true] %s710_s5 }
  0x33   : > { %3446 = dma.hbm_to_vmem [thread:$0]  (!%p4113_p5), %s687_s4, 16, %s689_s23, [#allocation14]  }
  0x34   : > { %s712_s27 = sshll.u32 %s3971_s2, 4  ;;  %733 = sbr.rel (%p4102_p3) target bundleno = 2291 (0x8f3), region = 108  ;;  %s713_s27 = int_to_ptr.vmem [resolvable:$true] %s712_s27 }
  0x35   : > { %3452 = dma.hbm_to_vmem [thread:$0]  (!%p4113_p5), %s711_s5, 16, %s713_s27, [#allocation17]  }
  0x39   : > { %3931 = dma.done.wait (%p3453_p2), [#allocation3], 256  }
  0x3a   : > { %3933 = vsyncadd (%p3453_p2), [#allocation3], 4294967040 }
  0x3b   : > { %3935 = dma.done.wait (%p3453_p2), [#allocation5], 512  }
  0x3c   : > { %3937 = vsyncadd (%p3453_p2), [#allocation5], 4294966784 }
  0x3d   : > { %3939 = dma.done.wait (%p3453_p2), [#allocation8], 272  }
  0x3e   : > { %3941 = vsyncadd (%p3453_p2), [#allocation8], 4294967024 }
  0x3f   : > { %3943 = dma.done.wait (%p3453_p2), [#allocation11], 4352  }
  0x40   : > { %3945 = vsyncadd (%p3453_p2), [#allocation11], 4294962944 }
  0x41   : > { %3947 = dma.done.wait (%p3453_p2), [#allocation14], 32784  }
  0x42   : > { %3949 = vsyncadd (%p3453_p2), [#allocation14], 4294934512 }
  0x43   : > { %3951 = dma.done.wait (%p3453_p2), [#allocation17], 32  }
  0x44   : > { %3953 = vsyncadd (%p3453_p2), [#allocation17], 4294967264  ;;  %p846_p6 = scmp.lt.s32.totalorder %s4094_s28, 1  ;;  %s4846_s30 = sld [smem:[#allocation26_spill]]  ;;  %v863_v0 = vld [vmem:[#allocation2 + $0x8] sm:$0xff]  ;;  %v862_v1 = vld [vmem:[#allocation2] sm:$0xff] }
  0x45   : > { %3371 = vmatpush.msra.mxu2 %v863_v0  ;;  %s4847_s26 = sld [smem:[#allocation27_spill]]  ;;  %vm868_vm0 = vcmask 130048   ;;  %889 = vmatpush.msra.mxu0 %v863_v0  ;;  %v899_v8 = vld [vmem:[#allocation4 + $0x8] sm:$0xff]  ;;  %v898_v9 = vld [vmem:[#allocation4] sm:$0xff]  ;;  %v3498_v10 = vld [vmem:[%s4805_s7] ss:$0 sm:$0xff] }
  0x46   : > { %s4854_s28 = smov (!%p846_p6, %s4094_s28), 1  ;;  %3373 = vmatpush.msra.mxu3 %v899_v8  ;;  %918 = vmatpush.msra.mxu1 %v899_v8  ;;  %s4848_s24 = sld [smem:[#allocation30_spill]]  ;;  %v3499_v19 = vld [vmem:[%s4807_s9] ss:$0 sm:$0xff] }
  0x47   : > { %s3369_s0 = sshll.u32 %s4854_s28, 4  ;;  %3372 = vmatpush.msra.mxu2 %v862_v1  ;;  %890 = vmatpush.msra.mxu0 %v862_v1  ;;  %s4849_s6 = sld [smem:[#allocation29_spill]] }
  0x48   : > { %3374 = vmatpush.msra.mxu3 %v898_v9  ;;  %919 = vmatpush.msra.mxu1 %v898_v9  ;;  %s4850_s2 = sld [smem:[#allocation28_spill]] }
  0x49   : > { %s4851_s4 = sld [smem:[#allocation31_spill]] }
  0x4a   : > { %s850_s16 = scalar_lea.vmem %s4846_s30, %s3369_s0  ;;  %s855_s30 = scalar_lea.vmem %s4820_s22, %s3369_s0 }
  0x4b   : > { %v857_v2 = vld [vmem:[%s850_s16 + $0x8] sm:$0xff]  ;;  %v856_v4 = vld [vmem:[%s850_s16] sm:$0xff] }
  0x4c   : > { %v859_v3 = vld [vmem:[%s4847_s26 + $0x8] sm:$0xff]  ;;  %v858_v5 = vld [vmem:[%s4847_s26] sm:$0xff]  ;;  %v974_v17 = vld [vmem:[%s4848_s24 + $0x10] sm:$0xff] }
  0x4d   : > { %v4224_v6 = vadd.f32 %v859_v3, %v857_v2  ;;  %v4226_v7 = vadd.f32 %v858_v5, %v856_v4  ;;  %v972_v15 = vld [vmem:[%s4848_s24] sm:$0xff]  ;;  %v973_v16 = vld [vmem:[%s4848_s24 + $0x8] sm:$0xff]  ;;  %v975_v18 = vld [vmem:[%s4848_s24 + $0x18] sm:$0xff] }
  0x4e   : > { %v976_v24 = vld [vmem:[%s4848_s24 + $0x20] sm:$0xff]  ;;  %v977_v25 = vld [vmem:[%s4848_s24 + $0x28] sm:$0xff]  ;;  %v978_v26 = vld [vmem:[%s4848_s24 + $0x30] sm:$0xff] }
  0x4f   : > { %3278 = vmatmul.msk.f32.vlgmr.msra.gmra.mxu2 %vm868_vm0, %v4224_v6  ;;  %3277 = vmatmul.msk.f32.vlgmr.msra.gmra.mxu0 %vm868_vm0, %v4226_v7  ;;  %v979_v27 = vld [vmem:[%s4848_s24 + $0x38] sm:$0xff]  ;;  %v980_v28 = vld [vmem:[%s4848_s24 + $0x40] sm:$0xff]  ;;  %v981_v29 = vld [vmem:[%s4848_s24 + $0x48] sm:$0xff] }
  0x50   : > { %3280 = vmatmul.msk.f32.vlgmr.msra.gmra.mxu3 %vm868_vm0, %v4224_v6  ;;  %3279 = vmatmul.msk.f32.vlgmr.msra.gmra.mxu1 %vm868_vm0, %v4226_v7  ;;  %v982_v30 = vld [vmem:[%s4848_s24 + $0x50] sm:$0xff]  ;;  %v983_v31 = vld [vmem:[%s4848_s24 + $0x58] sm:$0xff]  ;;  %v956_v32 = vld [vmem:[%s4849_s6] sm:$0xff] }
  0x51   : > { %v984_v35 = vld [vmem:[%s4848_s24 + $0x60] sm:$0xff]  ;;  %v957_v36 = vld [vmem:[%s4849_s6 + $0x8] sm:$0xff]  ;;  %v958_v40 = vld [vmem:[%s4849_s6 + $0x10] sm:$0xff] }
  0x52   : > { %v985_v39 = vld [vmem:[%s4848_s24 + $0x68] sm:$0xff]  ;;  %v986_v43 = vld [vmem:[%s4848_s24 + $0x70] sm:$0xff]  ;;  %v959_v44 = vld [vmem:[%s4849_s6 + $0x18] sm:$0xff] }
  0x53   : > { %v987_v47 = vld [vmem:[%s4848_s24 + $0x78] sm:$0xff]  ;;  %v960_v48 = vld [vmem:[%s4849_s6 + $0x20] sm:$0xff]  ;;  %v961_v51 = vld [vmem:[%s4849_s6 + $0x28] sm:$0xff] }
  0x54   : > { %v962_v54 = vld [vmem:[%s4849_s6 + $0x30] sm:$0xff]  ;;  %v963_v57 = vld [vmem:[%s4849_s6 + $0x38] sm:$0xff]  ;;  %v964_v60 = vld [vmem:[%s4849_s6 + $0x40] sm:$0xff] }
  0x55   : > { %v965_v63 = vld [vmem:[%s4849_s6 + $0x48] sm:$0xff]  ;;  %v966_v2 = vld [vmem:[%s4849_s6 + $0x50] sm:$0xff]  ;;  %v967_v5 = vld [vmem:[%s4849_s6 + $0x58] sm:$0xff] }
  0xcc   : > { %v892_v11 = vpop.f32.mrf.mxu0 }
  0xcd   : > { %v893_v14 = vadd.f32 %v3498_v10, %v892_v11  ;;  %v921_v21 = vpop.f32.mrf.mxu1 }
  0xce   : > { %v922_v23 = vadd.f32 %v3499_v19, %v921_v21 }
  0xd2   : > { %v895_v12 = vpop.f32.mrf.mxu2 }
  0xd3   : > { %v896_v13 = vadd.f32 %v3498_v10, %v895_v12  ;;  %v924_v20 = vpop.f32.mrf.mxu3  ;;  %v1252_v10 = vld [vmem:[%s4850_s2] sm:$0xff] }
  0xd4   : > { %v925_v22 = vadd.f32 %v3499_v19, %v924_v20 }
  0xd5   : > { %1050 = vmatpush.msrb.mxu3 %v896_v13 }
  0xd6   : > { %3299 = vmatpush.xpose.msk.msrb.mxu0 %vm868_vm0, %v925_v22 }
  0xd7   : > { %1051 = vmatpush.msrb.mxu3 %v893_v14 }
  0xd8   : > { %3283 = vmatmul.msk.f32.vlgmr.msrb.gmra.mxu3 %vm868_vm0, %v972_v15  ;;  %v968_v15 = vld [vmem:[%s4849_s6 + $0x60] sm:$0xff] }
  0xda   : > { %3300 = vmatpush.xpose.msk.msrb.mxu0 %vm868_vm0, %v922_v23  ;;  %v969_v23 = vld [vmem:[%s4849_s6 + $0x68] sm:$0xff] }
  0xe0   : > { %3284 = vmatmul.msk.f32.gmra.mxu3 %vm868_vm0, %v973_v16 }
  0xe8   : > { %3285 = vmatmul.msk.f32.gmra.mxu3 %vm868_vm0, %v974_v17 }
  0xf0   : > { %3286 = vmatmul.msk.f32.gmra.mxu3 %vm868_vm0, %v975_v18  ;;  %v1253_v18 = vld [vmem:[%s4850_s2 + $0x8] sm:$0xff] }
  0xf8   : > { %3287 = vmatmul.msk.f32.gmra.mxu3 %vm868_vm0, %v976_v24 }
 0x100   : > { %3288 = vmatmul.msk.f32.gmra.mxu3 %vm868_vm0, %v977_v25 }
 0x108   : > { %3289 = vmatmul.msk.f32.gmra.mxu3 %vm868_vm0, %v978_v26  ;;  %v1254_v26 = vld [vmem:[%s4850_s2 + $0x10] sm:$0xff] }
 0x110   : > { %3290 = vmatmul.msk.f32.gmra.mxu3 %vm868_vm0, %v979_v27 }
 0x118   : > { %3291 = vmatmul.msk.f32.gmra.mxu3 %vm868_vm0, %v980_v28 }
 0x120   : > { %3292 = vmatmul.msk.f32.gmra.mxu3 %vm868_vm0, %v981_v29 }
 0x128   : > { %3293 = vmatmul.msk.f32.gmra.mxu3 %vm868_vm0, %v982_v30 }
 0x130   : > { %3294 = vmatmul.msk.f32.gmra.mxu3 %vm868_vm0, %v983_v31  ;;  %v970_v31 = vld [vmem:[%s4849_s6 + $0x70] sm:$0xff] }
 0x138   : > { %3295 = vmatmul.msk.f32.gmra.mxu3 %vm868_vm0, %v984_v35 }
 0x140   : > { %3296 = vmatmul.msk.f32.gmra.mxu3 %vm868_vm0, %v985_v39  ;;  %v4399_v39 = vld [vmem:[%s4849_s6 + $0x78] sm:$0xff] }
 0x148   : > { %3297 = vmatmul.msk.f32.gmra.mxu3 %vm868_vm0, %v986_v43  ;;  %v1256_v43 = vld [vmem:[%s4850_s2 + $0x20] sm:$0xff] }
 0x150   : > { %3298 = vmatmul.msk.f32.gmra.mxu3 %vm868_vm0, %v987_v47 }
 0x15b   : > { %v1053_v33 = vpop.f32.mrf.mxu3 }
 0x15c   : > { %v1101_v34 = vmul.f32 %v1053_v33, %v956_v32 }
 0x15e   : > { %3301 = vmatmul.msk.f32.vlgmr.msrb.gmra.mxu0 %vm868_vm0, %v1101_v34  ;;  %v1255_v34 = vld [vmem:[%s4850_s2 + $0x18] sm:$0xff] }
 0x163   : > { %v1056_v37 = vpop.f32.mrf.mxu3 }
 0x164   : > { %v1102_v38 = vmul.f32 %v1056_v37, %v957_v36 }
 0x166   : > { %3302 = vmatmul.msk.f32.gmra.mxu0 %vm868_vm0, %v1102_v38 }
 0x16b   : > { %v1059_v41 = vpop.f32.mrf.mxu3 }
 0x16c   : > { %v1103_v42 = vmul.f32 %v1059_v41, %v958_v40  ;;  %v928_v40 = vld [vmem:[#allocation6 + $0x8] sm:$0xff] }
 0x16d   : > { %947 = vmatpush.msrb.mxu2 %v928_v40 }
 0x16e   : > { %3303 = vmatmul.msk.f32.gmra.mxu0 %vm868_vm0, %v1103_v42 }
 0x173   : > { %v1062_v45 = vpop.f32.mrf.mxu3 }
 0x174   : > { %v1104_v46 = vmul.f32 %v1062_v45, %v959_v44 }
 0x176   : > { %3304 = vmatmul.msk.f32.gmra.mxu0 %vm868_vm0, %v1104_v46 }
 0x17b   : > { %v1065_v49 = vpop.f32.mrf.mxu3 }
 0x17c   : > { %v1105_v50 = vmul.f32 %v1065_v49, %v960_v48  ;;  %v1257_v49 = vld [vmem:[%s4850_s2 + $0x28] sm:$0xff] }
 0x17e   : > { %3305 = vmatmul.msk.f32.gmra.mxu0 %vm868_vm0, %v1105_v50 }
 0x183   : > { %v1068_v52 = vpop.f32.mrf.mxu3 }
 0x184   : > { %v1106_v53 = vmul.f32 %v1068_v52, %v961_v51 }
 0x186   : > { %3306 = vmatmul.msk.f32.gmra.mxu0 %vm868_vm0, %v1106_v53 }
 0x18b   : > { %v1071_v55 = vpop.f32.mrf.mxu3 }
 0x18c   : > { %v1107_v56 = vmul.f32 %v1071_v55, %v962_v54  ;;  %v1258_v54 = vld [vmem:[%s4850_s2 + $0x30] sm:$0xff] }
 0x18e   : > { %3307 = vmatmul.msk.f32.gmra.mxu0 %vm868_vm0, %v1107_v56 }
 0x193   : > { %v1074_v58 = vpop.f32.mrf.mxu3 }
 0x194   : > { %v1108_v59 = vmul.f32 %v1074_v58, %v963_v57 }
 0x196   : > { %3308 = vmatmul.msk.f32.gmra.mxu0 %vm868_vm0, %v1108_v59  ;;  %v1259_v59 = vld [vmem:[%s4850_s2 + $0x38] sm:$0xff] }
 0x19b   : > { %v1077_v61 = vpop.f32.mrf.mxu3 }
 0x19c   : > { %v1109_v62 = vmul.f32 %v1077_v61, %v964_v60 }
 0x19e   : > { %3309 = vmatmul.msk.f32.gmra.mxu0 %vm868_vm0, %v1109_v62 }
 0x1a3   : > { %v1080_v0 = vpop.f32.mrf.mxu3 }
 0x1a4   : > { %v1110_v1 = vmul.f32 %v1080_v0, %v965_v63  ;;  %v927_v63 = vld [vmem:[#allocation6] sm:$0xff] }
 0x1a5   : > { %948 = vmatpush.msrb.mxu2 %v927_v63 }
 0x1a6   : > { %3310 = vmatmul.msk.f32.gmra.mxu0 %vm868_vm0, %v1110_v1  ;;  %3281 = vmatmul.msk.f32.vlgmr.msrb.gmra.mxu2 %vm868_vm0, %v4226_v7 }
 0x1ab   : > { %v1083_v3 = vpop.f32.mrf.mxu3 }
 0x1ac   : > { %v1111_v4 = vmul.f32 %v1083_v3, %v966_v2 }
 0x1ae   : > { %3311 = vmatmul.msk.f32.gmra.mxu0 %vm868_vm0, %v1111_v4  ;;  %3282 = vmatmul.msk.f32.gmra.mxu2 %vm868_vm0, %v4224_v6 }
 0x1b3   : > { %v1086_v8 = vpop.f32.mrf.mxu3 }
 0x1b4   : > { %v1112_v11 = vmul.f32 %v1086_v8, %v967_v5 }
 0x1b6   : > { %3312 = vmatmul.msk.f32.gmra.mxu0 %vm868_vm0, %v1112_v11 }
 0x1bb   : > { %v1089_v16 = vpop.f32.mrf.mxu3 }
 0x1bc   : > { %v1113_v19 = vmul.f32 %v1089_v16, %v968_v15 }
 0x1be   : > { %3313 = vmatmul.msk.f32.gmra.mxu0 %vm868_vm0, %v1113_v19 }
 0x1c3   : > { %v1092_v24 = vpop.f32.mrf.mxu3 }
 0x1c4   : > { %v1114_v27 = vmul.f32 %v1092_v24, %v969_v23 }
 0x1c6   : > { %3314 = vmatmul.msk.f32.gmra.mxu0 %vm868_vm0, %v1114_v27 }
 0x1cb   : > { %v1095_v32 = vpop.f32.mrf.mxu3 }
 0x1cc   : > { %v1115_v35 = vmul.f32 %v1095_v32, %v970_v31  ;;  %v1262_v32 = vld [vmem:[%s4850_s2 + $0x50] sm:$0xff] }
 0x1ce   : > { %3315 = vmatmul.msk.f32.gmra.mxu0 %vm868_vm0, %v1115_v35 }
 0x1d3   : > { %v1098_v41 = vpop.f32.mrf.mxu3 }
 0x1d4   : > { %v1116_v44 = vmul.f32 %v1098_v41, %v4399_v39 }
 0x1d6   : > { %3316 = vmatmul.msk.f32.gmra.mxu0 %vm868_vm0, %v1116_v44 }
 0x1db   : > { %v1188_v9 = vpop.f32.mrf.mxu0 }
 0x1dc   : > { %v1236_v12 = vmul.f32 0.70710677, %v1188_v9 }
 0x1de   : > { %v4359_v13 = vadd.f32 %v1252_v10, %v1236_v12  ;;  %v1260_v12 = vld [vmem:[%s4850_s2 + $0x40] sm:$0xff] }
 0x1e0   : > { %v1284_v14 = vsel %vm868_vm0, %v4359_v13, -inf }
 0x1e1   : > { %1285 = vmax.xlane.f32.xlu0 %v1284_v14 }
 0x1e3   : > { %v1191_v17 = vpop.f32.mrf.mxu0 }
 0x1e4   : > { %v1237_v20 = vmul.f32 0.70710677, %v1191_v17 }
 0x1e6   : > { %v4370_v21 = vadd.f32 %v1253_v18, %v1237_v20 }
 0x1e8   : > { %v1287_v22 = vsel %vm868_vm0, %v4370_v21, -inf }
 0x1e9   : > { %1288 = vmax.xlane.f32.xlu0 %v1287_v22  ;;  %v1261_v22 = vld [vmem:[%s4850_s2 + $0x48] sm:$0xff] }
 0x1eb   : > { %v1194_v25 = vpop.f32.mrf.mxu0 }
 0x1ec   : > { %v1238_v28 = vmul.f32 0.70710677, %v1194_v25 }
 0x1ee   : > { %v4381_v29 = vadd.f32 %v1254_v26, %v1238_v28 }
 0x1f0   : > { %v1290_v30 = vsel %vm868_vm0, %v4381_v29, -inf }
 0x1f1   : > { %1291 = vmax.xlane.f32.xlu1 %v1290_v30 }
 0x1f3   : > { %v1197_v33 = vpop.f32.mrf.mxu0 }
 0x1f4   : > { %v1239_v36 = vmul.f32 0.70710677, %v1197_v33 }
 0x1f6   : > { %v4392_v37 = vadd.f32 %v1255_v34, %v1239_v36 }
 0x1f8   : > { %v1293_v38 = vsel %vm868_vm0, %v4392_v37, -inf }
 0x1f9   : > { %1294 = vmax.xlane.f32.xlu1 %v1293_v38 }
 0x1fb   : > { %v1200_v42 = vpop.f32.mrf.mxu0 }
 0x1fc   : > { %v1240_v45 = vmul.f32 0.70710677, %v1200_v42 }
 0x1fe   : > { %v4406_v46 = vadd.f32 %v1256_v43, %v1240_v45  ;;  %v1263_v43 = vld [vmem:[%s4850_s2 + $0x58] sm:$0xff] }
 0x200   : > { %v1296_v47 = vsel %vm868_vm0, %v4406_v46, -inf }
 0x201   : > { %1297 = vmax.xlane.f32.xlu2 %v1296_v47 }
 0x203   : > { %v1203_v48 = vpop.f32.mrf.mxu0 }
 0x204   : > { %v1241_v50 = vmul.f32 0.70710677, %v1203_v48 }
 0x206   : > { %v4413_v51 = vadd.f32 %v1257_v49, %v1241_v50 }
 0x208   : > { %v1299_v52 = vsel %vm868_vm0, %v4413_v51, -inf }
 0x209   : > { %1300 = vmax.xlane.f32.xlu2 %v1299_v52 }
 0x20b   : > { %v1206_v53 = vpop.f32.mrf.mxu0 }
 0x20c   : > { %v1242_v55 = vmul.f32 0.70710677, %v1206_v53  ;;  %v1264_v53 = vld [vmem:[%s4850_s2 + $0x60] sm:$0xff] }
 0x20e   : > { %v4420_v56 = vadd.f32 %v1258_v54, %v1242_v55 }
 0x210   : > { %v1302_v57 = vsel %vm868_vm0, %v4420_v56, -inf }
 0x211   : > { %1303 = vmax.xlane.f32.xlu0 %v1302_v57 }
 0x213   : > { %v1209_v58 = vpop.f32.mrf.mxu0 }
 0x214   : > { %v1243_v60 = vmul.f32 0.70710677, %v1209_v58 }
 0x216   : > { %v4427_v61 = vadd.f32 %v1259_v59, %v1243_v60 }
 0x218   : > { %v1305_v62 = vsel %vm868_vm0, %v4427_v61, -inf }
 0x219   : > { %1306 = vmax.xlane.f32.xlu2 %v1305_v62 }
 0x21b   : > { %v1212_v0 = vpop.f32.mrf.mxu0 }
 0x21c   : > { %v1244_v9 = vmul.f32 0.70710677, %v1212_v0  ;;  %v1265_v0 = vld [vmem:[%s4850_s2 + $0x68] sm:$0xff] }
 0x21e   : > { %v4444_v15 = vadd.f32 %v1260_v12, %v1244_v9  ;;  %v1266_v12 = vld [vmem:[%s4850_s2 + $0x70] sm:$0xff] }
 0x220   : > { %v1308_v18 = vsel %vm868_vm0, %v4444_v15, -inf }
 0x223   : > { %v1215_v4 = vpop.f32.mrf.mxu0 }
 0x224   : > { %v1245_v19 = vmul.f32 0.70710677, %v1215_v4 }
 0x226   : > { %v4456_v24 = vadd.f32 %v1261_v22, %v1245_v19  ;;  %v1267_v19 = vld [vmem:[%s4850_s2 + $0x78] sm:$0xff] }
 0x228   : > { %v1311_v28 = vsel %vm868_vm0, %v4456_v24, -inf }
 0x254   : > { %v1286_v1 = vpop.xlane.xlu0 %1285 }
 0x255   : > { %v1332_v2 = vsub.f32 %v4359_v13, %v1286_v1  ;;  %v1218_v13 = vpop.f32.mrf.mxu0 }
 0x257   : > { %v1348_v3 = vmul.f32 1.442695, %v1332_v2 }
 0x259   : > { %3507 = vpow2.f32 %v1348_v3 }
 0x25c   : > { %v1289_v5 = vpop.xlane.xlu0 %1288 }
 0x25d   : > { %v1333_v8 = vsub.f32 %v4370_v21, %v1289_v5  ;;  %v1221_v25 = vpop.f32.mrf.mxu0 }
 0x25e   : > { %v1247_v40 = vmul.f32 0.70710677, %v1221_v25  ;;  %v950_v25 = vpop.f32.mrf.mxu2 }
 0x25f   : > { %v4437_v10 = vpop.eup %3507  ;;  %v1350_v11 = vmul.f32 1.442695, %v1333_v8 }
 0x260   : > { %v1380_v14 = vsel %vm868_vm0, %v4437_v10, 0.0  ;;  %v4480_v45 = vadd.f32 %v1263_v43, %v1247_v40 }
 0x261   : > { %3509 = vpow2.f32 %v1350_v11  ;;  %1381 = vadd.xlane.f32.xlu1 %v1380_v14 }
 0x262   : > { %v1317_v48 = vsel %vm868_vm0, %v4480_v45, -inf }
 0x264   : > { %v1292_v16 = vpop.xlane.xlu1 %1291 }
 0x265   : > { %v1334_v17 = vsub.f32 %v4381_v29, %v1292_v16  ;;  %v1246_v29 = vmul.f32 0.70710677, %v1218_v13 }
 0x267   : > { %v4449_v20 = vpop.eup %3509  ;;  %v1352_v21 = vmul.f32 1.442695, %v1334_v17  ;;  %v4468_v34 = vadd.f32 %v1262_v32, %v1246_v29 }
 0x268   : > { %v1383_v23 = vsel %vm868_vm0, %v4449_v20, 0.0 }
 0x269   : > { %3511 = vpow2.f32 %v1352_v21  ;;  %1384 = vadd.xlane.f32.xlu0 %v1383_v23  ;;  %1309 = vmax.xlane.f32.xlu1 %v1308_v18  ;;  %v1314_v38 = vsel %vm868_vm0, %v4468_v34, -inf }
 0x26c   : > { %v1295_v26 = vpop.xlane.xlu1 %1294 }
 0x26d   : > { %v1335_v27 = vsub.f32 %v4392_v37, %v1295_v26  ;;  %v1224_v37 = vpop.f32.mrf.mxu0  ;;  %v3500_v26 = vld [vmem:[%s4809_s11] ss:$0 sm:$0xff] }
 0x26e   : > { %v1248_v49 = vmul.f32 0.70710677, %v1224_v37  ;;  %v951_v29 = vadd.f32 %v3500_v26, %v950_v25 }
 0x26f   : > { %v4461_v30 = vpop.eup %3511  ;;  %v1354_v31 = vmul.f32 1.442695, %v1335_v27  ;;  %v953_v27 = vpop.f32.mrf.mxu2 }
 0x270   : > { %v1386_v33 = vsel %vm868_vm0, %v4461_v30, 0.0  ;;  %v4492_v57 = vadd.f32 %v1264_v53, %v1248_v49 }
 0x271   : > { %3513 = vpow2.f32 %v1354_v31  ;;  %1387 = vadd.xlane.f32.xlu2 %v1386_v33  ;;  %1312 = vmax.xlane.f32.xlu0 %v1311_v28  ;;  %v954_v28 = vadd.f32 %v3500_v26, %v953_v27 }
 0x272   : > { %v1320_v59 = vsel %vm868_vm0, %v4492_v57, -inf }
 0x273   : > { %1730 = vmatpush.msrb.mxu1 %v954_v28 }
 0x274   : > { %v1298_v35 = vpop.xlane.xlu2 %1297 }
 0x275   : > { %v1336_v36 = vsub.f32 %v4406_v46, %v1298_v35  ;;  %v1227_v54 = vpop.f32.mrf.mxu0  ;;  %1731 = vmatpush.msrb.mxu1 %v951_v29 }
 0x276   : > { %v1249_v60 = vmul.f32 0.70710677, %v1227_v54 }
 0x277   : > { %v4473_v41 = vpop.eup %3513  ;;  %v1356_v42 = vmul.f32 1.442695, %v1336_v36 }
 0x278   : > { %v1389_v44 = vsel %vm868_vm0, %v4473_v41, 0.0  ;;  %v4504_v3 = vadd.f32 %v1265_v0, %v1249_v60 }
 0x279   : > { %3515 = vpow2.f32 %v1356_v42  ;;  %1390 = vadd.xlane.f32.xlu1 %v1389_v44  ;;  %1315 = vmax.xlane.f32.xlu2 %v1314_v38 }
 0x27a   : > { %v1323_v5 = vsel %vm868_vm0, %v4504_v3, -inf }
 0x27c   : > { %v1301_v46 = vpop.xlane.xlu2 %1300 }
 0x27d   : > { %v1337_v47 = vsub.f32 %v4413_v51, %v1301_v46  ;;  %v1230_v2 = vpop.f32.mrf.mxu0 }
 0x27e   : > { %v1250_v8 = vmul.f32 0.70710677, %v1230_v2 }
 0x27f   : > { %v4485_v50 = vpop.eup %3515  ;;  %v1358_v52 = vmul.f32 1.442695, %v1337_v47 }
 0x280   : > { %v1392_v55 = vsel %vm868_vm0, %v4485_v50, 0.0  ;;  %v4516_v13 = vadd.f32 %v1266_v12, %v1250_v8 }
 0x281   : > { %3517 = vpow2.f32 %v1358_v52  ;;  %1393 = vadd.xlane.f32.xlu0 %v1392_v55  ;;  %1318 = vmax.xlane.f32.xlu1 %v1317_v48 }
 0x282   : > { %v1326_v16 = vsel %vm868_vm0, %v4516_v13, -inf }
 0x284   : > { %v1304_v51 = vpop.xlane.xlu0 %1303 }
 0x285   : > { %v1338_v58 = vsub.f32 %v4420_v56, %v1304_v51 }
 0x287   : > { %v4497_v62 = vpop.eup %3517  ;;  %v1360_v63 = vmul.f32 1.442695, %v1338_v58 }
 0x288   : > { %v1395_v1 = vsel %vm868_vm0, %v4497_v62, 0.0 }
 0x289   : > { %3519 = vpow2.f32 %v1360_v63  ;;  %1396 = vadd.xlane.f32.xlu2 %v1395_v1  ;;  %1321 = vmax.xlane.f32.xlu0 %v1320_v59 }
 0x28c   : > { %v1307_v56 = vpop.xlane.xlu2 %1306 }
 0x28d   : > { %v1339_v4 = vsub.f32 %v4427_v61, %v1307_v56  ;;  %v1233_v61 = vpop.f32.mrf.mxu0 }
 0x28e   : > { %v1251_v17 = vmul.f32 0.70710677, %v1233_v61 }
 0x28f   : > { %v4509_v9 = vpop.eup %3519  ;;  %v1362_v11 = vmul.f32 1.442695, %v1339_v4 }
 0x290   : > { %v1398_v14 = vsel %vm868_vm0, %v4509_v9, 0.0  ;;  %v4527_v22 = vadd.f32 %v1267_v19, %v1251_v17 }
 0x291   : > { %3521 = vpow2.f32 %v1362_v11  ;;  %1399 = vadd.xlane.f32.xlu1 %v1398_v14  ;;  %1324 = vmax.xlane.f32.xlu2 %v1323_v5 }
 0x292   : > { %v1329_v23 = vsel %vm868_vm0, %v4527_v22, -inf }
 0x297   : > { %v4520_v18 = vpop.eup %3521 }
 0x298   : > { %v1401_v21 = vsel %vm868_vm0, %v4520_v18, 0.0 }
 0x299   : > { %1402 = vadd.xlane.f32.xlu0 %v1401_v21  ;;  %1327 = vmax.xlane.f32.xlu1 %v1326_v16 }
 0x2a1   : > { %1330 = vmax.xlane.f32.xlu0 %v1329_v23 }
 0x2d4   : > { %v1382_v31 = vpop.xlane.xlu1 %1381 }
 0x2d5   : > { %3523 = vrcp.f32 %v1382_v31  ;;  %v1439_v43 = vand.u32 2147483648, %v1382_v31  ;;  %v1437_v44 = vand.u32 2147483647, %v1382_v31  ;;  %vm1433_vm2 = vweird.f32 %v1382_v31 }
 0x2d7   : > { %v1440_v48 = vor.u32 1.1754944e-38, %v1439_v43  ;;  %vm1438_vm4 = vcmp.eq.f32.partialorder %v1437_v44, 8.507059e+37 }
 0x2db   : > { %v3524_v32 = vpop.eup %3523 }
 0x2dc   : > { %v1429_v33 = vmul.f32 %v3524_v32, %v1382_v31  ;;  %v1385_v35 = vpop.xlane.xlu0 %1384  ;;  %v1310_v36 = vpop.xlane.xlu1 %1309  ;;  %vm1434_vm1 = vweird.f32 %v3524_v32 }
 0x2dd   : > { %3525 = vrcp.f32 %v1385_v35  ;;  %v1340_v37 = vsub.f32 %v4444_v15, %v1310_v36  ;;  %vm1435_vm3 = vmor %vm1433_vm2, %vm1434_vm1  ;;  %v1454_v0 = vand.u32 2147483648, %v1385_v35  ;;  %v1452_v2 = vand.u32 2147483647, %v1385_v35 }
 0x2de   : > { %v1430_v38 = vsub.f32 1.0, %v1429_v33  ;;  %vm1448_vm6 = vweird.f32 %v1385_v35 }
 0x2df   : > { %v1364_v40 = vmul.f32 1.442695, %v1340_v37  ;;  %v1455_v4 = vor.u32 1.1754944e-38, %v1454_v0  ;;  %vm1453_vm8 = vcmp.eq.f32.partialorder %v1452_v2, 8.507059e+37 }
 0x2e0   : > { %v1431_v42 = vmul.f32 %v3524_v32, %v1430_v38 }
 0x2e1   : > { %3527 = vpow2.f32 %v1364_v40 }
 0x2e2   : > { %v1432_v46 = vadd.f32 %v3524_v32, %v1431_v42 }
 0x2e3   : > { %v3526_v47 = vpop.eup %3525 }
 0x2e4   : > { %v1444_v49 = vmul.f32 %v3526_v47, %v1385_v35  ;;  %v1388_v52 = vpop.xlane.xlu2 %1387  ;;  %v1313_v53 = vpop.xlane.xlu0 %1312  ;;  %v1436_v54 = vsel %vm1435_vm3, %v3524_v32, %v1432_v46  ;;  %vm1449_vm5 = vweird.f32 %v3526_v47 }
 0x2e5   : > { %3529 = vrcp.f32 %v1388_v52  ;;  %v1341_v15 = vsub.f32 %v4456_v24, %v1313_v53  ;;  %v1441_v51 = vsel %vm1438_vm4, %v1440_v48, %v1436_v54  ;;  %vm1450_vm7 = vmor %vm1448_vm6, %vm1449_vm5  ;;  %v1469_v23 = vand.u32 2147483648, %v1388_v52 }
 0x2e6   : > { %v1445_v55 = vsub.f32 1.0, %v1444_v49  ;;  %v1442_v60 = vmul.f32 %v4437_v10, %v1441_v51  ;;  %v1467_v26 = vand.u32 2147483647, %v1388_v52  ;;  %vm1463_vm10 = vweird.f32 %v1388_v52 }
 0x2e7   : > { %v4536_v58 = vpop.eup %3527  ;;  %v1366_v59 = vmul.f32 1.442695, %v1341_v15  ;;  %v1470_v28 = vor.u32 1.1754944e-38, %v1469_v23 }
 0x2e8   : > { %v1446_v63 = vmul.f32 %v3526_v47, %v1445_v55  ;;  %v1404_v1 = vsel %vm868_vm0, %v4536_v58, 0.0  ;;  %3317 = vmatmul.msk.f32.vlgmr.msrb.gmra.mxu1 %vm868_vm0, %v1442_v60  ;;  %vm1468_vm12 = vcmp.eq.f32.partialorder %v1467_v26, 8.507059e+37 }
 0x2e9   : > { %3531 = vpow2.f32 %v1366_v59  ;;  %1405 = vadd.xlane.f32.xlu2 %v1404_v1 }
 0x2ea   : > { %v1447_v24 = vadd.f32 %v3526_v47, %v1446_v63 }
 0x2eb   : > { %v3530_v56 = vpop.eup %3529 }
 0x2ec   : > { %v1459_v5 = vmul.f32 %v3530_v56, %v1388_v52  ;;  %v1391_v8 = vpop.xlane.xlu1 %1390  ;;  %v1316_v11 = vpop.xlane.xlu2 %1315  ;;  %v1451_v10 = vsel %vm1450_vm7, %v3526_v47, %v1447_v24  ;;  %vm1464_vm9 = vweird.f32 %v3530_v56 }
 0x2ed   : > { %3533 = vrcp.f32 %v1391_v8  ;;  %v1342_v12 = vsub.f32 %v4468_v34, %v1316_v11  ;;  %v1456_v61 = vsel %vm1453_vm8, %v1455_v4, %v1451_v10  ;;  %vm1465_vm11 = vmor %vm1463_vm10, %vm1464_vm9  ;;  %v1484_v43 = vand.u32 2147483648, %v1391_v8 }
 0x2ee   : > { %v1460_v14 = vsub.f32 1.0, %v1459_v5  ;;  %v1457_v19 = vmul.f32 %v4449_v20, %v1456_v61  ;;  %v1482_v46 = vand.u32 2147483647, %v1391_v8  ;;  %vm1478_vm14 = vweird.f32 %v1391_v8 }
 0x2ef   : > { %v4543_v16 = vpop.eup %3531  ;;  %v1368_v17 = vmul.f32 1.442695, %v1342_v12  ;;  %v1485_v48 = vor.u32 1.1754944e-38, %v1484_v43 }
 0x2f0   : > { %v1461_v21 = vmul.f32 %v3530_v56, %v1460_v14  ;;  %v1407_v25 = vsel %vm868_vm0, %v4543_v16, 0.0  ;;  %3318 = vmatmul.msk.f32.gmra.mxu1 %vm868_vm0, %v1457_v19  ;;  %vm1483_vm1 = vcmp.eq.f32.partialorder %v1482_v46, 8.507059e+37 }
 0x2f1   : > { %3535 = vpow2.f32 %v1368_v17  ;;  %1408 = vadd.xlane.f32.xlu1 %v1407_v25 }
 0x2f2   : > { %v1462_v34 = vadd.f32 %v3530_v56, %v1461_v21 }
 0x2f3   : > { %v3534_v27 = vpop.eup %3533 }
 0x2f4   : > { %v1474_v29 = vmul.f32 %v3534_v27, %v1391_v8  ;;  %v1394_v31 = vpop.xlane.xlu0 %1393  ;;  %v1319_v32 = vpop.xlane.xlu1 %1318  ;;  %v1466_v20 = vsel %vm1465_vm11, %v3530_v56, %v1462_v34  ;;  %vm1479_vm13 = vweird.f32 %v3534_v27 }
 0x2f5   : > { %3537 = vrcp.f32 %v1394_v31  ;;  %v1343_v33 = vsub.f32 %v4480_v45, %v1319_v32  ;;  %v1471_v36 = vsel %vm1468_vm12, %v1470_v28, %v1466_v20  ;;  %vm1480_vm15 = vmor %vm1478_vm14, %vm1479_vm13  ;;  %v1499_v0 = vand.u32 2147483648, %v1394_v31 }
 0x2f6   : > { %v1475_v35 = vsub.f32 1.0, %v1474_v29  ;;  %v1472_v40 = vmul.f32 %v4461_v30, %v1471_v36  ;;  %v1497_v2 = vand.u32 2147483647, %v1394_v31  ;;  %vm1493_vm3 = vweird.f32 %v1394_v31 }
 0x2f7   : > { %v4550_v37 = vpop.eup %3535  ;;  %v1370_v38 = vmul.f32 1.442695, %v1343_v33  ;;  %v1500_v56 = vor.u32 1.1754944e-38, %v1499_v0 }
 0x2f8   : > { %v1476_v42 = vmul.f32 %v3534_v27, %v1475_v35  ;;  %v1410_v44 = vsel %vm868_vm0, %v4550_v37, 0.0  ;;  %3319 = vmatmul.msk.f32.gmra.mxu1 %vm868_vm0, %v1472_v40  ;;  %vm1498_vm5 = vcmp.eq.f32.partialorder %v1497_v2, 8.507059e+37 }
 0x2f9   : > { %3539 = vpow2.f32 %v1370_v38  ;;  %1411 = vadd.xlane.f32.xlu2 %v1410_v44 }
 0x2fa   : > { %v1477_v45 = vadd.f32 %v3534_v27, %v1476_v42 }
 0x2fb   : > { %v3538_v47 = vpop.eup %3537 }
 0x2fc   : > { %v1489_v49 = vmul.f32 %v3538_v47, %v1394_v31  ;;  %v1397_v52 = vpop.xlane.xlu2 %1396  ;;  %v1322_v53 = vpop.xlane.xlu0 %1321  ;;  %v1481_v30 = vsel %vm1480_vm15, %v3534_v27, %v1477_v45  ;;  %vm1494_vm2 = vweird.f32 %v3538_v47 }
 0x2fd   : > { %3541 = vrcp.f32 %v1397_v52  ;;  %v1344_v54 = vsub.f32 %v4492_v57, %v1322_v53  ;;  %v1486_v55 = vsel %vm1483_vm1, %v1485_v48, %v1481_v30  ;;  %vm1495_vm4 = vmor %vm1493_vm3, %vm1494_vm2  ;;  %v1514_v21 = vand.u32 2147483648, %v1397_v52 }
 0x2fe   : > { %v1490_v15 = vsub.f32 1.0, %v1489_v49  ;;  %v1487_v60 = vmul.f32 %v4473_v41, %v1486_v55  ;;  %v1512_v25 = vand.u32 2147483647, %v1397_v52  ;;  %vm1508_vm7 = vweird.f32 %v1397_v52 }
 0x2ff   : > { %v4557_v51 = vpop.eup %3539  ;;  %v1372_v59 = vmul.f32 1.442695, %v1344_v54  ;;  %v1515_v34 = vor.u32 1.1754944e-38, %v1514_v21 }
 0x300   : > { %v1491_v63 = vmul.f32 %v3538_v47, %v1490_v15  ;;  %v1413_v1 = vsel %vm868_vm0, %v4557_v51, 0.0  ;;  %3320 = vmatmul.msk.f32.gmra.mxu1 %vm868_vm0, %v1487_v60  ;;  %vm1513_vm9 = vcmp.eq.f32.partialorder %v1512_v25, 8.507059e+37 }
 0x301   : > { %3543 = vpow2.f32 %v1372_v59  ;;  %1414 = vadd.xlane.f32.xlu0 %v1413_v1 }
 0x302   : > { %v1492_v57 = vadd.f32 %v3538_v47, %v1491_v63 }
 0x303   : > { %v3542_v24 = vpop.eup %3541 }
 0x304   : > { %v1504_v4 = vmul.f32 %v3542_v24, %v1397_v52  ;;  %v1400_v5 = vpop.xlane.xlu1 %1399  ;;  %v1325_v8 = vpop.xlane.xlu2 %1324  ;;  %v1496_v41 = vsel %vm1495_vm4, %v3538_v47, %v1492_v57  ;;  %vm1509_vm6 = vweird.f32 %v3542_v24 }
 0x305   : > { %3545 = vrcp.f32 %v1400_v5  ;;  %v1345_v11 = vsub.f32 %v4504_v3, %v1325_v8  ;;  %v1501_v12 = vsel %vm1498_vm5, %v1500_v56, %v1496_v41  ;;  %vm1510_vm8 = vmor %vm1508_vm7, %vm1509_vm6  ;;  %v1529_v35 = vand.u32 2147483648, %v1400_v5 }
 0x306   : > { %v1505_v10 = vsub.f32 1.0, %v1504_v4  ;;  %v1502_v17 = vmul.f32 %v4485_v50, %v1501_v12  ;;  %v1527_v43 = vand.u32 2147483647, %v1400_v5  ;;  %vm1523_vm11 = vweird.f32 %v1400_v5 }
 0x307   : > { %v4564_v14 = vpop.eup %3543  ;;  %v1374_v61 = vmul.f32 1.442695, %v1345_v11  ;;  %v1530_v46 = vor.u32 1.1754944e-38, %v1529_v35 }
 0x308   : > { %v1506_v19 = vmul.f32 %v3542_v24, %v1505_v10  ;;  %v1416_v23 = vsel %vm868_vm0, %v4564_v14, 0.0  ;;  %3321 = vmatmul.msk.f32.gmra.mxu1 %vm868_vm0, %v1502_v17  ;;  %vm1528_vm13 = vcmp.eq.f32.partialorder %v1527_v43, 8.507059e+37 }
 0x309   : > { %3547 = vpow2.f32 %v1374_v61  ;;  %1417 = vadd.xlane.f32.xlu1 %v1416_v23 }
 0x30a   : > { %v1507_v3 = vadd.f32 %v3542_v24, %v1506_v19 }
 0x30b   : > { %v3546_v26 = vpop.eup %3545 }
 0x30c   : > { %v1519_v27 = vmul.f32 %v3546_v26, %v1400_v5  ;;  %v1403_v28 = vpop.xlane.xlu0 %1402  ;;  %v1328_v29 = vpop.xlane.xlu1 %1327  ;;  %v1511_v50 = vsel %vm1510_vm8, %v3542_v24, %v1507_v3  ;;  %vm1524_vm10 = vweird.f32 %v3546_v26 }
 0x30d   : > { %3549 = vrcp.f32 %v1403_v28  ;;  %v1346_v31 = vsub.f32 %v4516_v13, %v1328_v29  ;;  %v1516_v20 = vsel %vm1513_vm9, %v1515_v34, %v1511_v50  ;;  %vm1525_vm12 = vmor %vm1523_vm11, %vm1524_vm10  ;;  %v1544_v54 = vand.u32 2147483648, %v1403_v28 }
 0x30e   : > { %v1520_v32 = vsub.f32 1.0, %v1519_v27  ;;  %v1517_v38 = vmul.f32 %v4497_v62, %v1516_v20  ;;  %v1542_v60 = vand.u32 2147483647, %v1403_v28  ;;  %vm1538_vm15 = vweird.f32 %v1403_v28 }
 0x30f   : > { %v4571_v33 = vpop.eup %3547  ;;  %v1376_v36 = vmul.f32 1.442695, %v1346_v31  ;;  %v1545_v63 = vor.u32 1.1754944e-38, %v1544_v54 }
 0x310   : > { %v1521_v40 = vmul.f32 %v3546_v26, %v1520_v32  ;;  %v1419_v42 = vsel %vm868_vm0, %v4571_v33, 0.0  ;;  %3322 = vmatmul.msk.f32.gmra.mxu1 %vm868_vm0, %v1517_v38  ;;  %vm1543_vm2 = vcmp.eq.f32.partialorder %v1542_v60, 8.507059e+37 }
 0x311   : > { %3551 = vpow2.f32 %v1376_v36  ;;  %1420 = vadd.xlane.f32.xlu2 %v1419_v42 }
 0x312   : > { %v1522_v13 = vadd.f32 %v3546_v26, %v1521_v40 }
 0x313   : > { %v3550_v44 = vpop.eup %3549 }
 0x314   : > { %v1534_v45 = vmul.f32 %v3550_v44, %v1403_v28  ;;  %v1331_v47 = vpop.xlane.xlu0 %1330  ;;  %v1526_v48 = vsel %vm1525_vm12, %v3546_v26, %v1522_v13  ;;  %vm1539_vm14 = vweird.f32 %v3550_v44 }
 0x315   : > { %v1347_v62 = vsub.f32 %v4527_v22, %v1331_v47  ;;  %v1531_v49 = vsel %vm1528_vm13, %v1530_v46, %v1526_v48  ;;  %vm1540_vm1 = vmor %vm1538_vm15, %vm1539_vm14 }
 0x316   : > { %v1535_v52 = vsub.f32 1.0, %v1534_v45  ;;  %v1532_v53 = vmul.f32 %v4509_v9, %v1531_v49 }
 0x317   : > { %v4579_v30 = vpop.eup %3551  ;;  %v1378_v15 = vmul.f32 1.442695, %v1347_v62 }
 0x318   : > { %v1536_v55 = vmul.f32 %v3550_v44, %v1535_v52  ;;  %v1422_v59 = vsel %vm868_vm0, %v4579_v30, 0.0  ;;  %3323 = vmatmul.msk.f32.gmra.mxu1 %vm868_vm0, %v1532_v53 }
 0x319   : > { %3553 = vpow2.f32 %v1378_v15  ;;  %1423 = vadd.xlane.f32.xlu0 %v1422_v59 }
 0x31a   : > { %v1537_v22 = vadd.f32 %v3550_v44, %v1536_v55 }
 0x31c   : > { %v1541_v0 = vsel %vm1540_vm1, %v3550_v44, %v1537_v22 }
 0x31d   : > { %v1546_v9 = vsel %vm1543_vm2, %v1545_v63, %v1541_v0 }
 0x31e   : > { %v1547_v1 = vmul.f32 %v4520_v18, %v1546_v9 }
 0x31f   : > { %v4585_v2 = vpop.eup %3553 }
 0x320   : > { %v1425_v57 = vsel %vm868_vm0, %v4585_v2, 0.0  ;;  %3324 = vmatmul.msk.f32.gmra.mxu1 %vm868_vm0, %v1547_v1 }
 0x321   : > { %1426 = vadd.xlane.f32.xlu1 %v1425_v57 }
 0x35c   : > { %v1406_v24 = vpop.xlane.xlu2 %1405 }
 0x35d   : > { %3555 = vrcp.f32 %v1406_v24  ;;  %v1559_v41 = vand.u32 2147483648, %v1406_v24  ;;  %v1557_v10 = vand.u32 2147483647, %v1406_v24  ;;  %vm1553_vm4 = vweird.f32 %v1406_v24 }
 0x35f   : > { %v1560_v61 = vor.u32 1.1754944e-38, %v1559_v41  ;;  %vm1558_vm6 = vcmp.eq.f32.partialorder %v1557_v10, 8.507059e+37 }
 0x363   : > { %v3556_v56 = vpop.eup %3555 }
 0x364   : > { %v1549_v4 = vmul.f32 %v3556_v56, %v1406_v24  ;;  %v1409_v5 = vpop.xlane.xlu1 %1408  ;;  %vm1554_vm3 = vweird.f32 %v3556_v56 }
 0x365   : > { %3557 = vrcp.f32 %v1409_v5  ;;  %vm1555_vm5 = vmor %vm1553_vm4, %vm1554_vm3  ;;  %v1574_v26 = vand.u32 2147483648, %v1409_v5  ;;  %v1572_v27 = vand.u32 2147483647, %v1409_v5  ;;  %vm1568_vm8 = vweird.f32 %v1409_v5 }
 0x366   : > { %v1550_v8 = vsub.f32 1.0, %v1549_v4 }
 0x367   : > { %v1575_v50 = vor.u32 1.1754944e-38, %v1574_v26  ;;  %vm1573_vm10 = vcmp.eq.f32.partialorder %v1572_v27, 8.507059e+37 }
 0x368   : > { %v1551_v11 = vmul.f32 %v3556_v56, %v1550_v8 }
 0x36a   : > { %v1552_v18 = vadd.f32 %v3556_v56, %v1551_v11 }
 0x36b   : > { %v3558_v12 = vpop.eup %3557 }
 0x36c   : > { %v1564_v17 = vmul.f32 %v3558_v12, %v1409_v5  ;;  %v1412_v19 = vpop.xlane.xlu2 %1411  ;;  %v1556_v21 = vsel %vm1555_vm5, %v3556_v56, %v1552_v18  ;;  %vm1569_vm7 = vweird.f32 %v3558_v12 }
 0x36d   : > { %3559 = vrcp.f32 %v1412_v19  ;;  %v1561_v23 = vsel %vm1558_vm6, %v1560_v61, %v1556_v21  ;;  %vm1570_vm9 = vmor %vm1568_vm8, %vm1569_vm7  ;;  %v1589_v38 = vand.u32 2147483648, %v1412_v19  ;;  %v1587_v42 = vand.u32 2147483647, %v1412_v19 }
 0x36e   : > { %v1565_v25 = vsub.f32 1.0, %v1564_v17  ;;  %v1562_v3 = vmul.f32 %v4536_v58, %v1561_v23  ;;  %vm1583_vm12 = vweird.f32 %v1412_v19 }
 0x36f   : > { %v1590_v44 = vor.u32 1.1754944e-38, %v1589_v38  ;;  %vm1588_vm14 = vcmp.eq.f32.partialorder %v1587_v42, 8.507059e+37 }
 0x370   : > { %v1566_v34 = vmul.f32 %v3558_v12, %v1565_v25  ;;  %3325 = vmatmul.msk.f32.gmra.mxu1 %vm868_vm0, %v1562_v3 }
 0x372   : > { %v1567_v28 = vadd.f32 %v3558_v12, %v1566_v34 }
 0x373   : > { %v3560_v29 = vpop.eup %3559 }
 0x374   : > { %v1579_v31 = vmul.f32 %v3560_v29, %v1412_v19  ;;  %v1415_v32 = vpop.xlane.xlu0 %1414  ;;  %v1571_v20 = vsel %vm1570_vm9, %v3558_v12, %v1567_v28  ;;  %vm1584_vm11 = vweird.f32 %v3560_v29 }
 0x375   : > { %3561 = vrcp.f32 %v1415_v32  ;;  %v1576_v35 = vsel %vm1573_vm10, %v1575_v50, %v1571_v20  ;;  %vm1585_vm13 = vmor %vm1583_vm12, %vm1584_vm11  ;;  %v1604_v49 = vand.u32 2147483648, %v1415_v32  ;;  %v1602_v53 = vand.u32 2147483647, %v1415_v32 }
 0x376   : > { %v1580_v36 = vsub.f32 1.0, %v1579_v31  ;;  %v1577_v58 = vmul.f32 %v4543_v16, %v1576_v35  ;;  %vm1598_vm1 = vweird.f32 %v1415_v32 }
 0x377   : > { %v1605_v55 = vor.u32 1.1754944e-38, %v1604_v49  ;;  %vm1603_vm3 = vcmp.eq.f32.partialorder %v1602_v53, 8.507059e+37 }
 0x378   : > { %v1581_v40 = vmul.f32 %v3560_v29, %v1580_v36  ;;  %3326 = vmatmul.msk.f32.gmra.mxu1 %vm868_vm0, %v1577_v58 }
 0x37a   : > { %v1582_v43 = vadd.f32 %v3560_v29, %v1581_v40  ;;  %v4603_v40 = vpop.f32.mrf.mxu1 }
 0x37b   : > { %v3562_v13 = vpop.eup %3561 }
 0x37c   : > { %v1594_v46 = vmul.f32 %v3562_v13, %v1415_v32  ;;  %v1418_v45 = vpop.xlane.xlu1 %1417  ;;  %v1586_v47 = vsel %vm1585_vm13, %v3560_v29, %v1582_v43  ;;  %vm1599_vm15 = vweird.f32 %v3562_v13 }
 0x37d   : > { %3563 = vrcp.f32 %v1418_v45  ;;  %v1591_v48 = vsel %vm1588_vm14, %v1590_v44, %v1586_v47  ;;  %vm1600_vm2 = vmor %vm1598_vm1, %vm1599_vm15  ;;  %v1619_v9 = vand.u32 2147483648, %v1418_v45  ;;  %v1617_v57 = vand.u32 2147483647, %v1418_v45 }
 0x37e   : > { %v1595_v62 = vsub.f32 1.0, %v1594_v46  ;;  %v1592_v16 = vmul.f32 %v4550_v37, %v1591_v48  ;;  %vm1613_vm5 = vweird.f32 %v1418_v45 }
 0x37f   : > { %v1620_v4 = vor.u32 1.1754944e-38, %v1619_v9  ;;  %vm1618_vm7 = vcmp.eq.f32.partialorder %v1617_v57, 8.507059e+37 }
 0x380   : > { %v1596_v52 = vmul.f32 %v3562_v13, %v1595_v62  ;;  %3327 = vmatmul.msk.f32.gmra.mxu1 %vm868_vm0, %v1592_v16 }
 0x382   : > { %v1597_v54 = vadd.f32 %v3562_v13, %v1596_v52 }
 0x383   : > { %v3564_v15 = vpop.eup %3563 }
 0x384   : > { %v1609_v59 = vmul.f32 %v3564_v15, %v1418_v45  ;;  %v1421_v60 = vpop.xlane.xlu2 %1420  ;;  %v1601_v22 = vsel %vm1600_vm2, %v3562_v13, %v1597_v54  ;;  %vm1614_vm4 = vweird.f32 %v3564_v15 }
 0x385   : > { %3565 = vrcp.f32 %v1421_v60  ;;  %v1606_v63 = vsel %vm1603_vm3, %v1605_v55, %v1601_v22  ;;  %vm1615_vm6 = vmor %vm1613_vm5, %vm1614_vm4  ;;  %v1634_v18 = vand.u32 2147483648, %v1421_v60  ;;  %v1632_v61 = vand.u32 2147483647, %v1421_v60 }
 0x386   : > { %v1610_v0 = vsub.f32 1.0, %v1609_v59  ;;  %v1607_v37 = vmul.f32 %v4557_v51, %v1606_v63  ;;  %vm1628_vm9 = vweird.f32 %v1421_v60 }
 0x387   : > { %v1635_v21 = vor.u32 1.1754944e-38, %v1634_v18  ;;  %vm1633_vm11 = vcmp.eq.f32.partialorder %v1632_v61, 8.507059e+37  ;;  %v3588_v18 = vld [vmem:[%s4849_s6 + $0x38] sm:$0xff]  ;;  %v3589_v61 = vld [vmem:[%s4849_s6 + $0x30] sm:$0xff] }
 0x388   : > { %v1611_v1 = vmul.f32 %v3564_v15, %v1610_v0  ;;  %3328 = vmatmul.msk.f32.gmra.mxu1 %vm868_vm0, %v1607_v37 }
 0x38a   : > { %v1612_v24 = vadd.f32 %v3564_v15, %v1611_v1  ;;  %v3582_v1 = vld [vmem:[%s4849_s6 + $0x68] sm:$0xff] }
 0x38b   : > { %v3566_v56 = vpop.eup %3565 }
 0x38c   : > { %v1624_v5 = vmul.f32 %v3566_v56, %v1421_v60  ;;  %v1424_v8 = vpop.xlane.xlu0 %1423  ;;  %v1616_v41 = vsel %vm1615_vm6, %v3564_v15, %v1612_v24  ;;  %vm1629_vm8 = vweird.f32 %v3566_v56  ;;  %v3583_v24 = vld [vmem:[%s4849_s6 + $0x60] sm:$0xff] }
 0x38d   : > { %3567 = vrcp.f32 %v1424_v8  ;;  %v1621_v11 = vsel %vm1618_vm7, %v1620_v4, %v1616_v41  ;;  %vm1630_vm10 = vmor %vm1628_vm9, %vm1629_vm8  ;;  %v1649_v27 = vand.u32 2147483648, %v1424_v8  ;;  %v1647_v29 = vand.u32 2147483647, %v1424_v8  ;;  %v3586_v41 = vld [vmem:[%s4849_s6 + $0x48] sm:$0xff] }
 0x38e   : > { %v1625_v10 = vsub.f32 1.0, %v1624_v5  ;;  %v1622_v51 = vmul.f32 %v4564_v14, %v1621_v11  ;;  %vm1643_vm13 = vweird.f32 %v1424_v8  ;;  %v3585_v5 = vld [vmem:[%s4849_s6 + $0x50] sm:$0xff] }
 0x38f   : > { %v1650_v32 = vor.u32 1.1754944e-38, %v1649_v27  ;;  %vm1648_vm15 = vcmp.eq.f32.partialorder %v1647_v29, 8.507059e+37  ;;  %v3594_v27 = vld [vmem:[%s4849_s6 + $0x8] sm:$0xff]  ;;  %v3595_v29 = vld [vmem:[%s4849_s6] sm:$0xff] }
 0x390   : > { %v1626_v12 = vmul.f32 %v3566_v56, %v1625_v10  ;;  %3329 = vmatmul.msk.f32.gmra.mxu1 %vm868_vm0, %v1622_v51  ;;  %v3587_v10 = vld [vmem:[%s4849_s6 + $0x40] sm:$0xff] }
 0x392   : > { %v1627_v17 = vadd.f32 %v3566_v56, %v1626_v12 }
 0x393   : > { %v3568_v19 = vpop.eup %3567 }
 0x394   : > { %v1639_v23 = vmul.f32 %v3568_v19, %v1424_v8  ;;  %v1427_v25 = vpop.xlane.xlu1 %1426  ;;  %v1631_v3 = vsel %vm1630_vm10, %v3566_v56, %v1627_v17  ;;  %vm1644_vm12 = vweird.f32 %v3568_v19 }
 0x395   : > { %3569 = vrcp.f32 %v1427_v25  ;;  %v1636_v26 = vsel %vm1633_vm11, %v1635_v21, %v1631_v3  ;;  %vm1645_vm14 = vmor %vm1643_vm13, %vm1644_vm12  ;;  %v1662_v43 = vand.u32 2147483647, %v1427_v25  ;;  %vm1658_vm2 = vweird.f32 %v1427_v25  ;;  %v3592_v3 = vld [vmem:[%s4849_s6 + $0x18] sm:$0xff] }
 0x396   : > { %v1640_v34 = vsub.f32 1.0, %v1639_v23  ;;  %v1637_v14 = vmul.f32 %v4571_v33, %v1636_v26  ;;  %v1664_v33 = vand.u32 2147483648, %v1427_v25  ;;  %v3591_v23 = vld [vmem:[%s4849_s6 + $0x20] sm:$0xff] }
 0x397   : > { %vm1663_vm4 = vcmp.eq.f32.partialorder %v1662_v43, 8.507059e+37 }
 0x398   : > { %v1641_v28 = vmul.f32 %v3568_v19, %v1640_v34  ;;  %3330 = vmatmul.msk.f32.gmra.mxu1 %vm868_vm0, %v1637_v14  ;;  %v1665_v44 = vor.u32 1.1754944e-38, %v1664_v33  ;;  %v3593_v34 = vld [vmem:[%s4849_s6 + $0x10] sm:$0xff] }
 0x39a   : > { %v1642_v50 = vadd.f32 %v3568_v19, %v1641_v28 }
 0x39b   : > { %v3570_v31 = vpop.eup %3569 }
 0x39c   : > { %v1654_v20 = vmul.f32 %v3570_v31, %v1427_v25  ;;  %v1646_v35 = vsel %vm1645_vm14, %v3568_v19, %v1642_v50  ;;  %vm1659_vm1 = vweird.f32 %v3570_v31  ;;  %v3590_v19 = vld [vmem:[%s4849_s6 + $0x28] sm:$0xff]  ;;  %v1781_v50 = vmul.f32 %v3595_v29, %v4603_v40  ;;  %v3502_v29 = vld [vmem:[%s4812_s14] ss:$0 sm:$0xff] }
 0x39d   : > { %v1651_v36 = vsel %vm1648_vm15, %v1650_v32, %v1646_v35  ;;  %vm1660_vm3 = vmor %vm1658_vm2, %vm1659_vm1  ;;  %v1823_v32 = vld [vmem:[#allocation7 + $0x8] sm:$0xff]  ;;  %v1798_v35 = vld [vmem:[%s4851_s4 + $0x8] sm:$0xff] }
 0x39e   : > { %v1655_v58 = vsub.f32 1.0, %v1654_v20  ;;  %v1652_v38 = vmul.f32 %v4579_v30, %v1651_v36  ;;  %v1736_v30 = vpop.f32.mrf.mxu1  ;;  %v1822_v20 = vld [vmem:[#allocation7] sm:$0xff] }
 0x39f   : > { %v1782_v28 = vmul.f32 %v3594_v27, %v1736_v30 }
 0x3a0   : > { %v1656_v42 = vmul.f32 %v3570_v31, %v1655_v58  ;;  %3331 = vmatmul.msk.f32.gmra.mxu1 %vm868_vm0, %v1652_v38  ;;  %v3501_v38 = vld [vmem:[%s4811_s13] ss:$0 sm:$0xff] }
 0x3a2   : > { %v1657_v13 = vadd.f32 %v3570_v31, %v1656_v42 }
 0x3a4   : > { %v1661_v46 = vsel %vm1660_vm3, %v3570_v31, %v1657_v13  ;;  %v1797_v31 = vld [vmem:[%s4851_s4] sm:$0xff] }
 0x3a5   : > { %v1666_v45 = vsel %vm1663_vm4, %v1665_v44, %v1661_v46 }
 0x3a6   : > { %v1667_v47 = vmul.f32 %v4585_v2, %v1666_v45  ;;  %v1739_v48 = vpop.f32.mrf.mxu1  ;;  %v3581_v2 = vld [vmem:[%s4849_s6 + $0x70] sm:$0xff] }
 0x3a7   : > { %v1783_v14 = vmul.f32 %v3593_v34, %v1739_v48 }
 0x3a8   : > { %3332 = vmatmul.msk.f32.gmra.mxu1 %vm868_vm0, %v1667_v47  ;;  %v3972_v47 = vmov 16.0  }
 0x3a9   : > { %3571 = vrcp.f32 %v3972_v47 }
 0x3ae   : > { %v1742_v62 = vpop.f32.mrf.mxu1 }
 0x3af   : > { %v1784_v26 = vmul.f32 %v3592_v3, %v1742_v62  ;;  %v3572_v30 = vpop.eup %3571  ;;  %v1943_v62 = vld [vmem:[#allocation10 + $0xa8] sm:$0xff] }
 0x3b0   : > { %v1868_v48 = vmul.f32 16.0, %v3572_v30  ;;  %2125 = vmatpush.msra.mxu3 %v1943_v62  ;;  %vm1872_vm5 = vweird.f32 %v3572_v30 }
 0x3b6   : > { %v1745_v16 = vpop.f32.mrf.mxu1 }
 0x3b7   : > { %v1785_v25 = vmul.f32 %v3591_v23, %v1745_v16  ;;  %v1944_v16 = vld [vmem:[#allocation10 + $0xb0] sm:$0xff] }
 0x3b8   : > { %2148 = vmatpush.msra.mxu0 %v1944_v16 }
 0x3be   : > { %v1748_v49 = vpop.f32.mrf.mxu1 }
 0x3bf   : > { %v1786_v21 = vmul.f32 %v3590_v19, %v1748_v49  ;;  %v1945_v49 = vld [vmem:[#allocation10 + $0xb8] sm:$0xff] }
 0x3c0   : > { %2171 = vmatpush.msra.mxu1 %v1945_v49  ;;  %v1941_v49 = vld [vmem:[#allocation10 + $0x98] sm:$0xff] }
 0x3c6   : > { %v1751_v52 = vpop.f32.mrf.mxu1 }
 0x3c7   : > { %v1787_v17 = vmul.f32 %v3589_v61, %v1751_v52 }
 0x3ce   : > { %v1754_v53 = vpop.f32.mrf.mxu1 }
 0x3cf   : > { %v1788_v12 = vmul.f32 %v3588_v18, %v1754_v53  ;;  %v1931_v18 = vld [vmem:[#allocation10 + $0x48] sm:$0xff] }
 0x3ed   : > { %v1757_v54 = vpop.f32.mrf.mxu1 }
 0x3ee   : > { %v1789_v51 = vmul.f32 %v3587_v10, %v1757_v54  ;;  %v1948_v10 = vld [vmem:[#allocation10 + $0xd0] sm:$0xff] }
 0x3f5   : > { %v1760_v15 = vpop.f32.mrf.mxu1 }
 0x3f6   : > { %v1790_v11 = vmul.f32 %v3586_v41, %v1760_v15  ;;  %v1923_v41 = vld [vmem:[#allocation10 + $0x8] sm:$0xff] }
 0x3fd   : > { %v1763_v55 = vpop.f32.mrf.mxu1 }
 0x3fe   : > { %v1791_v8 = vmul.f32 %v3585_v5, %v1763_v55 }
 0x405   : > { %v1766_v59 = vpop.f32.mrf.mxu1 }
 0x40d   : > { %v1769_v60 = vpop.f32.mrf.mxu1 }
 0x40e   : > { %v1793_v56 = vmul.f32 %v3583_v24, %v1769_v60  ;;  %v1928_v24 = vld [vmem:[#allocation10 + $0x30] sm:$0xff] }
 0x40f   : > { %2149 = vmatpush.msra.mxu0 %v1928_v24  ;;  %v2443_v24 = vld [vmem:[#allocation13 + $0x178] sm:$0xff] }
 0x411   : > { %2240 = vmatpush.msrb.mxu0 %v1948_v10  ;;  %v2439_v10 = vld [vmem:[#allocation13 + $0x158] sm:$0xff] }
 0x415   : > { %v1772_v22 = vpop.f32.mrf.mxu1 }
 0x416   : > { %v1794_v57 = vmul.f32 %v3582_v1, %v1772_v22  ;;  %v1922_v1 = vld [vmem:[#allocation10] sm:$0xff] }
 0x41d   : > { %v1775_v63 = vpop.f32.mrf.mxu1 }
 0x41e   : > { %v1795_v9 = vmul.f32 %v3581_v2, %v1775_v63 }
 0x425   : > { %v1778_v0 = vpop.f32.mrf.mxu1 }
 0x426   : > { %v1796_v37 = vmul.f32 %v1778_v0, %v4399_v39  ;;  %v3584_v39 = vld [vmem:[%s4849_s6 + $0x58] sm:$0xff] }
 0x427   : > { %v1792_v4 = vmul.f32 %v3584_v39, %v1766_v59 }
 0x428   : > { %1799 = vmatpush.msra.mxu2 %v1796_v37 }
 0x42a   : > { %1800 = vmatpush.msra.mxu2 %v1795_v9  ;;  %v1938_v9 = vld [vmem:[#allocation10 + $0x80] sm:$0xff] }
 0x42c   : > { %1801 = vmatpush.msra.mxu2 %v1794_v57  ;;  %v1927_v57 = vld [vmem:[#allocation10 + $0x28] sm:$0xff] }
 0x42d   : > { %2126 = vmatpush.msra.mxu3 %v1927_v57  ;;  %v2419_v57 = vld [vmem:[#allocation13 + $0xb8] sm:$0xff] }
 0x42e   : > { %1802 = vmatpush.msra.mxu2 %v1793_v56  ;;  %v1929_v56 = vld [vmem:[#allocation10 + $0x38] sm:$0xff] }
 0x42f   : > { %2172 = vmatpush.msra.mxu1 %v1929_v56  ;;  %v2418_v56 = vld [vmem:[#allocation13 + $0xb0] sm:$0xff] }
 0x430   : > { %1803 = vmatpush.msra.mxu2 %v1792_v4 }
 0x432   : > { %1804 = vmatpush.msra.mxu2 %v1791_v8  ;;  %v1939_v8 = vld [vmem:[#allocation10 + $0x88] sm:$0xff] }
 0x434   : > { %1805 = vmatpush.msra.mxu2 %v1790_v11  ;;  %v1947_v11 = vld [vmem:[#allocation10 + $0xc8] sm:$0xff] }
 0x435   : > { %2217 = vmatpush.msrb.mxu3 %v1947_v11  ;;  %v2416_v11 = vld [vmem:[#allocation13 + $0xa0] sm:$0xff] }
 0x436   : > { %1806 = vmatpush.msra.mxu2 %v1789_v51  ;;  %v1949_v51 = vld [vmem:[#allocation10 + $0xd8] sm:$0xff] }
 0x437   : > { %2263 = vmatpush.msrb.mxu1 %v1949_v51  ;;  %2218 = vmatpush.msrb.mxu3 %v1931_v18  ;;  %v2410_v51 = vld [vmem:[#allocation13 + $0x70] sm:$0xff]  ;;  %v2415_v18 = vld [vmem:[#allocation13 + $0x98] sm:$0xff] }
 0x438   : > { %1807 = vmatpush.msra.mxu2 %v1788_v12  ;;  %v1932_v12 = vld [vmem:[#allocation10 + $0x50] sm:$0xff] }
 0x439   : > { %2241 = vmatpush.msrb.mxu0 %v1932_v12  ;;  %v2438_v12 = vld [vmem:[#allocation13 + $0x150] sm:$0xff] }
 0x43a   : > { %1808 = vmatpush.msra.mxu2 %v1787_v17  ;;  %v1933_v17 = vld [vmem:[#allocation10 + $0x58] sm:$0xff] }
 0x43b   : > { %2264 = vmatpush.msrb.mxu1 %v1933_v17  ;;  %v2409_v17 = vld [vmem:[#allocation13 + $0x68] sm:$0xff] }
 0x43c   : > { %1809 = vmatpush.msra.mxu2 %v1786_v21 }
 0x43e   : > { %1810 = vmatpush.msra.mxu2 %v1785_v25 }
 0x440   : > { %1811 = vmatpush.msra.mxu2 %v1784_v26 }
 0x442   : > { %1812 = vmatpush.msra.mxu2 %v1783_v14 }
 0x444   : > { %1813 = vmatpush.msra.mxu2 %v1782_v28 }
 0x446   : > { %1814 = vmatpush.msra.mxu2 %v1781_v50 }
 0x447   : > { %1815 = vmatmul.f32.vlgmr.msra.gmra.mxu2 %v1797_v31 }
 0x448   : > { %1848 = vmatpush.msrb.mxu2 %v1823_v32  ;;  %v3503_v32 = vld [vmem:[#allocation9] ss:$0 sm:$0xff] }
 0x44a   : > { %1849 = vmatpush.msrb.mxu2 %v1822_v20 }
 0x44c   : > { %2010 = vmatpush.msra.mxu2 %v1938_v9  ;;  %v2421_v9 = vld [vmem:[#allocation13 + $0xc8] sm:$0xff] }
 0x44e   : > { %2011 = vmatpush.msra.mxu2 %v1922_v1  ;;  %v2420_v1 = vld [vmem:[#allocation13 + $0xc0] sm:$0xff] }
 0x44f   : > { %1818 = vmatmul.f32.gmra.mxu2 %v1798_v35 }
 0x4ca   : > { %v1816_v36 = vpop.f32.mrf.mxu2 }
 0x4cb   : > { %3333 = vmatmul.msk.f32.vlgmr.msrb.gmra.mxu2 %vm868_vm0, %v1816_v36 }
 0x4cc   : > { %2033 = vmatpush.msrb.mxu2 %v1939_v8  ;;  %v2440_v8 = vld [vmem:[#allocation13 + $0x160] sm:$0xff] }
 0x4ce   : > { %2034 = vmatpush.msrb.mxu2 %v1923_v41  ;;  %v2411_v41 = vld [vmem:[#allocation13 + $0x78] sm:$0xff] }
 0x4d2   : > { %v1819_v58 = vpop.f32.mrf.mxu2 }
 0x4d3   : > { %3334 = vmatmul.msk.f32.gmra.mxu2 %vm868_vm0, %v1819_v58 }
 0x54e   : > { %v1851_v40 = vpop.f32.mrf.mxu2 }
 0x54f   : > { %v1852_v33 = vadd.f32 %v3501_v38, %v1851_v40 }
 0x551   : > { %v1857_v42 = vadd.f32 %v1852_v33, %v4226_v7  ;;  %v1869_v7 = vsub.f32 1.0, %v1868_v48  ;;  %v1940_v33 = vld [vmem:[#allocation10 + $0x90] sm:$0xff]  ;;  %v1937_v48 = vld [vmem:[#allocation10 + $0x78] sm:$0xff] }
 0x553   : > { %v1861_v43 = vsel %vm868_vm0, %v1857_v42, 0.0  ;;  %v1870_v52 = vmul.f32 %v3572_v30, %v1869_v7  ;;  %v1925_v7 = vld [vmem:[#allocation10 + $0x18] sm:$0xff] }
 0x554   : > { %1862 = vadd.xlane.f32.xlu2 %v1861_v43  ;;  %v1952_v43 = vld [vmem:[#allocation10 + $0xf0] sm:$0xff] }
 0x555   : > { %v1871_v53 = vadd.f32 %v3572_v30, %v1870_v52  ;;  %v1942_v52 = vld [vmem:[#allocation10 + $0xa0] sm:$0xff] }
 0x556   : > { %v1854_v13 = vpop.f32.mrf.mxu2 }
 0x557   : > { %v1855_v44 = vadd.f32 %v3501_v38, %v1854_v13  ;;  %v4670_v54 = vsel %vm1872_vm5, %v3572_v30, %v1871_v53  ;;  %v1953_v13 = vld [vmem:[#allocation10 + $0xf8] sm:$0xff]  ;;  %v1936_v30 = vld [vmem:[#allocation10 + $0x70] sm:$0xff]  ;;  %v1926_v53 = vld [vmem:[#allocation10 + $0x20] sm:$0xff] }
 0x559   : > { %v1858_v46 = vadd.f32 %v1855_v44, %v4224_v6 }
 0x55b   : > { %v1864_v45 = vsel %vm868_vm0, %v1858_v46, 0.0 }
 0x55c   : > { %1865 = vadd.xlane.f32.xlu0 %v1864_v45  ;;  %v1935_v45 = vld [vmem:[#allocation10 + $0x68] sm:$0xff] }
 0x5c7   : > { %v1863_v6 = vpop.xlane.xlu2 %1862 }
 0x5c8   : > { %v1874_v15 = vmul.f32 %v4670_v54, %v1863_v6  ;;  %v1946_v6 = vld [vmem:[#allocation10 + $0xc0] sm:$0xff] }
 0x5ca   : > { %v1876_v55 = vsub.f32 %v1857_v42, %v1874_v15  ;;  %v1951_v42 = vld [vmem:[#allocation10 + $0xe8] sm:$0xff]  ;;  %v1930_v15 = vld [vmem:[#allocation10 + $0x40] sm:$0xff] }
 0x5cc   : > { %v1878_v59 = vmul.f32 %v1876_v55, %v1876_v55 }
 0x5ce   : > { %v1880_v60 = vsel %vm868_vm0, %v1878_v59, 0.0  ;;  %v2426_v59 = vld [vmem:[#allocation13 + $0xf0] sm:$0xff] }
 0x5cf   : > { %v1866_v22 = vpop.xlane.xlu0 %1865  ;;  %1881 = vadd.xlane.f32.xlu1 %v1880_v60  ;;  %v2425_v60 = vld [vmem:[#allocation13 + $0xe8] sm:$0xff] }
 0x5d0   : > { %v1875_v63 = vmul.f32 %v4670_v54, %v1866_v22  ;;  %v1950_v22 = vld [vmem:[#allocation10 + $0xe0] sm:$0xff] }
 0x5d2   : > { %v4675_v0 = vsub.f32 %v1858_v46, %v1875_v63  ;;  %v1924_v46 = vld [vmem:[#allocation10 + $0x10] sm:$0xff]  ;;  %v1934_v63 = vld [vmem:[#allocation10 + $0x60] sm:$0xff] }
 0x5d4   : > { %v1879_v37 = vmul.f32 %v4675_v0, %v4675_v0 }
 0x5d6   : > { %v1883_v2 = vsel %vm868_vm0, %v1879_v37, 0.0  ;;  %v2423_v37 = vld [vmem:[#allocation13 + $0xd8] sm:$0xff] }
 0x5d7   : > { %1884 = vadd.xlane.f32.xlu2 %v1883_v2  ;;  %v2422_v2 = vld [vmem:[#allocation13 + $0xd0] sm:$0xff] }
 0x642   : > { %v1882_v39 = vpop.xlane.xlu1 %1881 }
 0x643   : > { %v1886_v4 = vmul.f32 %v1882_v39, %v4670_v54  ;;  %v2442_v39 = vld [vmem:[#allocation13 + $0x170] sm:$0xff] }
 0x645   : > { %v1888_v5 = vadd.f32 1e-05, %v1886_v4  ;;  %v2441_v4 = vld [vmem:[#allocation13 + $0x168] sm:$0xff] }
 0x647   : > { %3573 = vrsqrt.f32 %v1888_v5  ;;  %vm1896_vm7 = vweird.f32 %v1888_v5 }
 0x64a   : > { %v1885_v61 = vpop.xlane.xlu2 %1884 }
 0x64b   : > { %v1887_v19 = vmul.f32 %v1885_v61, %v4670_v54  ;;  %v2459_v61 = vld [vmem:[#allocation13 + $0x1f8] sm:$0xff] }
 0x64d   : > { %v3574_v21 = vpop.eup %3573  ;;  %v1889_v23 = vadd.f32 1e-05, %v1887_v19  ;;  %v2414_v19 = vld [vmem:[#allocation13 + $0x90] sm:$0xff] }
 0x64e   : > { %v1891_v25 = vmul.f32 %v3574_v21, %v1888_v5  ;;  %vm1897_vm6 = vweird.f32 %v3574_v21  ;;  %v2417_v5 = vld [vmem:[#allocation13 + $0xa8] sm:$0xff] }
 0x64f   : > { %3575 = vrsqrt.f32 %v1889_v23  ;;  %vm1898_vm8 = vmor %vm1896_vm7, %vm1897_vm6  ;;  %vm1906_vm10 = vweird.f32 %v1889_v23 }
 0x650   : > { %v1892_v3 = vmul.f32 %v3574_v21, %v1891_v25  ;;  %v2408_v25 = vld [vmem:[#allocation13 + $0x60] sm:$0xff] }
 0x652   : > { %v1893_v26 = vmul.f32 0.5, %v1892_v3  ;;  %v2413_v3 = vld [vmem:[#allocation13 + $0x88] sm:$0xff] }
 0x654   : > { %v1894_v34 = vsub.f32 1.5, %v1893_v26  ;;  %v2436_v26 = vld [vmem:[#allocation13 + $0x140] sm:$0xff] }
 0x655   : > { %v3576_v14 = vpop.eup %3575 }
 0x656   : > { %v1895_v27 = vmul.f32 %v3574_v21, %v1894_v34  ;;  %v1901_v28 = vmul.f32 %v3576_v14, %v1889_v23  ;;  %vm1907_vm9 = vweird.f32 %v3576_v14  ;;  %v2437_v23 = vld [vmem:[#allocation13 + $0x148] sm:$0xff]  ;;  %v2407_v34 = vld [vmem:[#allocation13 + $0x58] sm:$0xff] }
 0x657   : > { %vm1908_vm11 = vmor %vm1906_vm10, %vm1907_vm9 }
 0x658   : > { %v1899_v50 = vsel %vm1898_vm8, %v3574_v21, %v1895_v27  ;;  %v1902_v31 = vmul.f32 %v3576_v14, %v1901_v28  ;;  %v2458_v21 = vld [vmem:[#allocation13 + $0x1f0] sm:$0xff]  ;;  %v2491_v27 = vld [vmem:[#allocation13 + $0x2f8] sm:$0xff] }
 0x659   : > { %v1910_v20 = vmul.f32 %v1899_v50, %v1876_v55  ;;  %v2427_v55 = vld [vmem:[#allocation13 + $0xf8] sm:$0xff]  ;;  %v2490_v50 = vld [vmem:[#allocation13 + $0x2f0] sm:$0xff] }
 0x65a   : > { %v1903_v35 = vmul.f32 0.5, %v1902_v31  ;;  %v2435_v28 = vld [vmem:[#allocation13 + $0x138] sm:$0xff]  ;;  %v2434_v31 = vld [vmem:[#allocation13 + $0x130] sm:$0xff] }
 0x65b   : > { %v1915_v36 = vmul.f32 %v3502_v29, %v1910_v20  ;;  %v2404_v20 = vld [vmem:[#allocation13 + $0x40] sm:$0xff] }
 0x65c   : > { %v1904_v58 = vsub.f32 1.5, %v1903_v35  ;;  %v2489_v35 = vld [vmem:[#allocation13 + $0x2e8] sm:$0xff] }
 0x65d   : > { %v4685_v38 = vadd.f32 %v3503_v32, %v1915_v36  ;;  %v2403_v36 = vld [vmem:[#allocation13 + $0x38] sm:$0xff] }
 0x65e   : > { %v1905_v40 = vmul.f32 %v3576_v14, %v1904_v58  ;;  %v2433_v58 = vld [vmem:[#allocation13 + $0x128] sm:$0xff] }
 0x65f   : > { %3335 = vmatmul.msk.f32.vlgmr.msra.gmra.mxu2 %vm868_vm0, %v4685_v38  ;;  %3345 = vmatmul.msk.f32.vlgmr.msra.gmra.mxu3 %vm868_vm0, %v4685_v38 }
 0x660   : > { %v1909_v44 = vsel %vm1908_vm11, %v3576_v14, %v1905_v40  ;;  %3347 = vmatmul.msk.f32.vlgmr.msra.gmra.mxu0 %vm868_vm0, %v4685_v38  ;;  %3349 = vmatmul.msk.f32.vlgmr.msra.gmra.mxu1 %vm868_vm0, %v4685_v38  ;;  %v2412_v14 = vld [vmem:[#allocation13 + $0x80] sm:$0xff]  ;;  %v2457_v40 = vld [vmem:[#allocation13 + $0x1e8] sm:$0xff] }
 0x661   : > { %v1911_v47 = vmul.f32 %v1909_v44, %v4675_v0  ;;  %2056 = vmatpush.msra.mxu2 %v1940_v33  ;;  %2309 = vmatpush.msra.mxu3 %v1951_v42  ;;  %v2424_v0 = vld [vmem:[#allocation13 + $0xe0] sm:$0xff]  ;;  %v2402_v42 = vld [vmem:[#allocation13 + $0x30] sm:$0xff]  ;;  %v2487_v44 = vld [vmem:[#allocation13 + $0x2d8] sm:$0xff] }
 0x662   : > { %2332 = vmatpush.msra.mxu0 %v1952_v43  ;;  %2355 = vmatpush.msra.mxu1 %v1953_v13  ;;  %v2488_v33 = vld [vmem:[#allocation13 + $0x2e0] sm:$0xff] }
 0x663   : > { %v1916_v62 = vmul.f32 %v3502_v29, %v1911_v47  ;;  %2057 = vmatpush.msra.mxu2 %v1924_v46  ;;  %2310 = vmatpush.msra.mxu3 %v1935_v45  ;;  %v2406_v29 = vld [vmem:[#allocation13 + $0x50] sm:$0xff]  ;;  %v2432_v43 = vld [vmem:[#allocation13 + $0x120] sm:$0xff]  ;;  %v2431_v46 = vld [vmem:[#allocation13 + $0x118] sm:$0xff] }
 0x664   : > { %2333 = vmatpush.msra.mxu0 %v1936_v30  ;;  %2356 = vmatpush.msra.mxu1 %v1937_v48  ;;  %v2456_v13 = vld [vmem:[#allocation13 + $0x1e0] sm:$0xff]  ;;  %v2401_v45 = vld [vmem:[#allocation13 + $0x28] sm:$0xff]  ;;  %v2455_v47 = vld [vmem:[#allocation13 + $0x1d8] sm:$0xff] }
 0x665   : > { %v4696_v16 = vadd.f32 %v3503_v32, %v1916_v62  ;;  %v2405_v32 = vld [vmem:[#allocation13 + $0x48] sm:$0xff]  ;;  %v2486_v30 = vld [vmem:[#allocation13 + $0x2d0] sm:$0xff]  ;;  %v2400_v48 = vld [vmem:[#allocation13 + $0x20] sm:$0xff] }
 0x666   : > { %v2430_v62 = vld [vmem:[#allocation13 + $0x110] sm:$0xff] }
 0x667   : > { %3336 = vmatmul.msk.f32.gmra.mxu2 %vm868_vm0, %v4696_v16  ;;  %3346 = vmatmul.msk.f32.gmra.mxu3 %vm868_vm0, %v4696_v16 }
 0x668   : > { %3348 = vmatmul.msk.f32.gmra.mxu0 %vm868_vm0, %v4696_v16  ;;  %3350 = vmatmul.msk.f32.gmra.mxu1 %vm868_vm0, %v4696_v16 }
 0x66f   : > { %3337 = vmatmul.msk.f32.vlgmr.msrb.gmra.mxu2 %vm868_vm0, %v4685_v38  ;;  %3353 = vmatmul.msk.f32.vlgmr.msrb.gmra.mxu3 %vm868_vm0, %v4685_v38 }
 0x670   : > { %3355 = vmatmul.msk.f32.vlgmr.msrb.gmra.mxu0 %vm868_vm0, %v4685_v38  ;;  %3357 = vmatmul.msk.f32.vlgmr.msrb.gmra.mxu1 %vm868_vm0, %v4685_v38 }
 0x671   : > { %2079 = vmatpush.msrb.mxu2 %v1941_v49  ;;  %2679 = vmatpush.msrb.mxu3 %v2427_v55  ;;  %v2454_v49 = vld [vmem:[#allocation13 + $0x1d0] sm:$0xff] }
 0x672   : > { %2702 = vmatpush.msrb.mxu0 %v2443_v24  ;;  %2725 = vmatpush.msrb.mxu1 %v2459_v61  ;;  %v2398_v55 = vld [vmem:[#allocation13 + $0x10] sm:$0xff]  ;;  %v2475_v24 = vld [vmem:[#allocation13 + $0x278] sm:$0xff]  ;;  %v2472_v61 = vld [vmem:[#allocation13 + $0x260] sm:$0xff] }
 0x673   : > { %2080 = vmatpush.msrb.mxu2 %v1925_v7  ;;  %2680 = vmatpush.msrb.mxu3 %v2426_v59  ;;  %v2485_v7 = vld [vmem:[#allocation13 + $0x2c8] sm:$0xff]  ;;  %v2428_v59 = vld [vmem:[#allocation13 + $0x100] sm:$0xff] }
 0x674   : > { %2703 = vmatpush.msrb.mxu0 %v2442_v39  ;;  %2726 = vmatpush.msrb.mxu1 %v2458_v21  ;;  %v2505_v39 = vld [vmem:[#allocation13 + $0x368] sm:$0xff]  ;;  %v2446_v21 = vld [vmem:[#allocation13 + $0x190] sm:$0xff] }
 0x675   : > { %2681 = vmatpush.msrb.mxu3 %v2425_v60  ;;  %v2452_v60 = vld [vmem:[#allocation13 + $0x1c0] sm:$0xff] }
 0x676   : > { %2704 = vmatpush.msrb.mxu0 %v2441_v4  ;;  %2727 = vmatpush.msrb.mxu1 %v2457_v40  ;;  %v2449_v4 = vld [vmem:[#allocation13 + $0x1a8] sm:$0xff] }
 0x677   : > { %3338 = vmatmul.msk.f32.gmra.mxu2 %vm868_vm0, %v4696_v16  ;;  %3354 = vmatmul.msk.f32.gmra.mxu3 %vm868_vm0, %v4696_v16  ;;  %v2497_v40 = vld [vmem:[#allocation13 + $0x328] sm:$0xff] }
 0x678   : > { %3356 = vmatmul.msk.f32.gmra.mxu0 %vm868_vm0, %v4696_v16  ;;  %3358 = vmatmul.msk.f32.gmra.mxu1 %vm868_vm0, %v4696_v16 }
 0x679   : > { %2682 = vmatpush.msrb.mxu3 %v2424_v0  ;;  %2705 = vmatpush.msrb.mxu0 %v2440_v8  ;;  %v2397_v0 = vld [vmem:[#allocation13 + $0x8] sm:$0xff]  ;;  %v2480_v8 = vld [vmem:[#allocation13 + $0x2a0] sm:$0xff] }
 0x67a   : > { %2728 = vmatpush.msrb.mxu1 %v2456_v13 }
 0x67b   : > { %2683 = vmatpush.msrb.mxu3 %v2423_v37  ;;  %2706 = vmatpush.msrb.mxu0 %v2439_v10  ;;  %v2451_v37 = vld [vmem:[#allocation13 + $0x1b8] sm:$0xff]  ;;  %v2473_v10 = vld [vmem:[#allocation13 + $0x268] sm:$0xff] }
 0x67c   : > { %2729 = vmatpush.msrb.mxu1 %v2455_v47  ;;  %v2495_v47 = vld [vmem:[#allocation13 + $0x318] sm:$0xff] }
 0x67d   : > { %2684 = vmatpush.msrb.mxu3 %v2422_v2  ;;  %2707 = vmatpush.msrb.mxu0 %v2438_v12  ;;  %v2482_v2 = vld [vmem:[#allocation13 + $0x2b0] sm:$0xff]  ;;  %v2447_v12 = vld [vmem:[#allocation13 + $0x198] sm:$0xff] }
 0x67e   : > { %2730 = vmatpush.msrb.mxu1 %v2454_v49 }
 0x67f   : > { %3339 = vmatmul.msk.f32.vlgmr.msra.gmra.mxu2 %vm868_vm0, %v4685_v38  ;;  %3361 = vmatmul.msk.f32.vlgmr.msra.gmra.mxu3 %vm868_vm0, %v4685_v38 }
 0x680   : > { %3363 = vmatmul.msk.f32.vlgmr.msra.gmra.mxu0 %vm868_vm0, %v4685_v38  ;;  %3365 = vmatmul.msk.f32.vlgmr.msra.gmra.mxu1 %vm868_vm0, %v4685_v38 }
 0x681   : > { %2102 = vmatpush.msra.mxu2 %v1942_v52  ;;  %2685 = vmatpush.msrb.mxu3 %v2421_v9  ;;  %v2399_v52 = vld [vmem:[#allocation13 + $0x18] sm:$0xff]  ;;  %v2506_v9 = vld [vmem:[#allocation13 + $0x370] sm:$0xff] }
 0x682   : > { %2708 = vmatpush.msrb.mxu0 %v2437_v23  ;;  %v2471_v23 = vld [vmem:[#allocation13 + $0x258] sm:$0xff] }
 0x683   : > { %2103 = vmatpush.msra.mxu2 %v1926_v53  ;;  %2686 = vmatpush.msrb.mxu3 %v2420_v1  ;;  %v2429_v53 = vld [vmem:[#allocation13 + $0x108] sm:$0xff]  ;;  %v2396_v1 = vld [vmem:[#allocation13] sm:$0xff] }
 0x684   : > { %2709 = vmatpush.msrb.mxu0 %v2436_v26  ;;  %v2445_v26 = vld [vmem:[#allocation13 + $0x188] sm:$0xff] }
 0x685   : > { %2687 = vmatpush.msrb.mxu3 %v2419_v57  ;;  %v2450_v57 = vld [vmem:[#allocation13 + $0x1b0] sm:$0xff] }
 0x686   : > { %2710 = vmatpush.msrb.mxu0 %v2435_v28  ;;  %v2444_v28 = vld [vmem:[#allocation13 + $0x180] sm:$0xff] }
 0x687   : > { %3340 = vmatmul.msk.f32.gmra.mxu2 %vm868_vm0, %v4696_v16  ;;  %3362 = vmatmul.msk.f32.gmra.mxu3 %vm868_vm0, %v4696_v16 }
 0x688   : > { %3364 = vmatmul.msk.f32.gmra.mxu0 %vm868_vm0, %v4696_v16  ;;  %3366 = vmatmul.msk.f32.gmra.mxu1 %vm868_vm0, %v4696_v16 }
 0x689   : > { %2688 = vmatpush.msrb.mxu3 %v2418_v56  ;;  %2711 = vmatpush.msrb.mxu0 %v2434_v31  ;;  %v2481_v56 = vld [vmem:[#allocation13 + $0x2a8] sm:$0xff]  ;;  %v2499_v31 = vld [vmem:[#allocation13 + $0x338] sm:$0xff] }
 0x68b   : > { %2689 = vmatpush.msrb.mxu3 %v2417_v5  ;;  %2712 = vmatpush.msrb.mxu0 %v2433_v58  ;;  %v2474_v5 = vld [vmem:[#allocation13 + $0x270] sm:$0xff]  ;;  %v2521_v58 = vld [vmem:[#allocation13 + $0x3e8] sm:$0xff] }
 0x68d   : > { %2690 = vmatpush.msrb.mxu3 %v2416_v11  ;;  %2713 = vmatpush.msrb.mxu0 %v2432_v43  ;;  %v2448_v11 = vld [vmem:[#allocation13 + $0x1a0] sm:$0xff] }
 0x68e   : > { %v2520_v43 = vld [vmem:[#allocation13 + $0x3e0] sm:$0xff] }
 0x68f   : > { %3341 = vmatmul.msk.f32.vlgmr.msrb.gmra.mxu2 %vm868_vm0, %v4685_v38  ;;  %2691 = vmatpush.msrb.mxu3 %v2415_v18  ;;  %v2503_v18 = vld [vmem:[#allocation13 + $0x358] sm:$0xff] }
 0x690   : > { %2194 = vmatpush.msrb.mxu2 %v1946_v6  ;;  %2714 = vmatpush.msrb.mxu0 %v2431_v46  ;;  %v2453_v6 = vld [vmem:[#allocation13 + $0x1c8] sm:$0xff] }
 0x691   : > { %2692 = vmatpush.msrb.mxu3 %v2414_v19  ;;  %2731 = vmatpush.msrb.mxu1 %v2453_v6  ;;  %v2502_v19 = vld [vmem:[#allocation13 + $0x350] sm:$0xff]  ;;  %v2465_v46 = vld [vmem:[#allocation13 + $0x228] sm:$0xff]  ;;  %v2463_v6 = vld [vmem:[#allocation13 + $0x218] sm:$0xff] }
 0x692   : > { %2195 = vmatpush.msrb.mxu2 %v1930_v15  ;;  %2715 = vmatpush.msrb.mxu0 %v2430_v62  ;;  %v2484_v15 = vld [vmem:[#allocation13 + $0x2c0] sm:$0xff]  ;;  %v2518_v62 = vld [vmem:[#allocation13 + $0x3d0] sm:$0xff] }
 0x693   : > { %2693 = vmatpush.msrb.mxu3 %v2413_v3  ;;  %2732 = vmatpush.msrb.mxu1 %v2452_v60  ;;  %v2501_v3 = vld [vmem:[#allocation13 + $0x348] sm:$0xff]  ;;  %v2492_v60 = vld [vmem:[#allocation13 + $0x300] sm:$0xff] }
 0x694   : > { %2716 = vmatpush.msrb.mxu0 %v2429_v53 }
 0x695   : > { %2694 = vmatpush.msrb.mxu3 %v2412_v14  ;;  %2733 = vmatpush.msrb.mxu1 %v2451_v37  ;;  %v2476_v14 = vld [vmem:[#allocation13 + $0x280] sm:$0xff]  ;;  %v2514_v37 = vld [vmem:[#allocation13 + $0x3b0] sm:$0xff] }
 0x696   : > { %2717 = vmatpush.msrb.mxu0 %v2428_v59  ;;  %v2462_v59 = vld [vmem:[#allocation13 + $0x210] sm:$0xff] }
 0x697   : > { %3342 = vmatmul.msk.f32.gmra.mxu2 %vm868_vm0, %v4696_v16  ;;  %2771 = vmatpush.msra.mxu3 %v2491_v27  ;;  %v2500_v27 = vld [vmem:[#allocation13 + $0x340] sm:$0xff] }
 0x698   : > { %2734 = vmatpush.msrb.mxu1 %v2450_v57 }
 0x699   : > { %2772 = vmatpush.msra.mxu3 %v2490_v50  ;;  %v2523_v50 = vld [vmem:[#allocation13 + $0x3f8] sm:$0xff] }
 0x69a   : > { %2735 = vmatpush.msrb.mxu1 %v2449_v4  ;;  %v2538_v4 = vld [vmem:[#allocation13 + $0x470] sm:$0xff] }
 0x69b   : > { %2773 = vmatpush.msra.mxu3 %v2489_v35  ;;  %v2498_v35 = vld [vmem:[#allocation13 + $0x330] sm:$0xff] }
 0x69c   : > { %2736 = vmatpush.msrb.mxu1 %v2448_v11  ;;  %v2510_v11 = vld [vmem:[#allocation13 + $0x390] sm:$0xff] }
 0x69d   : > { %2774 = vmatpush.msra.mxu3 %v2488_v33  ;;  %v4754_v33 = vld [vmem:[#allocation12] sm:$0xff] }
 0x69e   : > { %2737 = vmatpush.msrb.mxu1 %v2447_v12  ;;  %v1958_v13 = vperm.slane %v4754_v33, 0 }
 0x69f   : > { %3343 = vmatmul.msk.f32.vlgmr.msra.gmra.mxu2 %vm868_vm0, %v4685_v38  ;;  %2775 = vmatpush.msra.mxu3 %v2487_v44  ;;  %v2496_v44 = vld [vmem:[#allocation13 + $0x320] sm:$0xff] }
 0x6a0   : > { %2286 = vmatpush.msra.mxu2 %v1950_v22  ;;  %v2483_v22 = vld [vmem:[#allocation13 + $0x2b8] sm:$0xff]  ;;  %2738 = vmatpush.msrb.mxu1 %v2446_v21  ;;  %v2554_v21 = vld [vmem:[#allocation13 + $0x4f0] sm:$0xff] }
 0x6a1   : > { %2776 = vmatpush.msra.mxu3 %v2486_v30 }
 0x6a2   : > { %2287 = vmatpush.msra.mxu2 %v1934_v63  ;;  %v2507_v63 = vld [vmem:[#allocation13 + $0x378] sm:$0xff]  ;;  %2739 = vmatpush.msrb.mxu1 %v2445_v26 }
 0x6a3   : > { %2777 = vmatpush.msra.mxu3 %v2485_v7  ;;  %2794 = vmatpush.msra.mxu0 %v2507_v63  ;;  %v2494_v7 = vld [vmem:[#allocation13 + $0x310] sm:$0xff]  ;;  %v2461_v63 = vld [vmem:[#allocation13 + $0x208] sm:$0xff] }
 0x6a4   : > { %2740 = vmatpush.msrb.mxu1 %v2444_v28  ;;  %v2532_v28 = vld [vmem:[#allocation13 + $0x440] sm:$0xff] }
 0x6a5   : > { %2778 = vmatpush.msra.mxu3 %v2484_v15  ;;  %2795 = vmatpush.msra.mxu0 %v2506_v9  ;;  %v2493_v15 = vld [vmem:[#allocation13 + $0x308] sm:$0xff]  ;;  %v2460_v9 = vld [vmem:[#allocation13 + $0x200] sm:$0xff] }
 0x6a6   : > { %2817 = vmatpush.msra.mxu1 %v2523_v50 }
 0x6a7   : > { %3344 = vmatmul.msk.f32.gmra.mxu2 %vm868_vm0, %v4696_v16  ;;  %2779 = vmatpush.msra.mxu3 %v2483_v22  ;;  %v2515_v22 = vld [vmem:[#allocation13 + $0x3b8] sm:$0xff] }
 0x6a8   : > { %2796 = vmatpush.msra.mxu0 %v2505_v39  ;;  %v1959_v39 = vperm.slane %v4754_v33, 1 }
 0x6a9   : > { %2780 = vmatpush.msra.mxu3 %v2482_v2 }
 0x6ab   : > { %2781 = vmatpush.msra.mxu3 %v2481_v56  ;;  %v2512_v56 = vld [vmem:[#allocation13 + $0x3a0] sm:$0xff] }
 0x6ad   : > { %2782 = vmatpush.msra.mxu3 %v2480_v8  ;;  %v2537_v8 = vld [vmem:[#allocation13 + $0x468] sm:$0xff] }
 0x6af   : > { %3351 = vmatmul.msk.f32.vlgmr.msrb.gmra.mxu2 %vm868_vm0, %v4685_v38 }
 0x6b0   : > { %2656 = vmatpush.msrb.mxu2 %v2411_v41  ;;  %v2504_v41 = vld [vmem:[#allocation13 + $0x360] sm:$0xff] }
 0x6b1   : > { %2797 = vmatpush.msra.mxu0 %v2504_v41 }
 0x6b2   : > { %2657 = vmatpush.msrb.mxu2 %v2410_v51  ;;  %v2479_v51 = vld [vmem:[#allocation13 + $0x298] sm:$0xff] }
 0x6b3   : > { %2783 = vmatpush.msra.mxu3 %v2479_v51  ;;  %2798 = vmatpush.msra.mxu0 %v2503_v18  ;;  %v2536_v51 = vld [vmem:[#allocation13 + $0x460] sm:$0xff]  ;;  %v2509_v18 = vld [vmem:[#allocation13 + $0x388] sm:$0xff] }
 0x6b4   : > { %2658 = vmatpush.msrb.mxu2 %v2409_v17  ;;  %v2478_v17 = vld [vmem:[#allocation13 + $0x290] sm:$0xff] }
 0x6b5   : > { %2784 = vmatpush.msra.mxu3 %v2478_v17  ;;  %2799 = vmatpush.msra.mxu0 %v2502_v19  ;;  %v2535_v17 = vld [vmem:[#allocation13 + $0x458] sm:$0xff]  ;;  %v2508_v19 = vld [vmem:[#allocation13 + $0x380] sm:$0xff] }
 0x6b6   : > { %2659 = vmatpush.msrb.mxu2 %v2408_v25  ;;  %v2477_v25 = vld [vmem:[#allocation13 + $0x288] sm:$0xff] }
 0x6b7   : > { %3352 = vmatmul.msk.f32.gmra.mxu2 %vm868_vm0, %v4696_v16  ;;  %2785 = vmatpush.msra.mxu3 %v2477_v25  ;;  %v2553_v25 = vld [vmem:[#allocation13 + $0x4e8] sm:$0xff] }
 0x6b8   : > { %2660 = vmatpush.msrb.mxu2 %v2407_v34  ;;  %v2470_v34 = vld [vmem:[#allocation13 + $0x250] sm:$0xff]  ;;  %2800 = vmatpush.msra.mxu0 %v2501_v3  ;;  %v2533_v3 = vld [vmem:[#allocation13 + $0x448] sm:$0xff] }
 0x6b9   : > { %2786 = vmatpush.msra.mxu3 %v2476_v14 }
 0x6ba   : > { %2661 = vmatpush.msrb.mxu2 %v2406_v29  ;;  %v2469_v29 = vld [vmem:[#allocation13 + $0x248] sm:$0xff]  ;;  %2801 = vmatpush.msra.mxu0 %v2500_v27  ;;  %v2552_v27 = vld [vmem:[#allocation13 + $0x4e0] sm:$0xff] }
 0x6bc   : > { %2662 = vmatpush.msrb.mxu2 %v2405_v32  ;;  %v2468_v32 = vld [vmem:[#allocation13 + $0x240] sm:$0xff]  ;;  %2802 = vmatpush.msra.mxu0 %v2499_v31  ;;  %v2551_v31 = vld [vmem:[#allocation13 + $0x4d8] sm:$0xff] }
 0x6be   : > { %2663 = vmatpush.msrb.mxu2 %v2404_v20  ;;  %v2522_v20 = vld [vmem:[#allocation13 + $0x3f0] sm:$0xff]  ;;  %2803 = vmatpush.msra.mxu0 %v2498_v35  ;;  %v1960_v35 = vperm.slane %v4754_v33, 2 }
 0x6bf   : > { %3359 = vmatmul.msk.f32.vlgmr.msra.gmra.mxu2 %vm868_vm0, %v4685_v38  ;;  %2818 = vmatpush.msra.mxu1 %v2522_v20  ;;  %v2550_v20 = vld [vmem:[#allocation13 + $0x4d0] sm:$0xff] }
 0x6c0   : > { %2664 = vmatpush.msrb.mxu2 %v2403_v36  ;;  %v2467_v36 = vld [vmem:[#allocation13 + $0x238] sm:$0xff]  ;;  %2804 = vmatpush.msra.mxu0 %v2497_v40  ;;  %v2549_v40 = vld [vmem:[#allocation13 + $0x4c8] sm:$0xff] }
 0x6c1   : > { %2819 = vmatpush.msra.mxu1 %v2521_v58 }
 0x6c2   : > { %2665 = vmatpush.msrb.mxu2 %v2402_v42  ;;  %v2466_v42 = vld [vmem:[#allocation13 + $0x230] sm:$0xff]  ;;  %2805 = vmatpush.msra.mxu0 %v2496_v44  ;;  %v2548_v44 = vld [vmem:[#allocation13 + $0x4c0] sm:$0xff] }
 0x6c3   : > { %2820 = vmatpush.msra.mxu1 %v2520_v43 }
 0x6c4   : > { %2666 = vmatpush.msrb.mxu2 %v2401_v45  ;;  %v2519_v45 = vld [vmem:[#allocation13 + $0x3d8] sm:$0xff]  ;;  %2806 = vmatpush.msra.mxu0 %v2495_v47 }
 0x6c5   : > { %2821 = vmatpush.msra.mxu1 %v2519_v45 }
 0x6c6   : > { %2667 = vmatpush.msrb.mxu2 %v2400_v48  ;;  %v2464_v48 = vld [vmem:[#allocation13 + $0x220] sm:$0xff]  ;;  %2807 = vmatpush.msra.mxu0 %v2494_v7  ;;  %v2546_v7 = vld [vmem:[#allocation13 + $0x4b0] sm:$0xff] }
 0x6c7   : > { %3360 = vmatmul.msk.f32.gmra.mxu2 %vm868_vm0, %v4696_v16  ;;  %2822 = vmatpush.msra.mxu1 %v2518_v62  ;;  %v2571_v62 = vld [vmem:[#allocation13 + $0x578] sm:$0xff] }
 0x6c8   : > { %2668 = vmatpush.msrb.mxu2 %v2399_v52  ;;  %v2517_v52 = vld [vmem:[#allocation13 + $0x3c8] sm:$0xff]  ;;  %2808 = vmatpush.msra.mxu0 %v2493_v15 }
 0x6c9   : > { %2823 = vmatpush.msra.mxu1 %v2517_v52  ;;  %v2570_v52 = vld [vmem:[#allocation13 + $0x570] sm:$0xff]  ;;  %v2545_v15 = vld [vmem:[#allocation13 + $0x4a8] sm:$0xff] }
 0x6ca   : > { %2669 = vmatpush.msrb.mxu2 %v2398_v55  ;;  %v2516_v55 = vld [vmem:[#allocation13 + $0x3c0] sm:$0xff]  ;;  %2809 = vmatpush.msra.mxu0 %v2492_v60  ;;  %v2525_v60 = vld [vmem:[#allocation13 + $0x408] sm:$0xff] }
 0x6cb   : > { %2824 = vmatpush.msra.mxu1 %v2516_v55  ;;  %v2569_v55 = vld [vmem:[#allocation13 + $0x568] sm:$0xff] }
 0x6cc   : > { %2670 = vmatpush.msrb.mxu2 %v2397_v0 }
 0x6cd   : > { %2825 = vmatpush.msra.mxu1 %v2515_v22 }
 0x6ce   : > { %2671 = vmatpush.msrb.mxu2 %v2396_v1  ;;  %v2513_v1 = vld [vmem:[#allocation13 + $0x3a8] sm:$0xff] }
 0x6cf   : > { %2826 = vmatpush.msra.mxu1 %v2514_v37 }
 0x6d0   : > { %2748 = vmatpush.msra.mxu2 %v2475_v24  ;;  %v2539_v24 = vld [vmem:[#allocation13 + $0x478] sm:$0xff] }
 0x6d1   : > { %2827 = vmatpush.msra.mxu1 %v2513_v1 }
 0x6d2   : > { %2749 = vmatpush.msra.mxu2 %v2474_v5  ;;  %v2511_v5 = vld [vmem:[#allocation13 + $0x398] sm:$0xff] }
 0x6d3   : > { %2828 = vmatpush.msra.mxu1 %v2512_v56  ;;  %v1964_v56 = vperm.slane %v4754_v33, 6 }
 0x6d4   : > { %2750 = vmatpush.msra.mxu2 %v2473_v10 }
 0x6d5   : > { %2829 = vmatpush.msra.mxu1 %v2511_v5  ;;  %v2524_v5 = vld [vmem:[#allocation13 + $0x400] sm:$0xff] }
 0x6d6   : > { %2751 = vmatpush.msra.mxu2 %v2472_v61  ;;  %v2555_v61 = vld [vmem:[#allocation13 + $0x4f8] sm:$0xff] }
 0x6d7   : > { %2830 = vmatpush.msra.mxu1 %v2510_v11  ;;  %v1961_v11 = vperm.slane %v4754_v33, 3 }
 0x6d8   : > { %2752 = vmatpush.msra.mxu2 %v2471_v23  ;;  %v2534_v23 = vld [vmem:[#allocation13 + $0x450] sm:$0xff] }
 0x6d9   : > { %2831 = vmatpush.msra.mxu1 %v2509_v18 }
 0x6da   : > { %2753 = vmatpush.msra.mxu2 %v2470_v34 }
 0x6db   : > { %2832 = vmatpush.msra.mxu1 %v2508_v19  ;;  %v2540_v19 = vld [vmem:[#allocation13 + $0x480] sm:$0xff] }
 0x6dc   : > { %2754 = vmatpush.msra.mxu2 %v2469_v29  ;;  %v1963_v29 = vperm.slane %v4754_v33, 5 }
 0x6dd   : > { %v2151_v37 = vpop.f32.mrf.mxu0 }
 0x6de   : > { %2755 = vmatpush.msra.mxu2 %v2468_v32  ;;  %v2531_v32 = vld [vmem:[#allocation13 + $0x438] sm:$0xff]  ;;  %v2152_v18 = vadd.f32 %v2151_v37, %v1964_v56  ;;  %v2581_v37 = vld [vmem:[#allocation13 + $0x5c8] sm:$0xff] }
 0x6e0   : > { %2756 = vmatpush.msra.mxu2 %v2467_v36  ;;  %v2530_v36 = vld [vmem:[#allocation13 + $0x430] sm:$0xff] }
 0x6e2   : > { %2757 = vmatpush.msra.mxu2 %v2466_v42  ;;  %v2013_v30 = vpop.f32.mrf.mxu2  ;;  %v2128_v26 = vpop.f32.mrf.mxu3  ;;  %v2529_v42 = vld [vmem:[#allocation13 + $0x428] sm:$0xff] }
 0x6e3   : > { %v2014_v49 = vadd.f32 %v2013_v30, %v1958_v13  ;;  %v2129_v58 = vadd.f32 %v2128_v26, %v1963_v29 }
 0x6e4   : > { %2758 = vmatpush.msra.mxu2 %v2465_v46  ;;  %v2528_v46 = vld [vmem:[#allocation13 + $0x420] sm:$0xff] }
 0x6e5   : > { %v2364_v53 = vmax.f32 %v2014_v49, 0.0  ;;  %v2369_v47 = vmax.f32 %v2129_v58, 0.0  ;;  %v2527_v49 = vld [vmem:[#allocation13 + $0x418] sm:$0xff] }
 0x6e6   : > { %2759 = vmatpush.msra.mxu2 %v2464_v48  ;;  %v2547_v48 = vld [vmem:[#allocation13 + $0x4b8] sm:$0xff] }
 0x6e7   : > { %2672 = vmatmul.f32.vlgmr.msrb.gmra.mxu2 %v2364_v53  ;;  %v2526_v53 = vld [vmem:[#allocation13 + $0x410] sm:$0xff] }
 0x6e8   : > { %2760 = vmatpush.msra.mxu2 %v2463_v6 }
 0x6ea   : > { %v2016_v0 = vpop.f32.mrf.mxu2  ;;  %2761 = vmatpush.msra.mxu2 %v2462_v59  ;;  %v2131_v45 = vpop.f32.mrf.mxu3 }
 0x6eb   : > { %v2017_v2 = vadd.f32 %v2016_v0, %v1958_v13  ;;  %v2132_v6 = vadd.f32 %v2131_v45, %v1963_v29  ;;  %v2568_v0 = vld [vmem:[#allocation13 + $0x560] sm:$0xff]  ;;  %v2615_v45 = vld [vmem:[#allocation13 + $0x6d8] sm:$0xff] }
 0x6ec   : > { %2762 = vmatpush.msra.mxu2 %v2461_v63  ;;  %v2544_v63 = vld [vmem:[#allocation13 + $0x4a0] sm:$0xff] }
 0x6ed   : > { %v2380_v57 = vmax.f32 %v2017_v2, 0.0  ;;  %v2385_v2 = vmax.f32 %v2132_v6, 0.0  ;;  %v2614_v6 = vld [vmem:[#allocation13 + $0x6d0] sm:$0xff] }
 0x6ee   : > { %2763 = vmatpush.msra.mxu2 %v2460_v9  ;;  %v4760_v9 = vld [vmem:[#allocation12 + $0x8] sm:$0xff] }
 0x6ef   : > { %2675 = vmatmul.f32.gmra.mxu2 %v2380_v57  ;;  %v2543_v57 = vld [vmem:[#allocation13 + $0x498] sm:$0xff] }
 0x6f0   : > { %2840 = vmatpush.msrb.mxu2 %v2539_v24  ;;  %v2567_v24 = vld [vmem:[#allocation13 + $0x558] sm:$0xff] }
 0x6f2   : > { %v2036_v41 = vpop.f32.mrf.mxu2  ;;  %2841 = vmatpush.msrb.mxu2 %v2538_v4  ;;  %v2220_v4 = vpop.f32.mrf.mxu3 }
 0x6f3   : > { %v2037_v10 = vadd.f32 %v2036_v41, %v1959_v39  ;;  %v2566_v41 = vld [vmem:[#allocation13 + $0x550] sm:$0xff] }
 0x6f4   : > { %2842 = vmatpush.msrb.mxu2 %v2537_v8  ;;  %v2542_v8 = vld [vmem:[#allocation13 + $0x490] sm:$0xff] }
 0x6f5   : > { %v2365_v12 = vmax.f32 %v2037_v10, 0.0  ;;  %v2541_v10 = vld [vmem:[#allocation13 + $0x488] sm:$0xff] }
 0x6f6   : > { %2843 = vmatpush.msrb.mxu2 %v2536_v51  ;;  %v2565_v51 = vld [vmem:[#allocation13 + $0x548] sm:$0xff] }
 0x6f7   : > { %2695 = vmatmul.f32.vlgmr.msrb.gmra.mxu3 %v2365_v12 }
 0x6f8   : > { %2863 = vmatpush.msrb.mxu3 %v2555_v61  ;;  %2844 = vmatpush.msrb.mxu2 %v2535_v17 }
 0x6fa   : > { %2864 = vmatpush.msrb.mxu3 %v2554_v21  ;;  %v2039_v34 = vpop.f32.mrf.mxu2  ;;  %2845 = vmatpush.msrb.mxu2 %v2534_v23  ;;  %v2564_v21 = vld [vmem:[#allocation13 + $0x540] sm:$0xff]  ;;  %v2619_v23 = vld [vmem:[#allocation13 + $0x6f8] sm:$0xff]  ;;  %v2223_v29 = vpop.f32.mrf.mxu3 }
 0x6fb   : > { %v2040_v14 = vadd.f32 %v2039_v34, %v1959_v39  ;;  %v1967_v39 = vperm.slane %v4760_v9, 1  ;;  %v2563_v34 = vld [vmem:[#allocation13 + $0x538] sm:$0xff] }
 0x6fc   : > { %2865 = vmatpush.msrb.mxu3 %v2553_v25  ;;  %2846 = vmatpush.msrb.mxu2 %v2533_v3  ;;  %v2370_v3 = vmax.f32 %v2152_v18, 0.0  ;;  %v2634_v18 = vld [vmem:[#allocation13 + $0x770] sm:$0xff] }
 0x6fd   : > { %v2381_v50 = vmax.f32 %v2040_v14, 0.0  ;;  %v2221_v12 = vadd.f32 %v2220_v4, %v1967_v39  ;;  %v2587_v14 = vld [vmem:[#allocation13 + $0x5f8] sm:$0xff] }
 0x6fe   : > { %2866 = vmatpush.msrb.mxu3 %v2552_v27  ;;  %2847 = vmatpush.msrb.mxu2 %v2532_v28  ;;  %v2154_v27 = vpop.f32.mrf.mxu0  ;;  %v2618_v28 = vld [vmem:[#allocation13 + $0x6f0] sm:$0xff]  ;;  %v2635_v4 = vld [vmem:[#allocation13 + $0x778] sm:$0xff] }
 0x6ff   : > { %2698 = vmatmul.f32.gmra.mxu3 %v2381_v50  ;;  %v2373_v26 = vmax.f32 %v2221_v12, 0.0  ;;  %v2562_v50 = vld [vmem:[#allocation13 + $0x530] sm:$0xff]  ;;  %v2155_v58 = vadd.f32 %v2154_v27, %v1964_v56  ;;  %v2580_v56 = vld [vmem:[#allocation13 + $0x5c0] sm:$0xff] }
 0x700   : > { %2867 = vmatpush.msrb.mxu3 %v2551_v31  ;;  %2848 = vmatpush.msrb.mxu2 %v2531_v32  ;;  %v2586_v31 = vld [vmem:[#allocation13 + $0x5f0] sm:$0xff]  ;;  %v2617_v32 = vld [vmem:[#allocation13 + $0x6e8] sm:$0xff]  ;;  %v2632_v27 = vld [vmem:[#allocation13 + $0x760] sm:$0xff] }
 0x701   : > { %v2578_v12 = vld [vmem:[#allocation13 + $0x5b0] sm:$0xff] }
 0x702   : > { %2868 = vmatpush.msrb.mxu3 %v2550_v20  ;;  %v2059_v43 = vpop.f32.mrf.mxu2  ;;  %2849 = vmatpush.msrb.mxu2 %v2530_v36  ;;  %v2585_v36 = vld [vmem:[#allocation13 + $0x5e8] sm:$0xff] }
 0x703   : > { %v2060_v13 = vadd.f32 %v2059_v43, %v1960_v35  ;;  %v2616_v43 = vld [vmem:[#allocation13 + $0x6e0] sm:$0xff] }
 0x704   : > { %2869 = vmatpush.msrb.mxu3 %v2549_v40  ;;  %2850 = vmatpush.msrb.mxu2 %v2529_v42  ;;  %v2224_v40 = vadd.f32 %v2223_v29, %v1967_v39  ;;  %v2611_v39 = vld [vmem:[#allocation13 + $0x6b8] sm:$0xff]  ;;  %v2576_v29 = vld [vmem:[#allocation13 + $0x5a0] sm:$0xff] }
 0x705   : > { %v2366_v30 = vmax.f32 %v2060_v13, 0.0  ;;  %v2560_v13 = vld [vmem:[#allocation13 + $0x520] sm:$0xff] }
 0x706   : > { %2870 = vmatpush.msrb.mxu3 %v2548_v44  ;;  %2851 = vmatpush.msrb.mxu2 %v2528_v46  ;;  %v2584_v44 = vld [vmem:[#allocation13 + $0x5e0] sm:$0xff] }
 0x707   : > { %2718 = vmatmul.f32.vlgmr.msrb.gmra.mxu0 %v2366_v30  ;;  %2787 = vmatmul.f32.vlgmr.msra.gmra.mxu3 %v2369_v47  ;;  %v2174_v47 = vpop.f32.mrf.mxu1  ;;  %v2386_v30 = vmax.f32 %v2155_v58, 0.0  ;;  %v1971_v58 = vperm.slane %v4760_v9, 5 }
 0x708   : > { %2871 = vmatpush.msrb.mxu3 %v2547_v48  ;;  %2886 = vmatpush.msrb.mxu0 %v2571_v62  ;;  %v2389_v48 = vmax.f32 %v2224_v40, 0.0  ;;  %v2559_v62 = vld [vmem:[#allocation13 + $0x518] sm:$0xff] }
 0x709   : > { %2852 = vmatpush.msrb.mxu2 %v2527_v49  ;;  %v2583_v49 = vld [vmem:[#allocation13 + $0x5d8] sm:$0xff] }
 0x70a   : > { %2872 = vmatpush.msrb.mxu3 %v2546_v7  ;;  %2887 = vmatpush.msrb.mxu0 %v2570_v52  ;;  %v2062_v59 = vpop.f32.mrf.mxu2  ;;  %v1962_v7 = vperm.slane %v4754_v33, 4  ;;  %v1965_v52 = vperm.slane %v4754_v33, 7  ;;  %v2575_v40 = vld [vmem:[#allocation13 + $0x598] sm:$0xff] }
 0x70b   : > { %v2063_v22 = vadd.f32 %v2062_v59, %v1960_v35  ;;  %2853 = vmatpush.msrb.mxu2 %v2526_v53  ;;  %v2561_v35 = vld [vmem:[#allocation13 + $0x528] sm:$0xff]  ;;  %v1968_v53 = vperm.slane %v4760_v9, 2  ;;  %v2582_v59 = vld [vmem:[#allocation13 + $0x5d0] sm:$0xff] }
 0x70c   : > { %2873 = vmatpush.msrb.mxu3 %v2545_v15  ;;  %2888 = vmatpush.msrb.mxu0 %v2569_v55  ;;  %v2243_v15 = vpop.f32.mrf.mxu0  ;;  %v2558_v55 = vld [vmem:[#allocation13 + $0x510] sm:$0xff] }
 0x70d   : > { %v2382_v1 = vmax.f32 %v2063_v22, 0.0  ;;  %2854 = vmatpush.msrb.mxu2 %v2525_v60  ;;  %v2613_v22 = vld [vmem:[#allocation13 + $0x6c8] sm:$0xff]  ;;  %v2244_v33 = vadd.f32 %v2243_v15, %v1968_v53 }
 0x70e   : > { %2874 = vmatpush.msrb.mxu3 %v2544_v63  ;;  %2889 = vmatpush.msrb.mxu0 %v2568_v0  ;;  %v2557_v0 = vld [vmem:[#allocation13 + $0x508] sm:$0xff] }
 0x70f   : > { %2721 = vmatmul.f32.gmra.mxu0 %v2382_v1  ;;  %2790 = vmatmul.f32.gmra.mxu3 %v2385_v2  ;;  %v2175_v2 = vadd.f32 %v2174_v47, %v1965_v52  ;;  %v2612_v1 = vld [vmem:[#allocation13 + $0x6c0] sm:$0xff]  ;;  %v2597_v15 = vld [vmem:[#allocation13 + $0x648] sm:$0xff] }
 0x710   : > { %2875 = vmatpush.msrb.mxu3 %v2543_v57  ;;  %2890 = vmatpush.msrb.mxu0 %v2567_v24  ;;  %v2556_v24 = vld [vmem:[#allocation13 + $0x500] sm:$0xff] }
 0x711   : > { %2855 = vmatpush.msrb.mxu2 %v2524_v5  ;;  %v2371_v5 = vmax.f32 %v2175_v2, 0.0  ;;  %v2627_v2 = vld [vmem:[#allocation13 + $0x738] sm:$0xff] }
 0x712   : > { %2876 = vmatpush.msrb.mxu3 %v2542_v8  ;;  %2891 = vmatpush.msrb.mxu0 %v2566_v41  ;;  %v2082_v61 = vpop.f32.mrf.mxu2  ;;  %v2374_v8 = vmax.f32 %v2244_v33, 0.0  ;;  %v2579_v41 = vld [vmem:[#allocation13 + $0x5b8] sm:$0xff] }
 0x713   : > { %v2083_v17 = vadd.f32 %v2082_v61, %v1961_v11  ;;  %v2651_v33 = vld [vmem:[#allocation13 + $0x7f8] sm:$0xff] }
 0x714   : > { %2877 = vmatpush.msrb.mxu3 %v2541_v10  ;;  %2892 = vmatpush.msrb.mxu0 %v2565_v51  ;;  %v2177_v10 = vpop.f32.mrf.mxu1  ;;  %v2610_v51 = vld [vmem:[#allocation13 + $0x6b0] sm:$0xff] }
 0x715   : > { %v2367_v25 = vmax.f32 %v2083_v17, 0.0  ;;  %v2602_v17 = vld [vmem:[#allocation13 + $0x670] sm:$0xff] }
 0x716   : > { %2878 = vmatpush.msrb.mxu3 %v2540_v19  ;;  %2893 = vmatpush.msrb.mxu0 %v2564_v21  ;;  %v2246_v19 = vpop.f32.mrf.mxu0 }
 0x717   : > { %2741 = vmatmul.f32.vlgmr.msrb.gmra.mxu1 %v2367_v25  ;;  %2810 = vmatmul.f32.vlgmr.msra.gmra.mxu0 %v2370_v3  ;;  %v2633_v25 = vld [vmem:[#allocation13 + $0x768] sm:$0xff] }
 0x718   : > { %2955 = vmatpush.msra.mxu3 %v2619_v23  ;;  %2894 = vmatpush.msrb.mxu0 %v2563_v34  ;;  %v2609_v23 = vld [vmem:[#allocation13 + $0x6a8] sm:$0xff]  ;;  %v2178_v34 = vadd.f32 %v2177_v10, %v1965_v52 }
 0x719   : > { %2879 = vmatmul.f32.vlgmr.msrb.gmra.mxu3 %v2373_v26  ;;  %2909 = vmatpush.msrb.mxu1 %v2587_v14  ;;  %v2577_v3 = vld [vmem:[#allocation13 + $0x5a8] sm:$0xff]  ;;  %v2608_v14 = vld [vmem:[#allocation13 + $0x6a0] sm:$0xff] }
 0x71a   : > { %2956 = vmatpush.msra.mxu3 %v2618_v28  ;;  %v2085_v20 = vpop.f32.mrf.mxu2  ;;  %2895 = vmatpush.msrb.mxu0 %v2562_v50  ;;  %v2601_v26 = vld [vmem:[#allocation13 + $0x668] sm:$0xff]  ;;  %v2247_v28 = vadd.f32 %v2246_v19, %v1968_v53  ;;  %v2600_v50 = vld [vmem:[#allocation13 + $0x660] sm:$0xff] }
 0x71b   : > { %2910 = vmatpush.msrb.mxu1 %v2586_v31  ;;  %v2086_v42 = vadd.f32 %v2085_v20, %v1961_v11  ;;  %v2603_v11 = vld [vmem:[#allocation13 + $0x678] sm:$0xff]  ;;  %v2629_v53 = vld [vmem:[#allocation13 + $0x748] sm:$0xff] }
 0x71c   : > { %2957 = vmatpush.msra.mxu3 %v2617_v32  ;;  %2896 = vmatpush.msrb.mxu0 %v2561_v35  ;;  %v2607_v32 = vld [vmem:[#allocation13 + $0x698] sm:$0xff]  ;;  %v2312_v35 = vpop.f32.mrf.mxu3  ;;  %v2266_v47 = vpop.f32.mrf.mxu1  ;;  %v2625_v10 = vld [vmem:[#allocation13 + $0x728] sm:$0xff] }
 0x71d   : > { %v2383_v46 = vmax.f32 %v2086_v42, 0.0  ;;  %2911 = vmatpush.msrb.mxu1 %v2585_v36  ;;  %v2631_v20 = vld [vmem:[#allocation13 + $0x758] sm:$0xff]  ;;  %v2387_v36 = vmax.f32 %v2178_v34, 0.0  ;;  %v1966_v42 = vperm.slane %v4760_v9, 0  ;;  %v1972_v34 = vperm.slane %v4760_v9, 6 }
 0x71e   : > { %2958 = vmatpush.msra.mxu3 %v2616_v43  ;;  %2897 = vmatpush.msrb.mxu0 %v2560_v13  ;;  %v2390_v43 = vmax.f32 %v2247_v28, 0.0  ;;  %v2599_v13 = vld [vmem:[#allocation13 + $0x658] sm:$0xff]  ;;  %v2335_v19 = vpop.f32.mrf.mxu0 }
 0x71f   : > { %2912 = vmatpush.msrb.mxu1 %v2584_v44  ;;  %2813 = vmatmul.f32.gmra.mxu0 %v2386_v30  ;;  %v2606_v44 = vld [vmem:[#allocation13 + $0x690] sm:$0xff]  ;;  %v2591_v28 = vld [vmem:[#allocation13 + $0x618] sm:$0xff] }
 0x720   : > { %2959 = vmatpush.msra.mxu3 %v2615_v45  ;;  %2744 = vmatmul.f32.gmra.mxu1 %v2383_v46  ;;  %v1969_v45 = vperm.slane %v4760_v9, 3  ;;  %v2630_v30 = vld [vmem:[#allocation13 + $0x750] sm:$0xff] }
 0x721   : > { %2882 = vmatmul.f32.gmra.mxu3 %v2389_v48  ;;  %2898 = vmatpush.msrb.mxu0 %v2559_v62  ;;  %v2574_v48 = vld [vmem:[#allocation13 + $0x590] sm:$0xff] }
 0x722   : > { %2913 = vmatpush.msrb.mxu1 %v2583_v49  ;;  %v2105_v60 = vpop.f32.mrf.mxu2  ;;  %2960 = vmatpush.msra.mxu3 %v2614_v6  ;;  %v2598_v62 = vld [vmem:[#allocation13 + $0x650] sm:$0xff]  ;;  %v2605_v49 = vld [vmem:[#allocation13 + $0x688] sm:$0xff] }
 0x723   : > { %v2106_v63 = vadd.f32 %v2105_v60, %v1962_v7  ;;  %2899 = vmatpush.msrb.mxu0 %v2558_v55  ;;  %v2573_v6 = vld [vmem:[#allocation13 + $0x588] sm:$0xff]  ;;  %v2604_v55 = vld [vmem:[#allocation13 + $0x680] sm:$0xff] }
 0x724   : > { %2914 = vmatpush.msrb.mxu1 %v2582_v59  ;;  %2961 = vmatpush.msra.mxu3 %v2613_v22  ;;  %v2267_v59 = vadd.f32 %v2266_v47, %v1969_v45  ;;  %v2628_v60 = vld [vmem:[#allocation13 + $0x740] sm:$0xff] }
 0x725   : > { %v2368_v57 = vmax.f32 %v2106_v63, 0.0  ;;  %2900 = vmatpush.msrb.mxu0 %v2557_v0  ;;  %v2572_v22 = vld [vmem:[#allocation13 + $0x580] sm:$0xff] }
 0x726   : > { %2915 = vmatpush.msrb.mxu1 %v2581_v37  ;;  %2962 = vmatpush.msra.mxu3 %v2612_v1  ;;  %v2596_v63 = vld [vmem:[#allocation13 + $0x640] sm:$0xff]  ;;  %v2315_v1 = vpop.f32.mrf.mxu3 }
 0x727   : > { %2764 = vmatmul.f32.vlgmr.msra.gmra.mxu2 %v2368_v57  ;;  %2901 = vmatpush.msrb.mxu0 %v2556_v24  ;;  %v2375_v24 = vmax.f32 %v2267_v59, 0.0  ;;  %v2639_v59 = vld [vmem:[#allocation13 + $0x798] sm:$0xff] }
 0x728   : > { %2916 = vmatpush.msrb.mxu1 %v2580_v56  ;;  %2963 = vmatpush.msra.mxu3 %v2611_v39  ;;  %v2595_v56 = vld [vmem:[#allocation13 + $0x638] sm:$0xff]  ;;  %v2626_v39 = vld [vmem:[#allocation13 + $0x730] sm:$0xff] }
 0x729   : > { %2978 = vmatpush.msra.mxu0 %v2635_v4  ;;  %2833 = vmatmul.f32.vlgmr.msra.gmra.mxu1 %v2371_v5  ;;  %v2650_v4 = vld [vmem:[#allocation13 + $0x7f0] sm:$0xff]  ;;  %v2269_v5 = vpop.f32.mrf.mxu1 }
 0x72a   : > { %2902 = vmatmul.f32.vlgmr.msrb.gmra.mxu0 %v2374_v8  ;;  %v2108_v61 = vpop.f32.mrf.mxu2  ;;  %2917 = vmatpush.msrb.mxu1 %v2579_v41  ;;  %v2316_v8 = vadd.f32 %v2315_v1, %v1971_v58 }
 0x72b   : > { %2932 = vmatpush.msra.mxu2 %v2603_v11  ;;  %v2109_v21 = vadd.f32 %v2108_v61, %v1962_v7  ;;  %2964 = vmatpush.msra.mxu3 %v2610_v51  ;;  %v2313_v7 = vadd.f32 %v2312_v35, %v1971_v58  ;;  %v2594_v11 = vld [vmem:[#allocation13 + $0x630] sm:$0xff]  ;;  %v2649_v51 = vld [vmem:[#allocation13 + $0x7e8] sm:$0xff]  ;;  %v2270_v61 = vadd.f32 %v2269_v5, %v1969_v45  ;;  %v2643_v45 = vld [vmem:[#allocation13 + $0x7b8] sm:$0xff] }
 0x72c   : > { %2979 = vmatpush.msra.mxu0 %v2634_v18  ;;  %2918 = vmatpush.msrb.mxu1 %v2578_v12  ;;  %v2593_v18 = vld [vmem:[#allocation13 + $0x628] sm:$0xff]  ;;  %v2624_v12 = vld [vmem:[#allocation13 + $0x720] sm:$0xff]  ;;  %v2336_v35 = vadd.f32 %v2335_v19, %v1972_v34 }
 0x72d   : > { %2933 = vmatpush.msra.mxu2 %v2602_v17  ;;  %2965 = vmatpush.msra.mxu3 %v2609_v23  ;;  %v2384_v31 = vmax.f32 %v2109_v21, 0.0  ;;  %v2377_v0 = vmax.f32 %v2313_v7, 0.0  ;;  %v2648_v17 = vld [vmem:[#allocation13 + $0x7e0] sm:$0xff]  ;;  %v2393_v21 = vmax.f32 %v2316_v8, 0.0  ;;  %v2645_v58 = vld [vmem:[#allocation13 + $0x7c8] sm:$0xff] }
 0x72e   : > { %2980 = vmatpush.msra.mxu0 %v2633_v25  ;;  %2919 = vmatpush.msrb.mxu1 %v2577_v3  ;;  %v2592_v25 = vld [vmem:[#allocation13 + $0x620] sm:$0xff]  ;;  %v2623_v3 = vld [vmem:[#allocation13 + $0x718] sm:$0xff]  ;;  %v2641_v7 = vld [vmem:[#allocation13 + $0x7a8] sm:$0xff] }
 0x72f   : > { %2934 = vmatpush.msra.mxu2 %v2601_v26  ;;  %2966 = vmatpush.msra.mxu3 %v2608_v14  ;;  %v1970_v26 = vperm.slane %v4760_v9, 4  ;;  %v2647_v14 = vld [vmem:[#allocation13 + $0x7d8] sm:$0xff]  ;;  %v3504_v8 = vld [vmem:[#allocation15] ss:$0 sm:$0xff] }
 0x730   : > { %2981 = vmatpush.msra.mxu0 %v2632_v27  ;;  %2920 = vmatpush.msrb.mxu1 %v2576_v29  ;;  %v2391_v29 = vmax.f32 %v2270_v61, 0.0 }
 0x731   : > { %2935 = vmatpush.msra.mxu2 %v2600_v50  ;;  %2967 = vmatpush.msra.mxu3 %v2607_v32  ;;  %v2622_v50 = vld [vmem:[#allocation13 + $0x710] sm:$0xff] }
 0x732   : > { %2982 = vmatpush.msra.mxu0 %v2631_v20  ;;  %v2197_v46 = vpop.f32.mrf.mxu2  ;;  %2767 = vmatmul.f32.gmra.mxu2 %v2384_v31  ;;  %v2646_v31 = vld [vmem:[#allocation13 + $0x7d0] sm:$0xff] }
 0x733   : > { %2836 = vmatmul.f32.gmra.mxu1 %v2387_v36  ;;  %2905 = vmatmul.f32.gmra.mxu0 %v2390_v43  ;;  %v2198_v52 = vadd.f32 %v2197_v46, %v1966_v42  ;;  %v2590_v20 = vld [vmem:[#allocation13 + $0x610] sm:$0xff]  ;;  %v2621_v36 = vld [vmem:[#allocation13 + $0x708] sm:$0xff]  ;;  %v2644_v43 = vld [vmem:[#allocation13 + $0x7c0] sm:$0xff]  ;;  %v2378_v46 = vmax.f32 %v2336_v35, 0.0 }
 0x734   : > { %2921 = vmatpush.msrb.mxu1 %v2575_v40  ;;  %2936 = vmatpush.msra.mxu2 %v2599_v13  ;;  %v2589_v40 = vld [vmem:[#allocation13 + $0x608] sm:$0xff] }
 0x735   : > { %2968 = vmatpush.msra.mxu3 %v2606_v44  ;;  %2983 = vmatpush.msra.mxu0 %v2630_v30  ;;  %v2372_v37 = vmax.f32 %v2198_v52, 0.0  ;;  %v2588_v44 = vld [vmem:[#allocation13 + $0x600] sm:$0xff]  ;;  %v2338_v30 = vpop.f32.mrf.mxu0 }
 0x736   : > { %2922 = vmatpush.msrb.mxu1 %v2574_v48  ;;  %2937 = vmatpush.msra.mxu2 %v2598_v62  ;;  %v2642_v48 = vld [vmem:[#allocation13 + $0x7b0] sm:$0xff]  ;;  %v2640_v52 = vld [vmem:[#allocation13 + $0x7a0] sm:$0xff] }
 0x737   : > { %2969 = vmatpush.msra.mxu3 %v2605_v49  ;;  %2984 = vmatpush.msra.mxu0 %v2629_v53  ;;  %v2339_v49 = vadd.f32 %v2338_v30, %v1972_v34  ;;  %v2358_v53 = vpop.f32.mrf.mxu1 }
 0x738   : > { %2923 = vmatpush.msrb.mxu1 %v2573_v6  ;;  %2938 = vmatpush.msra.mxu2 %v2597_v15  ;;  %v1973_v15 = vperm.slane %v4760_v9, 7 }
 0x739   : > { %2970 = vmatpush.msra.mxu3 %v2604_v55  ;;  %2985 = vmatpush.msra.mxu0 %v2628_v60  ;;  %v2394_v55 = vmax.f32 %v2339_v49, 0.0  ;;  %v2638_v60 = vld [vmem:[#allocation13 + $0x790] sm:$0xff] }
 0x73a   : > { %2924 = vmatpush.msrb.mxu1 %v2572_v22  ;;  %v2200_v57 = vpop.f32.mrf.mxu2  ;;  %2971 = vmatmul.f32.vlgmr.msra.gmra.mxu3 %v2377_v0  ;;  %v2359_v22 = vadd.f32 %v2358_v53, %v1973_v15  ;;  %v2636_v0 = vld [vmem:[#allocation13 + $0x780] sm:$0xff] }
 0x73b   : > { %2939 = vmatpush.msra.mxu2 %v2596_v63  ;;  %2986 = vmatpush.msra.mxu0 %v2627_v2  ;;  %v2201_v41 = vadd.f32 %v2200_v57, %v1966_v42  ;;  %v2620_v42 = vld [vmem:[#allocation13 + $0x700] sm:$0xff]  ;;  %v2637_v63 = vld [vmem:[#allocation13 + $0x788] sm:$0xff] }
 0x73c   : > { %3001 = vmatpush.msra.mxu1 %v2651_v33  ;;  %2856 = vmatmul.f32.vlgmr.msrb.gmra.mxu2 %v2372_v37  ;;  %v2379_v37 = vmax.f32 %v2359_v22, 0.0 }
 0x73d   : > { %2925 = vmatmul.f32.vlgmr.msrb.gmra.mxu1 %v2375_v24  ;;  %2940 = vmatpush.msra.mxu2 %v2595_v56  ;;  %v2388_v23 = vmax.f32 %v2201_v41, 0.0 }
 0x73e   : > { %2987 = vmatpush.msra.mxu0 %v2626_v39  ;;  %3002 = vmatpush.msra.mxu1 %v2650_v4 }
 0x73f   : > { %2941 = vmatpush.msra.mxu2 %v2594_v11  ;;  %v2361_v2 = vpop.f32.mrf.mxu1 }
 0x740   : > { %2988 = vmatpush.msra.mxu0 %v2625_v10  ;;  %3003 = vmatpush.msra.mxu1 %v2649_v51  ;;  %v2362_v33 = vadd.f32 %v2361_v2, %v1973_v15 }
 0x741   : > { %2942 = vmatpush.msra.mxu2 %v2593_v18 }
 0x742   : > { %2989 = vmatpush.msra.mxu0 %v2624_v12  ;;  %v2289_v27 = vpop.f32.mrf.mxu2  ;;  %3004 = vmatpush.msra.mxu1 %v2648_v17  ;;  %v2395_v1 = vmax.f32 %v2362_v33, 0.0 }
 0x743   : > { %2974 = vmatmul.f32.gmra.mxu3 %v2393_v21  ;;  %2943 = vmatpush.msra.mxu2 %v2592_v25  ;;  %v2290_v32 = vadd.f32 %v2289_v27, %v1970_v26 }
 0x744   : > { %2990 = vmatpush.msra.mxu0 %v2623_v3  ;;  %3005 = vmatpush.msra.mxu1 %v2647_v14 }
 0x745   : > { %2859 = vmatmul.f32.gmra.mxu2 %v2388_v23  ;;  %2928 = vmatmul.f32.gmra.mxu1 %v2391_v29  ;;  %v2376_v13 = vmax.f32 %v2290_v32, 0.0 }
 0x746   : > { %2944 = vmatpush.msra.mxu2 %v2591_v28  ;;  %2991 = vmatpush.msra.mxu0 %v2622_v50 }
 0x747   : > { %3006 = vmatpush.msra.mxu1 %v2646_v31 }
 0x748   : > { %2945 = vmatpush.msra.mxu2 %v2590_v20  ;;  %2992 = vmatpush.msra.mxu0 %v2621_v36 }
 0x749   : > { %3007 = vmatpush.msra.mxu1 %v2645_v58 }
 0x74a   : > { %2946 = vmatpush.msra.mxu2 %v2589_v40  ;;  %v2292_v47 = vpop.f32.mrf.mxu2  ;;  %2993 = vmatpush.msra.mxu0 %v2620_v42 }
 0x74b   : > { %3008 = vmatpush.msra.mxu1 %v2644_v43  ;;  %2994 = vmatmul.f32.vlgmr.msra.gmra.mxu0 %v2378_v46  ;;  %v2293_v62 = vadd.f32 %v2292_v47, %v1970_v26 }
 0x74c   : > { %2947 = vmatpush.msra.mxu2 %v2588_v44 }
 0x74d   : > { %3009 = vmatpush.msra.mxu1 %v2643_v45  ;;  %2948 = vmatmul.f32.vlgmr.msra.gmra.mxu2 %v2376_v13  ;;  %v2392_v6 = vmax.f32 %v2293_v62, 0.0 }
 0x74f   : > { %3010 = vmatpush.msra.mxu1 %v2642_v48 }
 0x751   : > { %3011 = vmatpush.msra.mxu1 %v2641_v7 }
 0x753   : > { %3012 = vmatpush.msra.mxu1 %v2640_v52  ;;  %2997 = vmatmul.f32.gmra.mxu0 %v2394_v55 }
 0x755   : > { %3013 = vmatpush.msra.mxu1 %v2639_v59  ;;  %2951 = vmatmul.f32.gmra.mxu2 %v2392_v6 }
 0x757   : > { %3014 = vmatpush.msra.mxu1 %v2638_v60 }
 0x759   : > { %3015 = vmatpush.msra.mxu1 %v2637_v63 }
 0x75b   : > { %3016 = vmatpush.msra.mxu1 %v2636_v0 }
 0x75c   : > { %3017 = vmatmul.f32.vlgmr.msra.gmra.mxu1 %v2379_v37 }
 0x764   : > { %3020 = vmatmul.f32.gmra.mxu1 %v2395_v1 }
 0x76a   : > { %v2673_v57 = vpop.f32.mrf.mxu2 }
 0x76b   : > { %v2674_v51 = vadd.f32 %v3504_v8, %v2673_v57 }
 0x772   : > { %v2676_v4 = vpop.f32.mrf.mxu2 }
 0x773   : > { %v2677_v21 = vadd.f32 %v3504_v8, %v2676_v4 }
 0x77a   : > { %v2696_v9 = vpop.f32.mrf.mxu3 }
 0x77b   : > { %v2697_v18 = vadd.f32 %v2696_v9, %v2674_v51 }
 0x782   : > { %v2699_v39 = vpop.f32.mrf.mxu3 }
 0x783   : > { %v2700_v26 = vadd.f32 %v2699_v39, %v2677_v21 }
 0x784   : > { %v2719_v24 = vpop.f32.mrf.mxu0 }
 0x785   : > { %v2720_v61 = vadd.f32 %v2719_v24, %v2697_v18 }
 0x78a   : > { %v2788_v11 = vpop.f32.mrf.mxu3 }
 0x78c   : > { %v2722_v5 = vpop.f32.mrf.mxu0 }
 0x78d   : > { %v2723_v34 = vadd.f32 %v2722_v5, %v2700_v26 }
 0x792   : > { %v2791_v23 = vpop.f32.mrf.mxu3 }
 0x794   : > { %v2742_v56 = vpop.f32.mrf.mxu1  ;;  %v2811_v12 = vpop.f32.mrf.mxu0 }
 0x795   : > { %v2743_v17 = vadd.f32 %v2742_v56, %v2720_v61 }
 0x79c   : > { %v2814_v14 = vpop.f32.mrf.mxu0  ;;  %v2880_v32 = vpop.f32.mrf.mxu3 }
 0x79d   : > { %v2745_v41 = vpop.f32.mrf.mxu1 }
 0x79e   : > { %v2746_v28 = vadd.f32 %v2745_v41, %v2723_v34 }
 0x7a4   : > { %v2883_v46 = vpop.f32.mrf.mxu3 }
 0x7a6   : > { %v2834_v19 = vpop.f32.mrf.mxu1 }
 0x7a7   : > { %v2903_v58 = vpop.f32.mrf.mxu0 }
 0x7aa   : > { %v2765_v10 = vpop.f32.mrf.mxu2 }
 0x7ab   : > { %v2766_v25 = vadd.f32 %v2765_v10, %v2743_v17 }
 0x7ad   : > { %v2789_v27 = vadd.f32 %v2788_v11, %v2766_v25 }
 0x7af   : > { %v2812_v31 = vadd.f32 %v2811_v12, %v2789_v27 }
 0x7b0   : > { %v2837_v29 = vpop.f32.mrf.mxu1  ;;  %v2906_v48 = vpop.f32.mrf.mxu0 }
 0x7b1   : > { %v2835_v36 = vadd.f32 %v2834_v19, %v2812_v31 }
 0x7b5   : > { %v2768_v3 = vpop.f32.mrf.mxu2 }
 0x7b6   : > { %v2769_v50 = vadd.f32 %v2768_v3, %v2746_v28 }
 0x7b8   : > { %v2792_v35 = vadd.f32 %v2791_v23, %v2769_v50 }
 0x7ba   : > { %v2815_v42 = vadd.f32 %v2814_v14, %v2792_v35  ;;  %v2926_v43 = vpop.f32.mrf.mxu1 }
 0x7bc   : > { %v2838_v45 = vadd.f32 %v2837_v29, %v2815_v42 }
 0x7bd   : > { %v2972_v52 = vpop.f32.mrf.mxu3 }
 0x7bf   : > { %v2857_v20 = vpop.f32.mrf.mxu2 }
 0x7c0   : > { %v2858_v40 = vadd.f32 %v2857_v20, %v2835_v36  ;;  %v3505_v20 = vld [vmem:[#allocation16] ss:$0 sm:$0xff] }
 0x7c2   : > { %v2881_v13 = vadd.f32 %v2880_v32, %v2858_v40  ;;  %v2929_v53 = vpop.f32.mrf.mxu1 }
 0x7c4   : > { %v2904_v30 = vadd.f32 %v2903_v58, %v2881_v13  ;;  %v3506_v58 = vld [vmem:[#allocation18] ss:$0 sm:$0xff] }
 0x7c6   : > { %v2927_v49 = vadd.f32 %v2926_v43, %v2904_v30  ;;  %v2975_v33 = vpop.f32.mrf.mxu3 }
 0x7c8   : > { %v2860_v44 = vpop.f32.mrf.mxu2  ;;  %v2995_v59 = vpop.f32.mrf.mxu0 }
 0x7c9   : > { %v2861_v47 = vadd.f32 %v2860_v44, %v2838_v45 }
 0x7cb   : > { %v2884_v62 = vadd.f32 %v2883_v46, %v2861_v47 }
 0x7cd   : > { %v2907_v15 = vadd.f32 %v2906_v48, %v2884_v62 }
 0x7cf   : > { %v2930_v60 = vadd.f32 %v2929_v53, %v2907_v15 }
 0x7d0   : > { %v2949_v7 = vpop.f32.mrf.mxu2  ;;  %v2998_v24 = vpop.f32.mrf.mxu0 }
 0x7d1   : > { %v2950_v6 = vadd.f32 %v2949_v7, %v2927_v49 }
 0x7d3   : > { %v2973_v55 = vadd.f32 %v2972_v52, %v2950_v6 }
 0x7d5   : > { %v2996_v63 = vadd.f32 %v2995_v59, %v2973_v55 }
 0x7d8   : > { %v2952_v22 = vpop.f32.mrf.mxu2 }
 0x7d9   : > { %v2953_v0 = vadd.f32 %v2952_v22, %v2930_v60  ;;  %v3018_v37 = vpop.f32.mrf.mxu1 }
 0x7da   : > { %v3019_v2 = vadd.f32 %v3018_v37, %v2996_v63 }
 0x7db   : > { %v2976_v1 = vadd.f32 %v2975_v33, %v2953_v0 }
 0x7dc   : > { %v3024_v9 = vadd.f32 %v3019_v2, %v4685_v38 }
 0x7dd   : > { %v2999_v56 = vadd.f32 %v2998_v24, %v2976_v1 }
 0x7de   : > { %v3028_v57 = vsel %vm868_vm0, %v3024_v9, 0.0 }
 0x7df   : > { %3029 = vadd.xlane.f32.xlu0 %v3028_v57 }
 0x7e1   : > { %v3021_v39 = vpop.f32.mrf.mxu1 }
 0x7e2   : > { %v3022_v4 = vadd.f32 %v3021_v39, %v2999_v56 }
 0x7e4   : > { %v3025_v5 = vadd.f32 %v3022_v4, %v4696_v16 }
 0x7e6   : > { %v3031_v8 = vsel %vm868_vm0, %v3025_v5, 0.0 }
 0x7e7   : > { %3032 = vadd.xlane.f32.xlu1 %v3031_v8 }
 0x852   : > { %v3030_v41 = vpop.xlane.xlu0 %3029 }
 0x853   : > { %v3034_v11 = vmul.f32 %v3030_v41, %v4670_v54 }
 0x855   : > { %v3036_v10 = vsub.f32 %v3024_v9, %v3034_v11 }
 0x857   : > { %v3038_v51 = vmul.f32 %v3036_v10, %v3036_v10 }
 0x859   : > { %v3040_v18 = vsel %vm868_vm0, %v3038_v51, 0.0 }
 0x85a   : > { %3041 = vadd.xlane.f32.xlu2 %v3040_v18  ;;  %v3033_v38 = vpop.xlane.xlu1 %3032 }
 0x85b   : > { %v3035_v12 = vmul.f32 %v3033_v38, %v4670_v54 }
 0x85d   : > { %v3037_v61 = vsub.f32 %v3025_v5, %v3035_v12 }
 0x85f   : > { %v3039_v17 = vmul.f32 %v3037_v61, %v3037_v61 }
 0x861   : > { %v3043_v19 = vsel %vm868_vm0, %v3039_v17, 0.0 }
 0x862   : > { %3044 = vadd.xlane.f32.xlu0 %v3043_v19 }
 0x8cd   : > { %v3042_v16 = vpop.xlane.xlu2 %3041 }
 0x8ce   : > { %v3046_v21 = vmul.f32 %v3042_v16, %v4670_v54 }
 0x8d0   : > { %v3048_v23 = vadd.f32 1e-05, %v3046_v21 }
 0x8d2   : > { %3577 = vrsqrt.f32 %v3048_v23  ;;  %vm3056_vm13 = vweird.f32 %v3048_v23 }
 0x8d5   : > { %v3045_v25 = vpop.xlane.xlu0 %3044 }
 0x8d6   : > { %v3047_v3 = vmul.f32 %v3045_v25, %v4670_v54 }
 0x8d8   : > { %v3578_v26 = vpop.eup %3577  ;;  %v3049_v34 = vadd.f32 1e-05, %v3047_v3 }
 0x8d9   : > { %v3051_v14 = vmul.f32 %v3578_v26, %v3048_v23  ;;  %vm3057_vm12 = vweird.f32 %v3578_v26 }
 0x8da   : > { %3579 = vrsqrt.f32 %v3049_v34  ;;  %vm3058_vm14 = vmor %vm3056_vm13, %vm3057_vm12  ;;  %vm3066_vm1 = vweird.f32 %v3049_v34 }
 0x8db   : > { %v3052_v27 = vmul.f32 %v3578_v26, %v3051_v14 }
 0x8dd   : > { %v3053_v28 = vmul.f32 0.5, %v3052_v27 }
 0x8df   : > { %v3054_v29 = vsub.f32 1.5, %v3053_v28 }
 0x8e0   : > { %v3580_v50 = vpop.eup %3579 }
 0x8e1   : > { %v3055_v31 = vmul.f32 %v3578_v26, %v3054_v29  ;;  %v3061_v32 = vmul.f32 %v3580_v50, %v3049_v34  ;;  %vm3067_vm15 = vweird.f32 %v3580_v50 }
 0x8e2   : > { %vm3068_vm2 = vmor %vm3066_vm1, %vm3067_vm15 }
 0x8e3   : > { %v3059_v35 = vsel %vm3058_vm14, %v3578_v26, %v3055_v31  ;;  %v3062_v36 = vmul.f32 %v3580_v50, %v3061_v32 }
 0x8e4   : > { %v3070_v40 = vmul.f32 %v3059_v35, %v3036_v10 }
 0x8e5   : > { %v3063_v54 = vmul.f32 0.5, %v3062_v36 }
 0x8e6   : > { %v3075_v42 = vmul.f32 %v3505_v20, %v3070_v40 }
 0x8e7   : > { %v3064_v43 = vsub.f32 1.5, %v3063_v54 }
 0x8e8   : > { %v3080_v13 = vadd.f32 %v3506_v58, %v3075_v42 }
 0x8e9   : > { %v3065_v44 = vmul.f32 %v3580_v50, %v3064_v43 }
 0x8ea   : > { %3082 = vst.msk [vmem:[%s855_s30] sm:$0xff] %vm868_vm0, %v3080_v13 }
 0x8eb   : > { %v3069_v46 = vsel %vm3068_vm2, %v3580_v50, %v3065_v44 }
 0x8ec   : > { %v3071_v45 = vmul.f32 %v3069_v46, %v3037_v61 }
 0x8ee   : > { %v3076_v47 = vmul.f32 %v3505_v20, %v3071_v45 }
 0x8f0   : > { %v3081_v30 = vadd.f32 %v3506_v58, %v3076_v47 }
 0x8f2   : > { %3083 = vst.msk [vmem:[%s855_s30 + $0x8] sm:$0xff] %vm868_vm0, %v3081_v30 }
 0x8f3 PF: > { %s4852_s28 = sld [smem:[#allocation25_spill]] }
 0x8f9   : > { %s38_s3 = sadd.s32 1, %s4852_s28  }
 0x8fa   : > { %p35_p7 = scmp.ge.s32.totalorder %s38_s3, 4  }
 0x8fc   :  { %37 = sbr.rel (!%p35_p7) target bundleno = 18 (0x12), region = 183 }
 0x901   :  { %3105 = vsyncpa [#allocation3], 1 }
 0x902   :  { %3107 = vsyncpa [#allocation3 + $0x1], 1 }
 0x903   :  { %3108 = vsyncpa [#allocation5], 1 }
 0x904   :  { %3109 = vsyncpa [#allocation8], 1 }
 0x905   :  { %3110 = vsyncpa [#allocation11], 1 }
 0x906   :  { %3111 = vsyncpa [#allocation14], 1 }
 0x907   :  { %3112 = vsyncpa [#allocation17], 1 }

</bundles_post_ra>
